<compile_context>
chip_gen: v7x
topology: tpu7x:2x2x1
jax: 0.10.0
libtpu: 0.0.40
codegen_flags: <defaults>
</compile_context>

<pallas_src>
import functools

import jax
import jax.numpy as jnp
from jax import lax
from jax.experimental import pallas as pl
from jax.experimental.pallas import tpu as pltpu

EPS = 1e-5
_MXU_DTYPE = jnp.bfloat16  # matmul-input / HBM-streaming dtype


# --------------------------------------------------------------------------------------
# small helpers
# --------------------------------------------------------------------------------------
@functools.lru_cache(maxsize=None)
def _vmem_ceiling():
    """Per-generation scoped-VMEM ceiling: capacity minus headroom for Mosaic internal
    scratch, capped at 100 MiB (v5e/v6e), ~56 MiB on v7x.  Falls back to a conservative
    56 MiB if the hardware query is unavailable."""
    cap = 64 << 20
    try:
        cap = int(pltpu.get_tpu_info().vmem_capacity_bytes)
    except Exception:
        pass
    return int(max(32 << 20, min(cap - (8 << 20), 100 << 20)))


def _vmem_limit(block_bytes):
    """Scoped-VMEM request sized to the per-tile working set + slack, clamped to the
    per-generation ceiling."""
    return int(min(_vmem_ceiling(), max(16 << 20, block_bytes + (8 << 20))))


def _row_tile(H, W, C, *, min_rows=1, budget_bytes=12 << 20, bytes_per_elem=2):
    """Largest divisor of H (>= min_rows) whose (th, W, C) tile stays under the byte
    budget; falls back to the smallest admissible divisor if none fits."""
    min_rows = min(min_rows, H)
    divs = [t for t in range(1, H + 1) if H % t == 0 and t >= min_rows]
    fitting = [t for t in divs if t * W * C * bytes_per_elem <= budget_bytes]
    return max(fitting) if fitting else min(divs)
    # TODO(synk): for H with no good divisor fall back to a cdiv grid with a masked last
    #             row-block (or tile over flattened N*H*W rows).


def _bn_scale_shift(stats, gamma, beta, tile_count):
    """Merge per-tile (sum, centered-M2) partials into per-channel BN scale/shift
    (training-mode BN: biased variance over N,H,W).  Chan-style combine avoids the
    E[x^2]-E[x]^2 cancellation (all tiles have identical element count)."""
    C = stats.shape[-1]
    st = stats.reshape(-1, 2, C)                             # (T, 2, C)
    sums, m2s = st[:, 0, :], st[:, 1, :]
    n_tiles = sums.shape[0]
    count = n_tiles * tile_count
    tile_means = sums / tile_count
    mean = jnp.sum(sums, axis=0) / count
    m2 = jnp.sum(m2s, axis=0) + tile_count * jnp.sum((tile_means - mean[None, :]) ** 2,
                                                     axis=0)
    var = jnp.maximum(m2 / count, 0.0)
    inv = lax.rsqrt(var + EPS)                               # one rsqrt per channel
    scale = gamma.reshape(-1) * inv
    shift = beta.reshape(-1) - mean * scale
    return (scale.reshape(1, C).astype(jnp.float32),
            shift.reshape(1, C).astype(jnp.float32))


def _write_stats(st_ref, y2d):
    """Emit per-tile (sum, centered-M2) from the f32 matmul result (before bf16 cast)."""
    rows = y2d.shape[0]
    s = jnp.sum(y2d, axis=0, keepdims=True)                  # (1, C)
    mu = s * (1.0 / rows)
    dcen = y2d - mu
    st_ref[0, 0, 0:1, :] = s
    st_ref[0, 0, 1:2, :] = jnp.sum(dcen * dcen, axis=0, keepdims=True)


# --------------------------------------------------------------------------------------
# kernels
# --------------------------------------------------------------------------------------
def _conv1_kernel(x_ref, w_ref, y_ref, st_ref):
    """1x1 conv (channel matmul) on bf16 input + per-tile BN1 partial stats."""
    th, W, Cin = x_ref.shape[1:]
    C1 = w_ref.shape[1]
    y = jnp.dot(x_ref[0].reshape(th * W, Cin), w_ref[...],
                preferred_element_type=jnp.float32)
    _write_stats(st_ref, y)
    y_ref[0] = y.astype(_MXU_DTYPE).reshape(th, W, C1)


def _bnrelu_conv1x1_kernel(x_ref, w_ref, sc_ref, sh_ref, y_ref, st_ref):
    """(scale/shift BN) + ReLU + 1x1 conv + per-tile BN partial stats."""
    th, W, Cin = x_ref.shape[1:]
    Cout = w_ref.shape[1]
    a = jnp.maximum(x_ref[0].astype(jnp.float32) * sc_ref[...] + sh_ref[...], 0.0)
    y = jnp.dot(a.astype(_MXU_DTYPE).reshape(th * W, Cin), w_ref[...],
                preferred_element_type=jnp.float32)
    _write_stats(st_ref, y)
    y_ref[0] = y.astype(_MXU_DTYPE).reshape(th, W, Cout)


def _bnrelu_conv3x3_kernel(dilation, c_ref, up_ref, dn_ref, w_ref, sc_ref, sh_ref,
                           y_ref, st_ref, pad_ref):
    """(scale/shift BN1) + ReLU + 3x3 dilated conv (im2col-along-kw, 3 matmuls) on a
    row-tile with a dilation-row halo taken from the adjacent row-blocks."""
    th2, W, C = c_ref.shape[1:]
    d = dilation
    p = d
    Wp = W + 2 * p
    t = pl.program_id(1)
    n_row_blocks = pl.num_programs(1)
    sc = sc_ref[...]
    sh = sh_ref[...]

    def act(v):  # BN1 scale/shift + ReLU -> bf16 for the MXU
        return jnp.maximum(v.astype(jnp.float32) * sc + sh, 0.0).astype(_MXU_DTYPE)

    # Padded scratch layout: rows [0,p) top halo, [p,p+th2) center, [p+th2,th2+2p) bottom
    # halo; columns [0,p) / [p+W,Wp) zero padding.  Every element is written exactly once.
    pad_ref[:, 0:p, :] = jnp.zeros((th2 + 2 * p, p, C), _MXU_DTYPE)
    pad_ref[:, p + W:Wp, :] = jnp.zeros((th2 + 2 * p, p, C), _MXU_DTYPE)
    pad_ref[p:p + th2, p:p + W, :] = act(c_ref[0])
    # Top halo: last p rows of the block above (zeros at the image border).
    top = act(up_ref[0, th2 - p:th2])
    pad_ref[0:p, p:p + W, :] = jnp.where(t > 0, top, jnp.zeros_like(top))
    # Bottom halo: first p rows of the block below (zeros at the image border).
    bot = act(dn_ref[0, 0:p])
    pad_ref[p + th2:, p:p + W, :] = jnp.where(t < n_row_blocks - 1, bot,
                                              jnp.zeros_like(bot))

    # im2col-along-kw: for each kh, one (th2*W, 3*C) bf16 operand from the three
    # kw-shifted views of the padded scratch, matmul'd against a (3*C, C) weight slab.
    acc = jnp.zeros((th2 * W, C), jnp.float32)
    for kh in range(3):
        rows = pad_ref[kh * d:kh * d + th2]                        # (th2, Wp, C) bf16
        op = jnp.concatenate([rows[:, kw * d:kw * d + W, :] for kw in range(3)],
                             axis=-1).reshape(th2 * W, 3 * C)
        acc = acc + jnp.dot(op, w_ref[kh], preferred_element_type=jnp.float32)

    _write_stats(st_ref, acc)
    y_ref[0] = acc.astype(_MXU_DTYPE).reshape(th2, W, C)


def _bn_residual_kernel(h_ref, x_ref, sc_ref, sh_ref, o_ref):
    """(scale/shift BN3) + residual add + final ReLU (bf16 stream in / bf16 out)."""
    h = h_ref[0].astype(jnp.float32) * sc_ref[...] + sh_ref[...]
    o_ref[0] = jnp.maximum(h + x_ref[0].astype(jnp.float32), 0.0).astype(o_ref.dtype)


# --------------------------------------------------------------------------------------
# NHWC orchestrator (4 tiled pallas_calls + tiny per-channel glue)
# --------------------------------------------------------------------------------------
def bottleneck_pallas_nhwc(x, w1m, g1, b1, w2m, g2, b2, w3m, g3, b3, *, dilation=1):
    N, H, W, Cin = x.shape
    C1 = w1m.shape[1]
    Cout = w3m.shape[1]
    assert Cin == Cout, "downsample=None requires inplanes == planes * 4"
    x = x.astype(_MXU_DTYPE)
    p = dilation
    Wp = W + 2 * p
    par2 = ("parallel", "parallel")

    # ---- tile selection ----------------------------------------------------------------
    # 1x1 / elementwise passes: bf16-byte budget on the widest channel dim.
    th = _row_tile(H, W, max(Cin, C1, Cout), min_rows=1,
                   budget_bytes=12 << 20, bytes_per_elem=2)
    nT = H // th
    # conv2 pass: ~40 B/pixel*C1 covers the bf16 in/out blocks, pad scratch, im2col
    # operand and the f32 act/acc/matmul temporaries; halo needs th2 >= dilation.
    th2 = _row_tile(H, W, C1, min_rows=p,
                    budget_bytes=max(8 << 20, int(0.55 * _vmem_ceiling())),
                    bytes_per_elem=40)
    nT2 = H // th2

    # ---- pass 1: conv1 (1x1) + BN1 partial stats ----------------------------------------
    blk1 = th * W * (4 * Cin + 4 * C1 + 4 * C1) + 4 * Cin * C1
    h1, st1 = pl.pallas_call(
        _conv1_kernel,
        grid=(N, nT),
        in_specs=[pl.BlockSpec((1, th, W, Cin), lambda n, t: (n, t, 0, 0)),
                  pl.BlockSpec((Cin, C1), lambda n, t: (0, 0))],
        out_specs=[pl.BlockSpec((1, th, W, C1), lambda n, t: (n, t, 0, 0)),
                   pl.BlockSpec((1, 1, 2, C1), lambda n, t: (n, t, 0, 0))],
        out_shape=[jax.ShapeDtypeStruct((N, H, W, C1), _MXU_DTYPE),
                   jax.ShapeDtypeStruct((N, nT, 2, C1), jnp.float32)],
        compiler_params=pltpu.CompilerParams(
            dimension_semantics=par2, vmem_limit_bytes=_vmem_limit(blk1)),
    )(x, w1m)
    sc1, sh1 = _bn_scale_shift(st1, g1, b1, th * W)

    # ---- pass 2: BN1+ReLU -> conv2 (3x3 dilated, row-tiled + halo) + BN2 partials ------
    # Halo rows come from the adjacent row-blocks of h1 (extra BlockSpec views with
    # clamped index maps); out-of-image halo rows are zeroed in-kernel.
    blk2 = (th2 * W * C1 * 34                       # in(x3,db) + out(db) + im2col + f32 temps
            + (th2 + 2 * p) * Wp * C1 * 2           # pad scratch (bf16)
            + 4 * 9 * C1 * C1)                      # weight slabs (db)
    h2, st2 = pl.pallas_call(
        functools.partial(_bnrelu_conv3x3_kernel, dilation),
        grid=(N, nT2),
        in_specs=[
            pl.BlockSpec((1, th2, W, C1), lambda n, t: (n, t, 0, 0)),
            pl.BlockSpec((1, th2, W, C1), lambda n, t: (n, jnp.maximum(t - 1, 0), 0, 0)),
            pl.BlockSpec((1, th2, W, C1),
                         lambda n, t: (n, jnp.minimum(t + 1, nT2 - 1), 0, 0)),
            pl.BlockSpec((3, 3 * C1, C1), lambda n, t: (0, 0, 0)),
            pl.BlockSpec((1, C1), lambda n, t: (0, 0)),
            pl.BlockSpec((1, C1), lambda n, t: (0, 0))],
        out_specs=[pl.BlockSpec((1, th2, W, C1), lambda n, t: (n, t, 0, 0)),
                   pl.BlockSpec((1, 1, 2, C1), lambda n, t: (n, t, 0, 0))],
        out_shape=[jax.ShapeDtypeStruct((N, H, W, C1), _MXU_DTYPE),
                   jax.ShapeDtypeStruct((N, nT2, 2, C1), jnp.float32)],
        scratch_shapes=[pltpu.VMEM((th2 + 2 * p, Wp, C1), _MXU_DTYPE)],
        compiler_params=pltpu.CompilerParams(
            dimension_semantics=par2, vmem_limit_bytes=_vmem_limit(blk2)),
    )(h1, h1, h1, w2m, sc1, sh1)
    sc2, sh2 = _bn_scale_shift(st2, g2, b2, th2 * W)

    # ---- pass 3: BN2+ReLU -> conv3 (1x1) + BN3 partial stats ----------------------------
    blk3 = th * W * (4 * C1 + 4 * Cout + 6 * C1 + 4 * Cout) + 4 * C1 * Cout
    h3, st3 = pl.pallas_call(
        _bnrelu_conv1x1_kernel,
        grid=(N, nT),
        in_specs=[pl.BlockSpec((1, th, W, C1), lambda n, t: (n, t, 0, 0)),
                  pl.BlockSpec((C1, Cout), lambda n, t: (0, 0)),
                  pl.BlockSpec((1, C1), lambda n, t: (0, 0)),
                  pl.BlockSpec((1, C1), lambda n, t: (0, 0))],
        out_specs=[pl.BlockSpec((1, th, W, Cout), lambda n, t: (n, t, 0, 0)),
                   pl.BlockSpec((1, 1, 2, Cout), lambda n, t: (n, t, 0, 0))],
        out_shape=[jax.ShapeDtypeStruct((N, H, W, Cout), _MXU_DTYPE),
                   jax.ShapeDtypeStruct((N, nT, 2, Cout), jnp.float32)],
        compiler_params=pltpu.CompilerParams(
            dimension_semantics=par2, vmem_limit_bytes=_vmem_limit(blk3)),
    )(h2, w3m, sc2, sh2)
    sc3, sh3 = _bn_scale_shift(st3, g3, b3, th * W)

    # ---- pass 4: BN3 + residual + ReLU (pure bf16 HBM stream) ---------------------------
    blk4 = th * W * (4 * Cout + 4 * Cin + 4 * Cout + 8 * Cout)
    out = pl.pallas_call(
        _bn_residual_kernel,
        grid=(N, nT),
        in_specs=[pl.BlockSpec((1, th, W, Cout), lambda n, t: (n, t, 0, 0)),
                  pl.BlockSpec((1, th, W, Cin), lambda n, t: (n, t, 0, 0)),
                  pl.BlockSpec((1, Cout), lambda n, t: (0, 0)),
                  pl.BlockSpec((1, Cout), lambda n, t: (0, 0))],
        out_specs=pl.BlockSpec((1, th, W, Cout), lambda n, t: (n, t, 0, 0)),
        out_shape=jax.ShapeDtypeStruct((N, H, W, Cout), _MXU_DTYPE),
        compiler_params=pltpu.CompilerParams(
            dimension_semantics=par2, vmem_limit_bytes=_vmem_limit(blk4)),
    )(h3, x, sc3, sh3)
    return out


# --------------------------------------------------------------------------------------
# NCHW wrapper matching the PyTorch module interface
# --------------------------------------------------------------------------------------
def bottleneck_pallas(x_nchw, params, dilation=1):
    (w1, g1, b1, w2, g2, b2, w3, g3, b3) = params
    N, Cin, H, W = x_nchw.shape
    C1 = w1.shape[0]
    Cout = w3.shape[0]
    assert Cin == Cout, "downsample=None requires inplanes == planes * 4"

    # PyTorch OIHW conv weights -> matmul-ready slabs, bf16 for the MXU.
    w1m = w1.reshape(C1, Cin).T.astype(_MXU_DTYPE)                            # (Cin, C1)
    # conv2 as im2col-along-kw: per kh a (3*C1, C1) slab, rows ordered (kw, cin).
    w2m = jnp.transpose(w2, (2, 3, 1, 0)).reshape(3, 3 * C1, C1).astype(_MXU_DTYPE)
    w3m = w3.reshape(Cout, C1).T.astype(_MXU_DTYPE)                           # (C1, Cout)

    # bf16 activation stream (the 1x1 convs round to bf16 before the MXU anyway).
    # A model kept end-to-end in NHWC/bf16 should call bottleneck_pallas_nhwc directly
    # and skip these two HBM-round-trip transposes.
    x = jnp.transpose(x_nchw, (0, 2, 3, 1)).astype(_MXU_DTYPE)                # NCHW->NHWC
    out = bottleneck_pallas_nhwc(x, w1m, g1, b1, w2m, g2, b2, w3m, g3, b3,
                                 dilation=dilation)
    return jnp.transpose(out, (0, 3, 1, 2))                                   # NHWC->NCHW


# --------------------------------------------------------------------------------------
# pure-JAX reference (NCHW / OIHW, f32, independent of the kernel's layout conversions)
# --------------------------------------------------------------------------------------
def bottleneck_ref(x, params, dilation=1):
    (w1, g1, b1, w2, g2, b2, w3, g3, b3) = params
    dn = ('NCHW', 'OIHW', 'NCHW')

    def bn(h, g, b):
        mean = jnp.mean(h, axis=(0, 2, 3), keepdims=True)
        var = jnp.mean((h - mean) ** 2, axis=(0, 2, 3), keepdims=True)
        return ((h - mean) * lax.rsqrt(var + EPS)) * g.reshape(1, -1, 1, 1) \
            + b.reshape(1, -1, 1, 1)

    h = lax.conv_general_dilated(x, w1, (1, 1), 'VALID', dimension_numbers=dn)
    h = jax.nn.relu(bn(h, g1, b1))
    h = lax.conv_general_dilated(h, w2, (1, 1),
                                 [(dilation, dilation), (dilation, dilation)],
                                 rhs_dilation=(dilation, dilation),
                                 dimension_numbers=dn)
    h = jax.nn.relu(bn(h, g2, b2))
    h = lax.conv_general_dilated(h, w3, (1, 1), 'VALID', dimension_numbers=dn)
    h = bn(h, g3, b3)
    return jax.nn.relu(h + x)


if __name__ == "__main__":
    key = jax.random.PRNGKey(0)
    N, inplanes, H, W = 2, 16, 16, 16
    planes = 4
    dilation = 2                       # conv2: kernel 3x3, dilation=2, padding=2
    Cout = planes * 4                  # == inplanes so the residual add is valid

    ks = jax.random.split(key, 10)
    x = jax.random.normal(ks[0], (N, inplanes, H, W), jnp.float32)

    # Parameters in PyTorch layout: conv weights OIHW, BN gamma/beta per channel.
    w1 = 0.1 * jax.random.normal(ks[1], (planes, inplanes, 1, 1), jnp.float32)
    w2 = 0.1 * jax.random.normal(ks[2], (planes, planes, 3, 3), jnp.float32)
    w3 = 0.1 * jax.random.normal(ks[3], (Cout, planes, 1, 1), jnp.float32)
    g1 = 1.0 + 0.1 * jax.random.normal(ks[4], (planes,), jnp.float32)
    b1 = 0.1 * jax.random.normal(ks[5], (planes,), jnp.float32)
    g2 = 1.0 + 0.1 * jax.random.normal(ks[6], (planes,), jnp.float32)
    b2 = 0.1 * jax.random.normal(ks[7], (planes,), jnp.float32)
    g3 = 1.0 + 0.1 * jax.random.normal(ks[8], (Cout,), jnp.float32)
    b3 = 0.1 * jax.random.normal(ks[9], (Cout,), jnp.float32)
    params = (w1, g1, b1, w2, g2, b2, w3, g3, b3)

    fwd = jax.jit(functools.partial(bottleneck_pallas, dilation=dilation))
    out = jax.block_until_ready(fwd(x, params))

    ref = bottleneck_ref(x, params, dilation=dilation)
    assert out.shape == (N, Cout, H, W)
    # bf16 inputs / intermediates / output -> compare at bf16-appropriate tolerance.
    assert jnp.allclose(out.astype(jnp.float32), ref, rtol=4e-2, atol=4e-2), \
        "mismatch vs JAX reference"

    print("KERNEL_OK")
</pallas_src>

<mosaic_0001>
module attributes {stable_mosaic.version = 11 : i64} {
  func.func @_conv1_kernel(%arg0: i32, %arg1: i32, %arg2: memref<1x16x16x16xbf16, #tpu.memory_space<vmem>>, %arg3: memref<16x4xbf16, #tpu.memory_space<vmem>>, %arg4: memref<1x16x16x4xbf16, #tpu.memory_space<vmem>>, %arg5: memref<1x1x2x4xf32, #tpu.memory_space<vmem>>) attributes {dimension_semantics = [#tpu.dimension_semantics<parallel>, #tpu.dimension_semantics<parallel>], iteration_bounds = array<i64: 2, 1>, scalar_prefetch = 0 : i64, scratch_operands = 0 : i64, tpu.core_type = #tpu.core_type<tc>, window_params = [{transform_indices = @transform_0, window_bounds = array<i64: 1, 16, 16, 16>}, {pipeline_mode = #tpu.pipeline_mode<synchronous>, transform_indices = @transform_1, window_bounds = array<i64: 16, 4>}, {transform_indices = @transform_2, window_bounds = array<i64: 1, 16, 16, 4>}, {transform_indices = @transform_3, window_bounds = array<i64: 1, 1, 2, 4>}]} {
    %c0 = arith.constant 0 : index
    %c0_0 = arith.constant 0 : index
    %c0_1 = arith.constant 0 : index
    %c0_2 = arith.constant 0 : index
    %0 = vector.load %arg2[%c0, %c0_0, %c0_1, %c0_2] : memref<1x16x16x16xbf16, #tpu.memory_space<vmem>>, vector<1x16x16x16xbf16>
    %1 = vector.shape_cast %0 : vector<1x16x16x16xbf16> to vector<16x16x16xbf16>
    %2 = vector.shape_cast %1 : vector<16x16x16xbf16> to vector<256x16xbf16>
    %c0_3 = arith.constant 0 : index
    %c0_4 = arith.constant 0 : index
    %3 = vector.load %arg3[%c0_3, %c0_4] : memref<16x4xbf16, #tpu.memory_space<vmem>>, vector<16x4xbf16>
    %cst = arith.constant dense<0.000000e+00> : vector<256x4xf32>
    %4 = tpu.matmul %2, %3, %cst {dimension_numbers = #tpu.dot_dimension_numbers<[1], [0], [0], [1], [0, 0, 1, 1], [], []>} : vector<256x16xbf16>, vector<16x4xbf16>, vector<256x4xf32> -> vector<256x4xf32>
    %cst_5 = arith.constant dense<0.000000e+00> : vector<4xf32>
    %5 = vector.multi_reduction <add>, %4, %cst_5 [0] : vector<256x4xf32> to vector<4xf32>
    %6 = vector.shape_cast %5 : vector<4xf32> to vector<1x4xf32>
    %cst_6 = arith.constant 3.906250e-03 : f32
    %7 = vector.broadcast %cst_6 : f32 to vector<1x4xf32>
    %8 = arith.mulf %6, %7 : vector<1x4xf32>
    %9 = vector.broadcast %8 : vector<1x4xf32> to vector<256x4xf32>
    %10 = arith.subf %4, %9 : vector<256x4xf32>
    %c0_7 = arith.constant 0 : index
    %c0_8 = arith.constant 0 : index
    %c0_9 = arith.constant 0 : index
    %c0_10 = arith.constant 0 : index
    %11 = vector.load %arg5[%c0_7, %c0_8, %c0_9, %c0_10] : memref<1x1x2x4xf32, #tpu.memory_space<vmem>>, vector<1x1x1x4xf32>
    %12 = vector.shape_cast %11 : vector<1x1x1x4xf32> to vector<1x4xf32>
    %13 = vector.shape_cast %6 : vector<1x4xf32> to vector<1x1x1x4xf32>
    tpu.vector_store %arg5[%c0_7, %c0_8, %c0_9, %c0_10], %13 {strides = array<i32>} : memref<1x1x2x4xf32, #tpu.memory_space<vmem>>, vector<1x1x1x4xf32>,
    %14 = arith.mulf %10, %10 : vector<256x4xf32>
    %cst_11 = arith.constant dense<0.000000e+00> : vector<4xf32>
    %15 = vector.multi_reduction <add>, %14, %cst_11 [0] : vector<256x4xf32> to vector<4xf32>
    %16 = vector.shape_cast %15 : vector<4xf32> to vector<1x4xf32>
    %c0_12 = arith.constant 0 : index
    %c0_13 = arith.constant 0 : index
    %c1 = arith.constant 1 : index
    %c0_14 = arith.constant 0 : index
    %17 = vector.load %arg5[%c0_12, %c0_13, %c1, %c0_14] : memref<1x1x2x4xf32, #tpu.memory_space<vmem>>, vector<1x1x1x4xf32>
    %18 = vector.shape_cast %17 : vector<1x1x1x4xf32> to vector<1x4xf32>
    %19 = vector.shape_cast %16 : vector<1x4xf32> to vector<1x1x1x4xf32>
    tpu.vector_store %arg5[%c0_12, %c0_13, %c1, %c0_14], %19 {strides = array<i32>} : memref<1x1x2x4xf32, #tpu.memory_space<vmem>>, vector<1x1x1x4xf32>,
    %20 = arith.truncf %4 : vector<256x4xf32> to vector<256x4xbf16>
    %21 = vector.shape_cast %20 : vector<256x4xbf16> to vector<16x16x4xbf16>
    %c0_15 = arith.constant 0 : index
    %c0_16 = arith.constant 0 : index
    %c0_17 = arith.constant 0 : index
    %c0_18 = arith.constant 0 : index
    %22 = vector.load %arg4[%c0_15, %c0_16, %c0_17, %c0_18] : memref<1x16x16x4xbf16, #tpu.memory_space<vmem>>, vector<1x16x16x4xbf16>
    %23 = vector.shape_cast %22 : vector<1x16x16x4xbf16> to vector<16x16x4xbf16>
    %24 = vector.shape_cast %21 : vector<16x16x4xbf16> to vector<1x16x16x4xbf16>
    tpu.vector_store %arg4[%c0_15, %c0_16, %c0_17, %c0_18], %24 {strides = array<i32>} : memref<1x16x16x4xbf16, #tpu.memory_space<vmem>>, vector<1x16x16x4xbf16>,
    return
  }
  func.func @transform_0(%arg0: i32, %arg1: i32) -> (i32, i32, i32, i32) {
    %c0_i32 = arith.constant 0 : i32
    %c0_i32_0 = arith.constant 0 : i32
    %c0_i32_1 = arith.constant 0 : i32
    return %arg0, %arg1, %c0_i32, %c0_i32_0 : i32, i32, i32, i32
  }
  func.func @transform_1(%arg0: i32, %arg1: i32) -> (i32, i32) {
    %c0_i32 = arith.constant 0 : i32
    %c0_i32_0 = arith.constant 0 : i32
    %c0_i32_1 = arith.constant 0 : i32
    return %c0_i32, %c0_i32_0 : i32, i32
  }
  func.func @transform_2(%arg0: i32, %arg1: i32) -> (i32, i32, i32, i32) {
    %c0_i32 = arith.constant 0 : i32
    %c0_i32_0 = arith.constant 0 : i32
    %c0_i32_1 = arith.constant 0 : i32
    return %arg0, %arg1, %c0_i32, %c0_i32_0 : i32, i32, i32, i32
  }
  func.func @transform_3(%arg0: i32, %arg1: i32) -> (i32, i32, i32, i32) {
    %c0_i32 = arith.constant 0 : i32
    %c0_i32_0 = arith.constant 0 : i32
    %c0_i32_1 = arith.constant 0 : i32
    return %arg0, %arg1, %c0_i32, %c0_i32_0 : i32, i32, i32, i32
  }
}

module attributes {stable_mosaic.version = 11 : i64} {
  func.func @_bnrelu_conv3x3_kernel(%arg0: i32, %arg1: i32, %arg2: memref<1x16x16x4xbf16, #tpu.memory_space<vmem>>, %arg3: memref<1x16x16x4xbf16, #tpu.memory_space<vmem>>, %arg4: memref<1x16x16x4xbf16, #tpu.memory_space<vmem>>, %arg5: memref<3x12x4xbf16, #tpu.memory_space<vmem>>, %arg6: memref<1x4xf32, #tpu.memory_space<vmem>>, %arg7: memref<1x4xf32, #tpu.memory_space<vmem>>, %arg8: memref<1x16x16x4xbf16, #tpu.memory_space<vmem>>, %arg9: memref<1x1x2x4xf32, #tpu.memory_space<vmem>>, %arg10: memref<20x20x4xbf16, #tpu.memory_space<vmem>>) attributes {dimension_semantics = [#tpu.dimension_semantics<parallel>, #tpu.dimension_semantics<parallel>], iteration_bounds = array<i64: 2, 1>, scalar_prefetch = 0 : i64, scratch_operands = 1 : i64, tpu.core_type = #tpu.core_type<tc>, window_params = [{transform_indices = @transform_0, window_bounds = array<i64: 1, 16, 16, 4>}, {transform_indices = @transform_1, window_bounds = array<i64: 1, 16, 16, 4>}, {transform_indices = @transform_2, window_bounds = array<i64: 1, 16, 16, 4>}, {pipeline_mode = #tpu.pipeline_mode<synchronous>, transform_indices = @transform_3, window_bounds = array<i64: 3, 12, 4>}, {pipeline_mode = #tpu.pipeline_mode<synchronous>, transform_indices = @transform_4, window_bounds = array<i64: 1, 4>}, {pipeline_mode = #tpu.pipeline_mode<synchronous>, transform_indices = @transform_5, window_bounds = array<i64: 1, 4>}, {transform_indices = @transform_6, window_bounds = array<i64: 1, 16, 16, 4>}, {transform_indices = @transform_7, window_bounds = array<i64: 1, 1, 2, 4>}]} {
    %c0 = arith.constant 0 : index
    %c0_0 = arith.constant 0 : index
    %0 = vector.load %arg6[%c0, %c0_0] : memref<1x4xf32, #tpu.memory_space<vmem>>, vector<1x4xf32>
    %c0_1 = arith.constant 0 : index
    %c0_2 = arith.constant 0 : index
    %1 = vector.load %arg7[%c0_1, %c0_2] : memref<1x4xf32, #tpu.memory_space<vmem>>, vector<1x4xf32>
    %cst = arith.constant 0.000000e+00 : bf16
    %2 = vector.broadcast %cst : bf16 to vector<20x2x4xbf16>
    %c0_3 = arith.constant 0 : index
    %c0_4 = arith.constant 0 : index
    %c0_5 = arith.constant 0 : index
    %3 = vector.load %arg10[%c0_3, %c0_4, %c0_5] : memref<20x20x4xbf16, #tpu.memory_space<vmem>>, vector<20x2x4xbf16>
    tpu.vector_store %arg10[%c0_3, %c0_4, %c0_5], %2 {strides = array<i32>} : memref<20x20x4xbf16, #tpu.memory_space<vmem>>, vector<20x2x4xbf16>,
    %cst_6 = arith.constant 0.000000e+00 : bf16
    %4 = vector.broadcast %cst_6 : bf16 to vector<20x2x4xbf16>
    %c0_7 = arith.constant 0 : index
    %c18 = arith.constant 18 : index
    %c0_8 = arith.constant 0 : index
    %5 = vector.load %arg10[%c0_7, %c18, %c0_8] : memref<20x20x4xbf16, #tpu.memory_space<vmem>>, vector<20x2x4xbf16>
    tpu.vector_store %arg10[%c0_7, %c18, %c0_8], %4 {strides = array<i32>} : memref<20x20x4xbf16, #tpu.memory_space<vmem>>, vector<20x2x4xbf16>,
    %c0_9 = arith.constant 0 : index
    %c0_10 = arith.constant 0 : index
    %c0_11 = arith.constant 0 : index
    %c0_12 = arith.constant 0 : index
    %6 = vector.load %arg2[%c0_9, %c0_10, %c0_11, %c0_12] : memref<1x16x16x4xbf16, #tpu.memory_space<vmem>>, vector<1x16x16x4xbf16>
    %7 = vector.shape_cast %6 : vector<1x16x16x4xbf16> to vector<16x16x4xbf16>
    %8 = arith.extf %7 : vector<16x16x4xbf16> to vector<16x16x4xf32>
    %9 = vector.shape_cast %0 : vector<1x4xf32> to vector<1x1x4xf32>
    %10 = vector.broadcast %9 : vector<1x1x4xf32> to vector<16x16x4xf32>
    %11 = arith.mulf %8, %10 : vector<16x16x4xf32>
    %12 = vector.shape_cast %1 : vector<1x4xf32> to vector<1x1x4xf32>
    %13 = vector.broadcast %12 : vector<1x1x4xf32> to vector<16x16x4xf32>
    %14 = arith.addf %11, %13 : vector<16x16x4xf32>
    %cst_13 = arith.constant 0.000000e+00 : f32
    %15 = vector.broadcast %cst_13 : f32 to vector<16x16x4xf32>
    %16 = arith.maximumf %14, %15 : vector<16x16x4xf32>
    %17 = arith.truncf %16 : vector<16x16x4xf32> to vector<16x16x4xbf16>
    %c2 = arith.constant 2 : index
    %c2_14 = arith.constant 2 : index
    %c0_15 = arith.constant 0 : index
    %18 = vector.load %arg10[%c2, %c2_14, %c0_15] : memref<20x20x4xbf16, #tpu.memory_space<vmem>>, vector<16x16x4xbf16>
    tpu.vector_store %arg10[%c2, %c2_14, %c0_15], %17 {strides = array<i32>} : memref<20x20x4xbf16, #tpu.memory_space<vmem>>, vector<16x16x4xbf16>,
    %c0_16 = arith.constant 0 : index
    %c14 = arith.constant 14 : index
    %c0_17 = arith.constant 0 : index
    %c0_18 = arith.constant 0 : index
    %19 = vector.load %arg3[%c0_16, %c14, %c0_17, %c0_18] : memref<1x16x16x4xbf16, #tpu.memory_space<vmem>>, vector<1x2x16x4xbf16>
    %20 = vector.shape_cast %19 : vector<1x2x16x4xbf16> to vector<2x16x4xbf16>
    %21 = arith.extf %20 : vector<2x16x4xbf16> to vector<2x16x4xf32>
    %22 = vector.shape_cast %0 : vector<1x4xf32> to vector<1x1x4xf32>
    %23 = vector.broadcast %22 : vector<1x1x4xf32> to vector<2x16x4xf32>
    %24 = arith.mulf %21, %23 : vector<2x16x4xf32>
    %25 = vector.shape_cast %1 : vector<1x4xf32> to vector<1x1x4xf32>
    %26 = vector.broadcast %25 : vector<1x1x4xf32> to vector<2x16x4xf32>
    %27 = arith.addf %24, %26 : vector<2x16x4xf32>
    %cst_19 = arith.constant 0.000000e+00 : f32
    %28 = vector.broadcast %cst_19 : f32 to vector<2x16x4xf32>
    %29 = arith.maximumf %27, %28 : vector<2x16x4xf32>
    %30 = arith.truncf %29 : vector<2x16x4xf32> to vector<2x16x4xbf16>
    %c0_i32 = arith.constant 0 : i32
    %31 = arith.cmpi sgt, %arg1, %c0_i32 : i32
    %cst_20 = arith.constant 0.000000e+00 : bf16
    %32 = vector.broadcast %cst_20 : bf16 to vector<2x16x4xbf16>
    %33 = arith.select %31, %30, %32 : vector<2x16x4xbf16>
    %c0_21 = arith.constant 0 : index
    %c2_22 = arith.constant 2 : index
    %c0_23 = arith.constant 0 : index
    %34 = vector.load %arg10[%c0_21, %c2_22, %c0_23] : memref<20x20x4xbf16, #tpu.memory_space<vmem>>, vector<2x16x4xbf16>
    tpu.vector_store %arg10[%c0_21, %c2_22, %c0_23], %33 {strides = array<i32>} : memref<20x20x4xbf16, #tpu.memory_space<vmem>>, vector<2x16x4xbf16>,
    %c0_24 = arith.constant 0 : index
    %c0_25 = arith.constant 0 : index
    %c0_26 = arith.constant 0 : index
    %c0_27 = arith.constant 0 : index
    %35 = vector.load %arg4[%c0_24, %c0_25, %c0_26, %c0_27] : memref<1x16x16x4xbf16, #tpu.memory_space<vmem>>, vector<1x2x16x4xbf16>
    %36 = vector.shape_cast %35 : vector<1x2x16x4xbf16> to vector<2x16x4xbf16>
    %37 = arith.extf %36 : vector<2x16x4xbf16> to vector<2x16x4xf32>
    %38 = vector.shape_cast %0 : vector<1x4xf32> to vector<1x1x4xf32>
    %39 = vector.broadcast %38 : vector<1x1x4xf32> to vector<2x16x4xf32>
    %40 = arith.mulf %37, %39 : vector<2x16x4xf32>
    %41 = vector.shape_cast %1 : vector<1x4xf32> to vector<1x1x4xf32>
    %42 = vector.broadcast %41 : vector<1x1x4xf32> to vector<2x16x4xf32>
    %43 = arith.addf %40, %42 : vector<2x16x4xf32>
    %cst_28 = arith.constant 0.000000e+00 : f32
    %44 = vector.broadcast %cst_28 : f32 to vector<2x16x4xf32>
    %45 = arith.maximumf %43, %44 : vector<2x16x4xf32>
    %46 = arith.truncf %45 : vector<2x16x4xf32> to vector<2x16x4xbf16>
    %c0_i32_29 = arith.constant 0 : i32
    %47 = arith.cmpi slt, %arg1, %c0_i32_29 : i32
    %cst_30 = arith.constant 0.000000e+00 : bf16
    %48 = vector.broadcast %cst_30 : bf16 to vector<2x16x4xbf16>
    %49 = arith.select %47, %46, %48 : vector<2x16x4xbf16>
    %c18_31 = arith.constant 18 : index
    %c2_32 = arith.constant 2 : index
    %c0_33 = arith.constant 0 : index
    %50 = vector.load %arg10[%c18_31, %c2_32, %c0_33] : memref<20x20x4xbf16, #tpu.memory_space<vmem>>, vector<2x16x4xbf16>
    tpu.vector_store %arg10[%c18_31, %c2_32, %c0_33], %49 {strides = array<i32>} : memref<20x20x4xbf16, #tpu.memory_space<vmem>>, vector<2x16x4xbf16>,
    %cst_34 = arith.constant 0.000000e+00 : f32
    %51 = vector.broadcast %cst_34 : f32 to vector<256x4xf32>
    %c0_35 = arith.constant 0 : index
    %c0_36 = arith.constant 0 : index
    %c0_37 = arith.constant 0 : index
    %52 = vector.load %arg10[%c0_35, %c0_36, %c0_37] : memref<20x20x4xbf16, #tpu.memory_space<vmem>>, vector<16x20x4xbf16>
    %53 = vector.extract_strided_slice %52 {offsets = [0, 0, 0], sizes = [16, 16, 4], strides = [1, 1, 1]} : vector<16x20x4xbf16> to vector<16x16x4xbf16>
    %54 = vector.extract_strided_slice %52 {offsets = [0, 2, 0], sizes = [16, 16, 4], strides = [1, 1, 1]} : vector<16x20x4xbf16> to vector<16x16x4xbf16>
    %55 = vector.extract_strided_slice %52 {offsets = [0, 4, 0], sizes = [16, 16, 4], strides = [1, 1, 1]} : vector<16x20x4xbf16> to vector<16x16x4xbf16>
    %56 = tpu.concatenate %53, %54, %55 in 2 : vector<16x16x4xbf16>, vector<16x16x4xbf16>, vector<16x16x4xbf16> -> vector<16x16x12xbf16>
    %57 = vector.shape_cast %56 : vector<16x16x12xbf16> to vector<256x12xbf16>
    %c0_38 = arith.constant 0 : index
    %c0_39 = arith.constant 0 : index
    %c0_40 = arith.constant 0 : index
    %58 = vector.load %arg5[%c0_38, %c0_39, %c0_40] : memref<3x12x4xbf16, #tpu.memory_space<vmem>>, vector<1x12x4xbf16>
    %59 = vector.shape_cast %58 : vector<1x12x4xbf16> to vector<12x4xbf16>
    %cst_41 = arith.constant dense<0.000000e+00> : vector<256x4xf32>
    %60 = tpu.matmul %57, %59, %cst_41 {dimension_numbers = #tpu.dot_dimension_numbers<[1], [0], [0], [1], [0, 0, 1, 1], [], []>} : vector<256x12xbf16>, vector<12x4xbf16>, vector<256x4xf32> -> vector<256x4xf32>
    %61 = arith.addf %51, %60 : vector<256x4xf32>
    %c2_42 = arith.constant 2 : index
    %c0_43 = arith.constant 0 : index
    %c0_44 = arith.constant 0 : index
    %62 = vector.load %arg10[%c2_42, %c0_43, %c0_44] : memref<20x20x4xbf16, #tpu.memory_space<vmem>>, vector<16x20x4xbf16>
    %63 = vector.extract_strided_slice %62 {offsets = [0, 0, 0], sizes = [16, 16, 4], strides = [1, 1, 1]} : vector<16x20x4xbf16> to vector<16x16x4xbf16>
    %64 = vector.extract_strided_slice %62 {offsets = [0, 2, 0], sizes = [16, 16, 4], strides = [1, 1, 1]} : vector<16x20x4xbf16> to vector<16x16x4xbf16>
    %65 = vector.extract_strided_slice %62 {offsets = [0, 4, 0], sizes = [16, 16, 4], strides = [1, 1, 1]} : vector<16x20x4xbf16> to vector<16x16x4xbf16>
    %66 = tpu.concatenate %63, %64, %65 in 2 : vector<16x16x4xbf16>, vector<16x16x4xbf16>, vector<16x16x4xbf16> -> vector<16x16x12xbf16>
    %67 = vector.shape_cast %66 : vector<16x16x12xbf16> to vector<256x12xbf16>
    %c1 = arith.constant 1 : index
    %c0_45 = arith.constant 0 : index
    %c0_46 = arith.constant 0 : index
    %68 = vector.load %arg5[%c1, %c0_45, %c0_46] : memref<3x12x4xbf16, #tpu.memory_space<vmem>>, vector<1x12x4xbf16>
    %69 = vector.shape_cast %68 : vector<1x12x4xbf16> to vector<12x4xbf16>
    %cst_47 = arith.constant dense<0.000000e+00> : vector<256x4xf32>
    %70 = tpu.matmul %67, %69, %cst_47 {dimension_numbers = #tpu.dot_dimension_numbers<[1], [0], [0], [1], [0, 0, 1, 1], [], []>} : vector<256x12xbf16>, vector<12x4xbf16>, vector<256x4xf32> -> vector<256x4xf32>
    %71 = arith.addf %61, %70 : vector<256x4xf32>
    %c4 = arith.constant 4 : index
    %c0_48 = arith.constant 0 : index
    %c0_49 = arith.constant 0 : index
    %72 = vector.load %arg10[%c4, %c0_48, %c0_49] : memref<20x20x4xbf16, #tpu.memory_space<vmem>>, vector<16x20x4xbf16>
    %73 = vector.extract_strided_slice %72 {offsets = [0, 0, 0], sizes = [16, 16, 4], strides = [1, 1, 1]} : vector<16x20x4xbf16> to vector<16x16x4xbf16>
    %74 = vector.extract_strided_slice %72 {offsets = [0, 2, 0], sizes = [16, 16, 4], strides = [1, 1, 1]} : vector<16x20x4xbf16> to vector<16x16x4xbf16>
    %75 = vector.extract_strided_slice %72 {offsets = [0, 4, 0], sizes = [16, 16, 4], strides = [1, 1, 1]} : vector<16x20x4xbf16> to vector<16x16x4xbf16>
    %76 = tpu.concatenate %73, %74, %75 in 2 : vector<16x16x4xbf16>, vector<16x16x4xbf16>, vector<16x16x4xbf16> -> vector<16x16x12xbf16>
    %77 = vector.shape_cast %76 : vector<16x16x12xbf16> to vector<256x12xbf16>
    %c2_50 = arith.constant 2 : index
    %c0_51 = arith.constant 0 : index
    %c0_52 = arith.constant 0 : index
    %78 = vector.load %arg5[%c2_50, %c0_51, %c0_52] : memref<3x12x4xbf16, #tpu.memory_space<vmem>>, vector<1x12x4xbf16>
    %79 = vector.shape_cast %78 : vector<1x12x4xbf16> to vector<12x4xbf16>
    %cst_53 = arith.constant dense<0.000000e+00> : vector<256x4xf32>
    %80 = tpu.matmul %77, %79, %cst_53 {dimension_numbers = #tpu.dot_dimension_numbers<[1], [0], [0], [1], [0, 0, 1, 1], [], []>} : vector<256x12xbf16>, vector<12x4xbf16>, vector<256x4xf32> -> vector<256x4xf32>
    %81 = arith.addf %71, %80 : vector<256x4xf32>
    %cst_54 = arith.constant dense<0.000000e+00> : vector<4xf32>
    %82 = vector.multi_reduction <add>, %81, %cst_54 [0] : vector<256x4xf32> to vector<4xf32>
    %83 = vector.shape_cast %82 : vector<4xf32> to vector<1x4xf32>
    %cst_55 = arith.constant 3.906250e-03 : f32
    %84 = vector.broadcast %cst_55 : f32 to vector<1x4xf32>
    %85 = arith.mulf %83, %84 : vector<1x4xf32>
    %86 = vector.broadcast %85 : vector<1x4xf32> to vector<256x4xf32>
    %87 = arith.subf %81, %86 : vector<256x4xf32>
    %c0_56 = arith.constant 0 : index
    %c0_57 = arith.constant 0 : index
    %c0_58 = arith.constant 0 : index
    %c0_59 = arith.constant 0 : index
    %88 = vector.load %arg9[%c0_56, %c0_57, %c0_58, %c0_59] : memref<1x1x2x4xf32, #tpu.memory_space<vmem>>, vector<1x1x1x4xf32>
    %89 = vector.shape_cast %88 : vector<1x1x1x4xf32> to vector<1x4xf32>
    %90 = vector.shape_cast %83 : vector<1x4xf32> to vector<1x1x1x4xf32>
    tpu.vector_store %arg9[%c0_56, %c0_57, %c0_58, %c0_59], %90 {strides = array<i32>} : memref<1x1x2x4xf32, #tpu.memory_space<vmem>>, vector<1x1x1x4xf32>,
    %91 = arith.mulf %87, %87 : vector<256x4xf32>
    %cst_60 = arith.constant dense<0.000000e+00> : vector<4xf32>
    %92 = vector.multi_reduction <add>, %91, %cst_60 [0] : vector<256x4xf32> to vector<4xf32>
    %93 = vector.shape_cast %92 : vector<4xf32> to vector<1x4xf32>
    %c0_61 = arith.constant 0 : index
    %c0_62 = arith.constant 0 : index
    %c1_63 = arith.constant 1 : index
    %c0_64 = arith.constant 0 : index
    %94 = vector.load %arg9[%c0_61, %c0_62, %c1_63, %c0_64] : memref<1x1x2x4xf32, #tpu.memory_space<vmem>>, vector<1x1x1x4xf32>
    %95 = vector.shape_cast %94 : vector<1x1x1x4xf32> to vector<1x4xf32>
    %96 = vector.shape_cast %93 : vector<1x4xf32> to vector<1x1x1x4xf32>
    tpu.vector_store %arg9[%c0_61, %c0_62, %c1_63, %c0_64], %96 {strides = array<i32>} : memref<1x1x2x4xf32, #tpu.memory_space<vmem>>, vector<1x1x1x4xf32>,
    %97 = arith.truncf %81 : vector<256x4xf32> to vector<256x4xbf16>
    %98 = vector.shape_cast %97 : vector<256x4xbf16> to vector<16x16x4xbf16>
    %c0_65 = arith.constant 0 : index
    %c0_66 = arith.constant 0 : index
    %c0_67 = arith.constant 0 : index
    %c0_68 = arith.constant 0 : index
    %99 = vector.load %arg8[%c0_65, %c0_66, %c0_67, %c0_68] : memref<1x16x16x4xbf16, #tpu.memory_space<vmem>>, vector<1x16x16x4xbf16>
    %100 = vector.shape_cast %99 : vector<1x16x16x4xbf16> to vector<16x16x4xbf16>
    %101 = vector.shape_cast %98 : vector<16x16x4xbf16> to vector<1x16x16x4xbf16>
    tpu.vector_store %arg8[%c0_65, %c0_66, %c0_67, %c0_68], %101 {strides = array<i32>} : memref<1x16x16x4xbf16, #tpu.memory_space<vmem>>, vector<1x16x16x4xbf16>,
    return
  }
  func.func @transform_0(%arg0: i32, %arg1: i32) -> (i32, i32, i32, i32) {
    %c0_i32 = arith.constant 0 : i32
    %c0_i32_0 = arith.constant 0 : i32
    %c0_i32_1 = arith.constant 0 : i32
    return %arg0, %arg1, %c0_i32, %c0_i32_0 : i32, i32, i32, i32
  }
  func.func @transform_1(%arg0: i32, %arg1: i32) -> (i32, i32, i32, i32) {
    %c1_i32 = arith.constant 1 : i32
    %0 = arith.subi %arg1, %c1_i32 : i32
    %c0_i32 = arith.constant 0 : i32
    %1 = arith.maxsi %0, %c0_i32 : i32
    %c0_i32_0 = arith.constant 0 : i32
    %c0_i32_1 = arith.constant 0 : i32
    %c0_i32_2 = arith.constant 0 : i32
    return %arg0, %1, %c0_i32_0, %c0_i32_1 : i32, i32, i32, i32
  }
  func.func @transform_2(%arg0: i32, %arg1: i32) -> (i32, i32, i32, i32) {
    %c1_i32 = arith.constant 1 : i32
    %0 = arith.addi %arg1, %c1_i32 : i32
    %c0_i32 = arith.constant 0 : i32
    %1 = arith.minsi %0, %c0_i32 : i32
    %c0_i32_0 = arith.constant 0 : i32
    %c0_i32_1 = arith.constant 0 : i32
    %c0_i32_2 = arith.constant 0 : i32
    return %arg0, %1, %c0_i32_0, %c0_i32_1 : i32, i32, i32, i32
  }
  func.func @transform_3(%arg0: i32, %arg1: i32) -> (i32, i32, i32) {
    %c0_i32 = arith.constant 0 : i32
    %c0_i32_0 = arith.constant 0 : i32
    %c0_i32_1 = arith.constant 0 : i32
    %c0_i32_2 = arith.constant 0 : i32
    return %c0_i32, %c0_i32_0, %c0_i32_1 : i32, i32, i32
  }
  func.func @transform_4(%arg0: i32, %arg1: i32) -> (i32, i32) {
    %c0_i32 = arith.constant 0 : i32
    %c0_i32_0 = arith.constant 0 : i32
    %c0_i32_1 = arith.constant 0 : i32
    return %c0_i32, %c0_i32_0 : i32, i32
  }
  func.func @transform_5(%arg0: i32, %arg1: i32) -> (i32, i32) {
    %c0_i32 = arith.constant 0 : i32
    %c0_i32_0 = arith.constant 0 : i32
    %c0_i32_1 = arith.constant 0 : i32
    return %c0_i32, %c0_i32_0 : i32, i32
  }
  func.func @transform_6(%arg0: i32, %arg1: i32) -> (i32, i32, i32, i32) {
    %c0_i32 = arith.constant 0 : i32
    %c0_i32_0 = arith.constant 0 : i32
    %c0_i32_1 = arith.constant 0 : i32
    return %arg0, %arg1, %c0_i32, %c0_i32_0 : i32, i32, i32, i32
  }
  func.func @transform_7(%arg0: i32, %arg1: i32) -> (i32, i32, i32, i32) {
    %c0_i32 = arith.constant 0 : i32
    %c0_i32_0 = arith.constant 0 : i32
    %c0_i32_1 = arith.constant 0 : i32
    return %arg0, %arg1, %c0_i32, %c0_i32_0 : i32, i32, i32, i32
  }
}

module attributes {stable_mosaic.version = 11 : i64} {
  func.func @_bn_residual_kernel(%arg0: i32, %arg1: i32, %arg2: memref<1x16x16x16xbf16, #tpu.memory_space<vmem>>, %arg3: memref<1x16x16x16xbf16, #tpu.memory_space<vmem>>, %arg4: memref<1x16xf32, #tpu.memory_space<vmem>>, %arg5: memref<1x16xf32, #tpu.memory_space<vmem>>, %arg6: memref<1x16x16x16xbf16, #tpu.memory_space<vmem>>) attributes {dimension_semantics = [#tpu.dimension_semantics<parallel>, #tpu.dimension_semantics<parallel>], iteration_bounds = array<i64: 2, 1>, scalar_prefetch = 0 : i64, scratch_operands = 0 : i64, tpu.core_type = #tpu.core_type<tc>, window_params = [{transform_indices = @transform_0, window_bounds = array<i64: 1, 16, 16, 16>}, {transform_indices = @transform_1, window_bounds = array<i64: 1, 16, 16, 16>}, {pipeline_mode = #tpu.pipeline_mode<synchronous>, transform_indices = @transform_2, window_bounds = array<i64: 1, 16>}, {pipeline_mode = #tpu.pipeline_mode<synchronous>, transform_indices = @transform_3, window_bounds = array<i64: 1, 16>}, {transform_indices = @transform_4, window_bounds = array<i64: 1, 16, 16, 16>}]} {
    %c0 = arith.constant 0 : index
    %c0_0 = arith.constant 0 : index
    %c0_1 = arith.constant 0 : index
    %c0_2 = arith.constant 0 : index
    %0 = vector.load %arg2[%c0, %c0_0, %c0_1, %c0_2] : memref<1x16x16x16xbf16, #tpu.memory_space<vmem>>, vector<1x16x16x16xbf16>
    %1 = vector.shape_cast %0 : vector<1x16x16x16xbf16> to vector<16x16x16xbf16>
    %2 = arith.extf %1 : vector<16x16x16xbf16> to vector<16x16x16xf32>
    %c0_3 = arith.constant 0 : index
    %c0_4 = arith.constant 0 : index
    %3 = vector.load %arg4[%c0_3, %c0_4] : memref<1x16xf32, #tpu.memory_space<vmem>>, vector<1x16xf32>
    %4 = vector.shape_cast %3 : vector<1x16xf32> to vector<1x1x16xf32>
    %5 = vector.broadcast %4 : vector<1x1x16xf32> to vector<16x16x16xf32>
    %6 = arith.mulf %2, %5 : vector<16x16x16xf32>
    %c0_5 = arith.constant 0 : index
    %c0_6 = arith.constant 0 : index
    %7 = vector.load %arg5[%c0_5, %c0_6] : memref<1x16xf32, #tpu.memory_space<vmem>>, vector<1x16xf32>
    %8 = vector.shape_cast %7 : vector<1x16xf32> to vector<1x1x16xf32>
    %9 = vector.broadcast %8 : vector<1x1x16xf32> to vector<16x16x16xf32>
    %10 = arith.addf %6, %9 : vector<16x16x16xf32>
    %c0_7 = arith.constant 0 : index
    %c0_8 = arith.constant 0 : index
    %c0_9 = arith.constant 0 : index
    %c0_10 = arith.constant 0 : index
    %11 = vector.load %arg3[%c0_7, %c0_8, %c0_9, %c0_10] : memref<1x16x16x16xbf16, #tpu.memory_space<vmem>>, vector<1x16x16x16xbf16>
    %12 = vector.shape_cast %11 : vector<1x16x16x16xbf16> to vector<16x16x16xbf16>
    %13 = arith.extf %12 : vector<16x16x16xbf16> to vector<16x16x16xf32>
    %14 = arith.addf %10, %13 : vector<16x16x16xf32>
    %cst = arith.constant 0.000000e+00 : f32
    %15 = vector.broadcast %cst : f32 to vector<16x16x16xf32>
    %16 = arith.maximumf %14, %15 : vector<16x16x16xf32>
    %17 = arith.truncf %16 : vector<16x16x16xf32> to vector<16x16x16xbf16>
    %c0_11 = arith.constant 0 : index
    %c0_12 = arith.constant 0 : index
    %c0_13 = arith.constant 0 : index
    %c0_14 = arith.constant 0 : index
    %18 = vector.load %arg6[%c0_11, %c0_12, %c0_13, %c0_14] : memref<1x16x16x16xbf16, #tpu.memory_space<vmem>>, vector<1x16x16x16xbf16>
    %19 = vector.shape_cast %18 : vector<1x16x16x16xbf16> to vector<16x16x16xbf16>
    %20 = vector.shape_cast %17 : vector<16x16x16xbf16> to vector<1x16x16x16xbf16>
    tpu.vector_store %arg6[%c0_11, %c0_12, %c0_13, %c0_14], %20 {strides = array<i32>} : memref<1x16x16x16xbf16, #tpu.memory_space<vmem>>, vector<1x16x16x16xbf16>,
    return
  }
  func.func @transform_0(%arg0: i32, %arg1: i32) -> (i32, i32, i32, i32) {
    %c0_i32 = arith.constant 0 : i32
    %c0_i32_0 = arith.constant 0 : i32
    %c0_i32_1 = arith.constant 0 : i32
    return %arg0, %arg1, %c0_i32, %c0_i32_0 : i32, i32, i32, i32
  }
  func.func @transform_1(%arg0: i32, %arg1: i32) -> (i32, i32, i32, i32) {
    %c0_i32 = arith.constant 0 : i32
    %c0_i32_0 = arith.constant 0 : i32
    %c0_i32_1 = arith.constant 0 : i32
    return %arg0, %arg1, %c0_i32, %c0_i32_0 : i32, i32, i32, i32
  }
  func.func @transform_2(%arg0: i32, %arg1: i32) -> (i32, i32) {
    %c0_i32 = arith.constant 0 : i32
    %c0_i32_0 = arith.constant 0 : i32
    %c0_i32_1 = arith.constant 0 : i32
    return %c0_i32, %c0_i32_0 : i32, i32
  }
  func.func @transform_3(%arg0: i32, %arg1: i32) -> (i32, i32) {
    %c0_i32 = arith.constant 0 : i32
    %c0_i32_0 = arith.constant 0 : i32
    %c0_i32_1 = arith.constant 0 : i32
    return %c0_i32, %c0_i32_0 : i32, i32
  }
  func.func @transform_4(%arg0: i32, %arg1: i32) -> (i32, i32, i32, i32) {
    %c0_i32 = arith.constant 0 : i32
    %c0_i32_0 = arith.constant 0 : i32
    %c0_i32_1 = arith.constant 0 : i32
    return %arg0, %arg1, %c0_i32, %c0_i32_0 : i32, i32, i32, i32
  }
}

module attributes {stable_mosaic.version = 11 : i64} {
  func.func @_bnrelu_conv1x1_kernel(%arg0: i32, %arg1: i32, %arg2: memref<1x16x16x4xbf16, #tpu.memory_space<vmem>>, %arg3: memref<4x16xbf16, #tpu.memory_space<vmem>>, %arg4: memref<1x4xf32, #tpu.memory_space<vmem>>, %arg5: memref<1x4xf32, #tpu.memory_space<vmem>>, %arg6: memref<1x16x16x16xbf16, #tpu.memory_space<vmem>>, %arg7: memref<1x1x2x16xf32, #tpu.memory_space<vmem>>) attributes {dimension_semantics = [#tpu.dimension_semantics<parallel>, #tpu.dimension_semantics<parallel>], iteration_bounds = array<i64: 2, 1>, scalar_prefetch = 0 : i64, scratch_operands = 0 : i64, tpu.core_type = #tpu.core_type<tc>, window_params = [{transform_indices = @transform_0, window_bounds = array<i64: 1, 16, 16, 4>}, {pipeline_mode = #tpu.pipeline_mode<synchronous>, transform_indices = @transform_1, window_bounds = array<i64: 4, 16>}, {pipeline_mode = #tpu.pipeline_mode<synchronous>, transform_indices = @transform_2, window_bounds = array<i64: 1, 4>}, {pipeline_mode = #tpu.pipeline_mode<synchronous>, transform_indices = @transform_3, window_bounds = array<i64: 1, 4>}, {transform_indices = @transform_4, window_bounds = array<i64: 1, 16, 16, 16>}, {transform_indices = @transform_5, window_bounds = array<i64: 1, 1, 2, 16>}]} {
    %c0 = arith.constant 0 : index
    %c0_0 = arith.constant 0 : index
    %c0_1 = arith.constant 0 : index
    %c0_2 = arith.constant 0 : index
    %0 = vector.load %arg2[%c0, %c0_0, %c0_1, %c0_2] : memref<1x16x16x4xbf16, #tpu.memory_space<vmem>>, vector<1x16x16x4xbf16>
    %1 = vector.shape_cast %0 : vector<1x16x16x4xbf16> to vector<16x16x4xbf16>
    %2 = arith.extf %1 : vector<16x16x4xbf16> to vector<16x16x4xf32>
    %c0_3 = arith.constant 0 : index
    %c0_4 = arith.constant 0 : index
    %3 = vector.load %arg4[%c0_3, %c0_4] : memref<1x4xf32, #tpu.memory_space<vmem>>, vector<1x4xf32>
    %4 = vector.shape_cast %3 : vector<1x4xf32> to vector<1x1x4xf32>
    %5 = vector.broadcast %4 : vector<1x1x4xf32> to vector<16x16x4xf32>
    %6 = arith.mulf %2, %5 : vector<16x16x4xf32>
    %c0_5 = arith.constant 0 : index
    %c0_6 = arith.constant 0 : index
    %7 = vector.load %arg5[%c0_5, %c0_6] : memref<1x4xf32, #tpu.memory_space<vmem>>, vector<1x4xf32>
    %8 = vector.shape_cast %7 : vector<1x4xf32> to vector<1x1x4xf32>
    %9 = vector.broadcast %8 : vector<1x1x4xf32> to vector<16x16x4xf32>
    %10 = arith.addf %6, %9 : vector<16x16x4xf32>
    %cst = arith.constant 0.000000e+00 : f32
    %11 = vector.broadcast %cst : f32 to vector<16x16x4xf32>
    %12 = arith.maximumf %10, %11 : vector<16x16x4xf32>
    %13 = arith.truncf %12 : vector<16x16x4xf32> to vector<16x16x4xbf16>
    %14 = vector.shape_cast %13 : vector<16x16x4xbf16> to vector<256x4xbf16>
    %c0_7 = arith.constant 0 : index
    %c0_8 = arith.constant 0 : index
    %15 = vector.load %arg3[%c0_7, %c0_8] : memref<4x16xbf16, #tpu.memory_space<vmem>>, vector<4x16xbf16>
    %cst_9 = arith.constant dense<0.000000e+00> : vector<256x16xf32>
    %16 = tpu.matmul %14, %15, %cst_9 {dimension_numbers = #tpu.dot_dimension_numbers<[1], [0], [0], [1], [0, 0, 1, 1], [], []>} : vector<256x4xbf16>, vector<4x16xbf16>, vector<256x16xf32> -> vector<256x16xf32>
    %cst_10 = arith.constant dense<0.000000e+00> : vector<16xf32>
    %17 = vector.multi_reduction <add>, %16, %cst_10 [0] : vector<256x16xf32> to vector<16xf32>
    %18 = vector.shape_cast %17 : vector<16xf32> to vector<1x16xf32>
    %cst_11 = arith.constant 3.906250e-03 : f32
    %19 = vector.broadcast %cst_11 : f32 to vector<1x16xf32>
    %20 = arith.mulf %18, %19 : vector<1x16xf32>
    %21 = vector.broadcast %20 : vector<1x16xf32> to vector<256x16xf32>
    %22 = arith.subf %16, %21 : vector<256x16xf32>
    %c0_12 = arith.constant 0 : index
    %c0_13 = arith.constant 0 : index
    %c0_14 = arith.constant 0 : index
    %c0_15 = arith.constant 0 : index
    %23 = vector.load %arg7[%c0_12, %c0_13, %c0_14, %c0_15] : memref<1x1x2x16xf32, #tpu.memory_space<vmem>>, vector<1x1x1x16xf32>
    %24 = vector.shape_cast %23 : vector<1x1x1x16xf32> to vector<1x16xf32>
    %25 = vector.shape_cast %18 : vector<1x16xf32> to vector<1x1x1x16xf32>
    tpu.vector_store %arg7[%c0_12, %c0_13, %c0_14, %c0_15], %25 {strides = array<i32>} : memref<1x1x2x16xf32, #tpu.memory_space<vmem>>, vector<1x1x1x16xf32>,
    %26 = arith.mulf %22, %22 : vector<256x16xf32>
    %cst_16 = arith.constant dense<0.000000e+00> : vector<16xf32>
    %27 = vector.multi_reduction <add>, %26, %cst_16 [0] : vector<256x16xf32> to vector<16xf32>
    %28 = vector.shape_cast %27 : vector<16xf32> to vector<1x16xf32>
    %c0_17 = arith.constant 0 : index
    %c0_18 = arith.constant 0 : index
    %c1 = arith.constant 1 : index
    %c0_19 = arith.constant 0 : index
    %29 = vector.load %arg7[%c0_17, %c0_18, %c1, %c0_19] : memref<1x1x2x16xf32, #tpu.memory_space<vmem>>, vector<1x1x1x16xf32>
    %30 = vector.shape_cast %29 : vector<1x1x1x16xf32> to vector<1x16xf32>
    %31 = vector.shape_cast %28 : vector<1x16xf32> to vector<1x1x1x16xf32>
    tpu.vector_store %arg7[%c0_17, %c0_18, %c1, %c0_19], %31 {strides = array<i32>} : memref<1x1x2x16xf32, #tpu.memory_space<vmem>>, vector<1x1x1x16xf32>,
    %32 = arith.truncf %16 : vector<256x16xf32> to vector<256x16xbf16>
    %33 = vector.shape_cast %32 : vector<256x16xbf16> to vector<16x16x16xbf16>
    %c0_20 = arith.constant 0 : index
    %c0_21 = arith.constant 0 : index
    %c0_22 = arith.constant 0 : index
    %c0_23 = arith.constant 0 : index
    %34 = vector.load %arg6[%c0_20, %c0_21, %c0_22, %c0_23] : memref<1x16x16x16xbf16, #tpu.memory_space<vmem>>, vector<1x16x16x16xbf16>
    %35 = vector.shape_cast %34 : vector<1x16x16x16xbf16> to vector<16x16x16xbf16>
    %36 = vector.shape_cast %33 : vector<16x16x16xbf16> to vector<1x16x16x16xbf16>
    tpu.vector_store %arg6[%c0_20, %c0_21, %c0_22, %c0_23], %36 {strides = array<i32>} : memref<1x16x16x16xbf16, #tpu.memory_space<vmem>>, vector<1x16x16x16xbf16>,
    return
  }
  func.func @transform_0(%arg0: i32, %arg1: i32) -> (i32, i32, i32, i32) {
    %c0_i32 = arith.constant 0 : i32
    %c0_i32_0 = arith.constant 0 : i32
    %c0_i32_1 = arith.constant 0 : i32
    return %arg0, %arg1, %c0_i32, %c0_i32_0 : i32, i32, i32, i32
  }
  func.func @transform_1(%arg0: i32, %arg1: i32) -> (i32, i32) {
    %c0_i32 = arith.constant 0 : i32
    %c0_i32_0 = arith.constant 0 : i32
    %c0_i32_1 = arith.constant 0 : i32
    return %c0_i32, %c0_i32_0 : i32, i32
  }
  func.func @transform_2(%arg0: i32, %arg1: i32) -> (i32, i32) {
    %c0_i32 = arith.constant 0 : i32
    %c0_i32_0 = arith.constant 0 : i32
    %c0_i32_1 = arith.constant 0 : i32
    return %c0_i32, %c0_i32_0 : i32, i32
  }
  func.func @transform_3(%arg0: i32, %arg1: i32) -> (i32, i32) {
    %c0_i32 = arith.constant 0 : i32
    %c0_i32_0 = arith.constant 0 : i32
    %c0_i32_1 = arith.constant 0 : i32
    return %c0_i32, %c0_i32_0 : i32, i32
  }
  func.func @transform_4(%arg0: i32, %arg1: i32) -> (i32, i32, i32, i32) {
    %c0_i32 = arith.constant 0 : i32
    %c0_i32_0 = arith.constant 0 : i32
    %c0_i32_1 = arith.constant 0 : i32
    return %arg0, %arg1, %c0_i32, %c0_i32_0 : i32, i32, i32, i32
  }
  func.func @transform_5(%arg0: i32, %arg1: i32) -> (i32, i32, i32, i32) {
    %c0_i32 = arith.constant 0 : i32
    %c0_i32_0 = arith.constant 0 : i32
    %c0_i32_1 = arith.constant 0 : i32
    return %arg0, %arg1, %c0_i32, %c0_i32_0 : i32, i32, i32, i32
  }
}

</mosaic_0001>

<bundles_post_ra>
// kernel: bottleneck_pallas.4
= control target key start
LH: loop header
LB: loop body
LE: loop exit
PB: predicated region body
PF: predicated region fallthrough
CT: control target
= control target key end

     0   :  { %s1319_s12 = smov 0   ;;  %s1321_s13 = smov 0   ;;  %s1784_s0 = inlined_call_operand.vmem [shape: bf16[2,16,16,16], index: 0, kind: input, shape index: {}]   ;;  %s1785_s1 = inlined_call_operand.vmem [shape: bf16[16,4], index: 1, kind: input, shape index: {}]   ;;  %s1786_s2 = inlined_call_operand.vmem [shape: bf16[2,16,16,4], index: 2, kind: output, shape index: {0}]   ;;  %s1787_s3 = inlined_call_operand.vmem [shape: f32[2,1,2,4], index: 3, kind: output, shape index: {1}]  }
   0x1   :  { %s1323_s14 = smov 0  }
   0x2 LB: > { %s26_s15 = sadd.s32 1, %s1293_s13  ;;  %p1074_p0 = scmp.ge.s32.totalorder %s1297_s14, 1  ;;  %s1297_s14 = sphi %s1323_s14, %s14_s14   ;;  %s1293_s13 = sphi %s1321_s13, %s1789_s13   ;;  %s1289_s12 = sphi %s1319_s12, %s1788_s12  }
   0x3   : > { %p28_p1 = scmp.ge.s32.totalorder %s26_s15, 2  ;;  %p164_p2 = scmp.lt.s32.totalorder %s1297_s14, 3 }
   0x5   : > { %s1791_s15 = smov (%p28_p1, %s26_s15), 0  ;;  %p165_p3 = pnand %p1074_p0, %p164_p2 }
   0x6   : > { %v1258_v0 = vld [vmem:[%s1785_s1] sm:$0xff] (!%p165_p3)   ;;  %p206_p4 = scmp.lt.s32.totalorder (!%p165_p3), %s1289_s12, 1  ;;  %vm355_vm0 = vcmask (!%p165_p3), 130048   ;;  %vm900_vm1 = vcmask (!%p165_p3), 27648   ;;  %vm565_vm2 = vcmask (!%p165_p3), 31744   ;;  %vm668_vm3 = vcmask (!%p165_p3), 24576  }
   0x7   : > { %168 = sbr.rel (%p165_p3) target bundleno = 397 (0x18d), region = 28  ;;  %1198 = vmatprep.subr.bf16.mxu0 (!%p165_p3), %v1258_v0  ;;  %1232 = vmatprep.subr.bf16.mxu1 (!%p165_p3), %v1258_v0 }
   0x8   : > { %1199 = vmatpush3.bf16.msra.mxu0 (!%p165_p3), %v1258_v0  ;;  %1233 = vmatpush3.bf16.msra.mxu1 (!%p165_p3), %v1258_v0 }
   0xe   : > { %s1793_s12 = smov (!%p206_p4, %s1289_s12), 1 }
   0xf   : > { %s1147_s18 = sshll.u32 %s1793_s12, 7  ;;  %s1079_s25 = sshll.u32 %s1793_s12, 1 }
  0x10   : > { %s1348_s21 = scalar_lea.vmem %s1784_s0, %s1147_s18  ;;  %s1387_s24 = scalar_lea.vmem %s1786_s2, %s1147_s18 }
  0x11   : > { %v1259_v1 = vld [vmem:[%s1348_s21] sm:$0xff]   ;;  %v1260_v2 = vld [vmem:[%s1348_s21 + $0x8] sm:$0xff]   ;;  %v1261_v3 = vld [vmem:[%s1348_s21 + $0x10] sm:$0xff]   ;;  %s1649_s28 = scalar_lea.vmem %s1787_s3, %s1079_s25 }
  0x12   : > { %1200 = vmatprep.mubr.msk.bf16.mxu0 %vm355_vm0, %v1259_v1  ;;  %v1262_v4 = vld [vmem:[%s1348_s21 + $0x18] sm:$0xff]   ;;  %v1263_v5 = vld [vmem:[%s1348_s21 + $0x20] sm:$0xff]   ;;  %v1268_v7 = vld [vmem:[%s1348_s21 + $0x48] sm:$0xff]  }
  0x13   : > { %1201 = vmatmul.mubr.msk.bf16.vlgmr.msra.gmra.mrb[0].mxu0 %vm355_vm0, %v1260_v2  ;;  %v1267_v6 = vld [vmem:[%s1348_s21 + $0x40] sm:$0xff]   ;;  %v1269_v8 = vld [vmem:[%s1348_s21 + $0x50] sm:$0xff]   ;;  %v1264_v9 = vld [vmem:[%s1348_s21 + $0x28] sm:$0xff]  }
  0x14   : > { %1204 = vmatprep.mubr.msk.bf16.mxu0 %vm355_vm0, %v1261_v3  ;;  %1216 = vmatprep.mubr.msk.bf16.mxu1 %vm355_vm0, %v1267_v6  ;;  %v1270_v10 = vld [vmem:[%s1348_s21 + $0x58] sm:$0xff]   ;;  %v1265_v11 = vld [vmem:[%s1348_s21 + $0x30] sm:$0xff]   ;;  %v1271_v12 = vld [vmem:[%s1348_s21 + $0x60] sm:$0xff]  }
  0x15   : > { %1217 = vmatmul.mubr.msk.bf16.vlgmr.msra.gmra.mrb[0].mxu1 %vm355_vm0, %v1268_v7  ;;  %v1266_v13 = vld [vmem:[%s1348_s21 + $0x38] sm:$0xff]   ;;  %v1272_v14 = vld [vmem:[%s1348_s21 + $0x68] sm:$0xff]   ;;  %v1273_v15 = vld [vmem:[%s1348_s21 + $0x70] sm:$0xff]  }
  0x16   : > { %1220 = vmatprep.mubr.msk.bf16.mxu1 %vm355_vm0, %v1269_v8  ;;  %v1274_v16 = vld [vmem:[%s1348_s21 + $0x78] sm:$0xff]  }
  0x1b   : > { %1205 = vmatmul.mubr.msk.bf16.gmra.mrb[4].mxu0 %vm355_vm0, %v1262_v4 }
  0x1c   : > { %1208 = vmatprep.mubr.msk.bf16.mxu0 %vm355_vm0, %v1263_v5 }
  0x1d   : > { %1221 = vmatmul.mubr.msk.bf16.gmra.mrb[4].mxu1 %vm355_vm0, %v1270_v10 }
  0x1e   : > { %1224 = vmatprep.mubr.msk.bf16.mxu1 %vm355_vm0, %v1271_v12 }
  0x23   : > { %1209 = vmatmul.mubr.msk.bf16.gmra.mrb[8].mxu0 %vm355_vm0, %v1264_v9 }
  0x24   : > { %1212 = vmatprep.mubr.msk.bf16.mxu0 %vm355_vm0, %v1265_v11 }
  0x25   : > { %1225 = vmatmul.mubr.msk.bf16.gmra.mrb[8].mxu1 %vm355_vm0, %v1272_v14 }
  0x26   : > { %1228 = vmatprep.mubr.msk.bf16.mxu1 %vm355_vm0, %v1273_v15 }
  0x2b   : > { %1213 = vmatmul.mubr.msk.bf16.gmra.mrb[12].mxu0 %vm355_vm0, %v1266_v13 }
  0x2d   : > { %1229 = vmatmul.mubr.msk.bf16.gmra.mrb[12].mxu1 %vm355_vm0, %v1274_v16 }
  0xe6   : > { %v1389_v17 = vpop.f32.mrb[0].mxu0 }
  0xe7   : > { %v1151_v18 = vpack.c.bf16 %v1389_v17, %v1389_v17  ;;  %v1393_v19 = vpop.f32.mrb[1].mxu0  ;;  %v569_v28 = vsel %vm565_vm2, %v1389_v17, 0.0 }
  0xe8   : > { %v1149_v20 = vpack.c.bf16 %v1393_v19, %v1393_v19  ;;  %v1397_v21 = vpop.f32.mrb[2].mxu0  ;;  %v566_v24 = vsel %vm565_vm2, %v1393_v19, 0.0  ;;  %v1423_v32 = vpop.f32.mrb[0].mxu1 }
  0xe9   : > { %903 = vst.msk [vmem:[%s1387_s24 + $0x8] sm:$0xf] %vm900_vm1, %v1151_v18  ;;  %v1152_v22 = vpack.c.bf16 %v1397_v21, %v1397_v21  ;;  %v1403_v23 = vpop.f32.mrb[3].mxu0  ;;  %v571_v30 = vsel %vm565_vm2, %v1397_v21, 0.0  ;;  %v1429_v36 = vpop.f32.mrb[1].mxu1  ;;  %v1167_v40 = vpack.c.bf16 %v1423_v32, %v1423_v32 }
  0xea   : > { %901 = vst.msk [vmem:[%s1387_s24] sm:$0xf] %vm900_vm1, %v1149_v20  ;;  %v567_v25 = vsel %vm565_vm2, %v1403_v23, 0.0  ;;  %v1150_v26 = vpack.c.bf16 %v1403_v23, %v1403_v23  ;;  %v1439_v41 = vpop.f32.mrb[2].mxu1  ;;  %v1165_v45 = vpack.c.bf16 %v1429_v36, %v1429_v36 }
  0xeb   : > { %904 = vst.msk [vmem:[%s1387_s24 + $0xc] sm:$0xf] %vm900_vm1, %v1152_v22  ;;  %v568_v27 = vadd.f32 %v567_v25, %v566_v24  ;;  %v1449_v46 = vpop.f32.mrb[3].mxu1  ;;  %919 = vst.msk [vmem:[%s1387_s24 + $0x48] sm:$0xf] %vm900_vm1, %v1167_v40  ;;  %v1168_v49 = vpack.c.bf16 %v1439_v41, %v1439_v41 }
  0xec   : > { %902 = vst.msk [vmem:[%s1387_s24 + $0x4] sm:$0xf] %vm900_vm1, %v1150_v26  ;;  %917 = vst.msk [vmem:[%s1387_s24 + $0x40] sm:$0xf] %vm900_vm1, %v1165_v45  ;;  %v1166_v51 = vpack.c.bf16 %v1449_v46, %v1449_v46 }
  0xed   : > { %v570_v29 = vadd.f32 %v569_v28, %v568_v27  ;;  %920 = vst.msk [vmem:[%s1387_s24 + $0x4c] sm:$0xf] %vm900_vm1, %v1168_v49 }
  0xee   : > { %v1421_v31 = vpop.f32.mrb[4].mxu0  ;;  %918 = vst.msk [vmem:[%s1387_s24 + $0x44] sm:$0xf] %vm900_vm1, %v1166_v51  ;;  %v597_v51 = vsel %vm565_vm2, %v1429_v36, 0.0 }
  0xef   : > { %v1155_v33 = vpack.c.bf16 %v1421_v31, %v1421_v31  ;;  %v1427_v34 = vpop.f32.mrb[5].mxu0  ;;  %v572_v35 = vadd.f32 %v571_v30, %v570_v29  ;;  %v577_v52 = vsel %vm565_vm2, %v1421_v31, 0.0 }
  0xf0   : > { %v573_v37 = vsel %vm565_vm2, %v1427_v34, 0.0  ;;  %v1153_v38 = vpack.c.bf16 %v1427_v34, %v1427_v34  ;;  %v1435_v39 = vpop.f32.mrb[6].mxu0  ;;  %v1479_v56 = vpop.f32.mrb[4].mxu1 }
  0xf1   : > { %907 = vst.msk [vmem:[%s1387_s24 + $0x18] sm:$0xf] %vm900_vm1, %v1155_v33  ;;  %v574_v42 = vadd.f32 %v573_v37, %v572_v35  ;;  %v1156_v43 = vpack.c.bf16 %v1435_v39, %v1435_v39  ;;  %v1445_v44 = vpop.f32.mrb[7].mxu0  ;;  %v579_v54 = vsel %vm565_vm2, %v1435_v39, 0.0  ;;  %v1485_v60 = vpop.f32.mrb[5].mxu1  ;;  %v1171_v0 = vpack.c.bf16 %v1479_v56, %v1479_v56 }
  0xf2   : > { %905 = vst.msk [vmem:[%s1387_s24 + $0x10] sm:$0xf] %vm900_vm1, %v1153_v38  ;;  %v575_v47 = vsel %vm565_vm2, %v1445_v44, 0.0  ;;  %v1154_v48 = vpack.c.bf16 %v1445_v44, %v1445_v44  ;;  %v1495_v1 = vpop.f32.mrb[6].mxu1  ;;  %v1169_v5 = vpack.c.bf16 %v1485_v60, %v1485_v60 }
  0xf3   : > { %908 = vst.msk [vmem:[%s1387_s24 + $0x1c] sm:$0xf] %vm900_vm1, %v1156_v43  ;;  %v576_v50 = vadd.f32 %v575_v47, %v574_v42  ;;  %v1505_v6 = vpop.f32.mrb[7].mxu1  ;;  %923 = vst.msk [vmem:[%s1387_s24 + $0x58] sm:$0xf] %vm900_vm1, %v1171_v0  ;;  %v1172_v9 = vpack.c.bf16 %v1495_v1, %v1495_v1 }
  0xf4   : > { %906 = vst.msk [vmem:[%s1387_s24 + $0x14] sm:$0xf] %vm900_vm1, %v1154_v48  ;;  %921 = vst.msk [vmem:[%s1387_s24 + $0x50] sm:$0xf] %vm900_vm1, %v1169_v5  ;;  %v1170_v11 = vpack.c.bf16 %v1505_v6, %v1505_v6 }
  0xf5   : > { %v578_v53 = vadd.f32 %v577_v52, %v576_v50  ;;  %924 = vst.msk [vmem:[%s1387_s24 + $0x5c] sm:$0xf] %vm900_vm1, %v1172_v9 }
  0xf6   : > { %v1477_v55 = vpop.f32.mrb[8].mxu0  ;;  %922 = vst.msk [vmem:[%s1387_s24 + $0x54] sm:$0xf] %vm900_vm1, %v1170_v11  ;;  %v605_v11 = vsel %vm565_vm2, %v1485_v60, 0.0 }
  0xf7   : > { %v1159_v57 = vpack.c.bf16 %v1477_v55, %v1477_v55  ;;  %v1483_v58 = vpop.f32.mrb[9].mxu0  ;;  %v580_v59 = vadd.f32 %v579_v54, %v578_v53  ;;  %v585_v12 = vsel %vm565_vm2, %v1477_v55, 0.0 }
  0xf8   : > { %v581_v61 = vsel %vm565_vm2, %v1483_v58, 0.0  ;;  %v1157_v62 = vpack.c.bf16 %v1483_v58, %v1483_v58  ;;  %v1491_v63 = vpop.f32.mrb[10].mxu0  ;;  %v1535_v16 = vpop.f32.mrb[8].mxu1 }
  0xf9   : > { %911 = vst.msk [vmem:[%s1387_s24 + $0x28] sm:$0xf] %vm900_vm1, %v1159_v57  ;;  %v582_v2 = vadd.f32 %v581_v61, %v580_v59  ;;  %v1160_v3 = vpack.c.bf16 %v1491_v63, %v1491_v63  ;;  %v1501_v4 = vpop.f32.mrb[11].mxu0  ;;  %v587_v14 = vsel %vm565_vm2, %v1491_v63, 0.0  ;;  %v1541_v24 = vpop.f32.mrb[9].mxu1  ;;  %v1175_v28 = vpack.c.bf16 %v1535_v16, %v1535_v16 }
  0xfa   : > { %909 = vst.msk [vmem:[%s1387_s24 + $0x20] sm:$0xf] %vm900_vm1, %v1157_v62  ;;  %v583_v7 = vsel %vm565_vm2, %v1501_v4, 0.0  ;;  %v1158_v8 = vpack.c.bf16 %v1501_v4, %v1501_v4  ;;  %v1551_v29 = vpop.f32.mrb[10].mxu1  ;;  %v1173_v37 = vpack.c.bf16 %v1541_v24, %v1541_v24 }
  0xfb   : > { %912 = vst.msk [vmem:[%s1387_s24 + $0x2c] sm:$0xf] %vm900_vm1, %v1160_v3  ;;  %v584_v10 = vadd.f32 %v583_v7, %v582_v2  ;;  %v1561_v38 = vpop.f32.mrb[11].mxu1  ;;  %927 = vst.msk [vmem:[%s1387_s24 + $0x68] sm:$0xf] %vm900_vm1, %v1175_v28  ;;  %v1176_v43 = vpack.c.bf16 %v1551_v29, %v1551_v29  ;;  %v599_v3 = vsel %vm565_vm2, %v1449_v46, 0.0 }
  0xfc   : > { %910 = vst.msk [vmem:[%s1387_s24 + $0x24] sm:$0xf] %vm900_vm1, %v1158_v8  ;;  %925 = vst.msk [vmem:[%s1387_s24 + $0x60] sm:$0xf] %vm900_vm1, %v1173_v37  ;;  %v1174_v47 = vpack.c.bf16 %v1561_v38, %v1561_v38  ;;  %v601_v8 = vsel %vm565_vm2, %v1423_v32, 0.0  ;;  %v613_v28 = vsel %vm565_vm2, %v1541_v24, 0.0 }
  0xfd   : > { %v586_v13 = vadd.f32 %v585_v12, %v584_v10  ;;  %928 = vst.msk [vmem:[%s1387_s24 + $0x6c] sm:$0xf] %vm900_vm1, %v1176_v43  ;;  %v603_v10 = vsel %vm565_vm2, %v1439_v41, 0.0  ;;  %v615_v37 = vsel %vm565_vm2, %v1561_v38, 0.0 }
  0xfe   : > { %v1533_v15 = vpop.f32.mrb[12].mxu0  ;;  %926 = vst.msk [vmem:[%s1387_s24 + $0x64] sm:$0xf] %vm900_vm1, %v1174_v47 }
  0xff   : > { %v1163_v18 = vpack.c.bf16 %v1533_v15, %v1533_v15  ;;  %v1539_v20 = vpop.f32.mrb[13].mxu0  ;;  %v588_v22 = vadd.f32 %v587_v14, %v586_v13  ;;  %v593_v48 = vsel %vm565_vm2, %v1533_v15, 0.0  ;;  %v607_v14 = vsel %vm565_vm2, %v1505_v6, 0.0 }
 0x100   : > { %v589_v25 = vsel %vm565_vm2, %v1539_v20, 0.0  ;;  %v1161_v26 = vpack.c.bf16 %v1539_v20, %v1539_v20  ;;  %v1547_v27 = vpop.f32.mrb[14].mxu0  ;;  %v1591_v52 = vpop.f32.mrb[12].mxu1 }
 0x101   : > { %915 = vst.msk [vmem:[%s1387_s24 + $0x38] sm:$0xf] %vm900_vm1, %v1163_v18  ;;  %v590_v30 = vadd.f32 %v589_v25, %v588_v22  ;;  %v1164_v33 = vpack.c.bf16 %v1547_v27, %v1547_v27  ;;  %v1557_v35 = vpop.f32.mrb[15].mxu0  ;;  %v595_v50 = vsel %vm565_vm2, %v1547_v27, 0.0  ;;  %v1179_v54 = vpack.c.bf16 %v1591_v52, %v1591_v52  ;;  %v1595_v57 = vpop.f32.mrb[13].mxu1 }
 0x102   : > { %913 = vst.msk [vmem:[%s1387_s24 + $0x30] sm:$0xf] %vm900_vm1, %v1161_v26  ;;  %v591_v40 = vsel %vm565_vm2, %v1557_v35, 0.0  ;;  %v1162_v42 = vpack.c.bf16 %v1557_v35, %v1557_v35  ;;  %v1177_v59 = vpack.c.bf16 %v1595_v57, %v1595_v57  ;;  %v1599_v61 = vpop.f32.mrb[14].mxu1  ;;  %v609_v22 = vsel %vm565_vm2, %v1479_v56, 0.0 }
 0x103   : > { %916 = vst.msk [vmem:[%s1387_s24 + $0x3c] sm:$0xf] %vm900_vm1, %v1164_v33  ;;  %v592_v45 = vadd.f32 %v591_v40, %v590_v30  ;;  %931 = vst.msk [vmem:[%s1387_s24 + $0x78] sm:$0xf] %vm900_vm1, %v1179_v54  ;;  %v1180_v0 = vpack.c.bf16 %v1599_v61, %v1599_v61  ;;  %v1605_v2 = vpop.f32.mrb[15].mxu1  ;;  %v611_v26 = vsel %vm565_vm2, %v1495_v1, 0.0 }
 0x104   : > { %914 = vst.msk [vmem:[%s1387_s24 + $0x34] sm:$0xf] %vm900_vm1, %v1162_v42  ;;  %929 = vst.msk [vmem:[%s1387_s24 + $0x70] sm:$0xf] %vm900_vm1, %v1177_v59  ;;  %v1178_v5 = vpack.c.bf16 %v1605_v2, %v1605_v2  ;;  %v617_v42 = vsel %vm565_vm2, %v1535_v16, 0.0  ;;  %v621_v47 = vsel %vm565_vm2, %v1595_v57, 0.0 }
 0x105   : > { %v594_v49 = vadd.f32 %v593_v48, %v592_v45  ;;  %932 = vst.msk [vmem:[%s1387_s24 + $0x7c] sm:$0xf] %vm900_vm1, %v1180_v0  ;;  %v619_v45 = vsel %vm565_vm2, %v1551_v29, 0.0  ;;  %v627_v59 = vsel %vm565_vm2, %v1599_v61, 0.0 }
 0x106   : > { %930 = vst.msk [vmem:[%s1387_s24 + $0x74] sm:$0xf] %vm900_vm1, %v1178_v5 }
 0x107   : > { %v596_v53 = vadd.f32 %v595_v50, %v594_v49  ;;  %v623_v50 = vsel %vm565_vm2, %v1605_v2, 0.0 }
 0x109   : > { %v598_v62 = vadd.f32 %v597_v51, %v596_v53  ;;  %v625_v53 = vsel %vm565_vm2, %v1591_v52, 0.0 }
 0x10b   : > { %v600_v7 = vadd.f32 %v599_v3, %v598_v62 }
 0x10d   : > { %v602_v9 = vadd.f32 %v601_v8, %v600_v7 }
 0x10f   : > { %v604_v12 = vadd.f32 %v603_v10, %v602_v9 }
 0x111   : > { %v606_v13 = vadd.f32 %v605_v11, %v604_v12 }
 0x113   : > { %v608_v18 = vadd.f32 %v607_v14, %v606_v13 }
 0x115   : > { %v610_v25 = vadd.f32 %v609_v22, %v608_v18 }
 0x117   : > { %v612_v30 = vadd.f32 %v611_v26, %v610_v25 }
 0x119   : > { %v614_v33 = vadd.f32 %v613_v28, %v612_v30 }
 0x11b   : > { %v616_v40 = vadd.f32 %v615_v37, %v614_v33 }
 0x11d   : > { %v618_v43 = vadd.f32 %v617_v42, %v616_v40 }
 0x11f   : > { %v620_v48 = vadd.f32 %v619_v45, %v618_v43 }
 0x121   : > { %v622_v49 = vadd.f32 %v621_v47, %v620_v48 }
 0x123   : > { %v624_v51 = vadd.f32 %v623_v50, %v622_v49 }
 0x125   : > { %v626_v54 = vadd.f32 %v625_v53, %v624_v51 }
 0x127   : > { %v628_v62 = vadd.f32 %v627_v59, %v626_v54 }
 0x129   : > { %v629_v0 = vrot.slane %v628_v62, 4 }
 0x12b   : > { %v630_v3 = vadd.f32 %v629_v0, %v628_v62 }
 0x12d   : > { %v631_v5 = vrot.slane %v630_v3, 2 }
 0x12f   : > { %v632_v7 = vadd.f32 %v631_v5, %v630_v3 }
 0x131   : > { %v633_v8 = vrot.slane %v632_v7, 1 }
 0x133   : > { %v634_v9 = vadd.f32 %v633_v8, %v632_v7 }
 0x135   : > { %v635_v10 = vmul.f32 0.00390625, %v634_v9  ;;  %669 = vst.msk [vmem:[%s1649_s28] sm:$0x1] %vm668_vm3, %v634_v9 }
 0x137   : > { %v636_v11 = vsub.f32 %v1393_v19, %v635_v10  ;;  %v637_v12 = vsub.f32 %v1403_v23, %v635_v10  ;;  %v638_v13 = vsub.f32 %v1389_v17, %v635_v10  ;;  %v639_v14 = vsub.f32 %v1397_v21, %v635_v10 }
 0x138   : > { %v640_v18 = vsub.f32 %v1427_v34, %v635_v10  ;;  %v641_v22 = vsub.f32 %v1445_v44, %v635_v10  ;;  %v642_v25 = vsub.f32 %v1421_v31, %v635_v10  ;;  %v643_v26 = vsub.f32 %v1435_v39, %v635_v10 }
 0x139   : > { %v644_v28 = vsub.f32 %v1483_v58, %v635_v10  ;;  %v645_v30 = vsub.f32 %v1501_v4, %v635_v10  ;;  %v646_v19 = vsub.f32 %v1477_v55, %v635_v10  ;;  %v647_v23 = vsub.f32 %v1491_v63, %v635_v10 }
 0x13a   : > { %v648_v17 = vsub.f32 %v1539_v20, %v635_v10  ;;  %v649_v21 = vsub.f32 %v1557_v35, %v635_v10  ;;  %v650_v34 = vsub.f32 %v1533_v15, %v635_v10  ;;  %v651_v44 = vsub.f32 %v1547_v27, %v635_v10 }
 0x13b   : > { %v652_v31 = vsub.f32 %v1429_v36, %v635_v10  ;;  %v653_v39 = vsub.f32 %v1449_v46, %v635_v10  ;;  %v1672_v58 = vsub.f32 %v1423_v32, %v635_v10  ;;  %v1675_v4 = vsub.f32 %v1439_v41, %v635_v10 }
 0x13c   : > { %v1678_v55 = vsub.f32 %v1485_v60, %v635_v10  ;;  %v1681_v63 = vsub.f32 %v1505_v6, %v635_v10  ;;  %v1684_v15 = vsub.f32 %v1479_v56, %v635_v10  ;;  %v1687_v20 = vsub.f32 %v1495_v1, %v635_v10 }
 0x13d   : > { %v1690_v36 = vsub.f32 %v1541_v24, %v635_v10  ;;  %v1693_v32 = vsub.f32 %v1561_v38, %v635_v10  ;;  %v1696_v41 = vsub.f32 %v1535_v16, %v635_v10  ;;  %v1699_v46 = vsub.f32 %v1551_v29, %v635_v10 }
 0x13e   : > { %v1702_v60 = vsub.f32 %v1595_v57, %v635_v10  ;;  %v1705_v56 = vsub.f32 %v1605_v2, %v635_v10  ;;  %v1708_v1 = vsub.f32 %v1591_v52, %v635_v10  ;;  %v1711_v6 = vsub.f32 %v1599_v61, %v635_v10 }
 0x13f   : > { %v670_v24 = vmul.f32 %v636_v11, %v636_v11  ;;  %v671_v27 = vmul.f32 %v637_v12, %v637_v12  ;;  %v672_v35 = vmul.f32 %v638_v13, %v638_v13  ;;  %v673_v16 = vmul.f32 %v639_v14, %v639_v14 }
 0x140   : > { %v674_v57 = vmul.f32 %v640_v18, %v640_v18  ;;  %v675_v40 = vmul.f32 %v641_v22, %v641_v22  ;;  %v676_v43 = vmul.f32 %v642_v25, %v642_v25  ;;  %v677_v47 = vmul.f32 %v643_v26, %v643_v26 }
 0x141   : > { %v702_v38 = vsel %vm565_vm2, %v670_v24, 0.0  ;;  %v703_v29 = vsel %vm565_vm2, %v671_v27, 0.0  ;;  %v705_v37 = vsel %vm565_vm2, %v672_v35, 0.0  ;;  %v707_v52 = vsel %vm565_vm2, %v673_v16, 0.0 }
 0x142   : > { %v704_v33 = vadd.f32 %v703_v29, %v702_v38  ;;  %v709_v61 = vsel %vm565_vm2, %v674_v57, 0.0  ;;  %v711_v48 = vsel %vm565_vm2, %v675_v40, 0.0  ;;  %v678_v50 = vmul.f32 %v644_v28, %v644_v28 }
 0x143   : > { %v713_v51 = vsel %vm565_vm2, %v676_v43, 0.0  ;;  %v679_v54 = vmul.f32 %v645_v30, %v645_v30  ;;  %v715_v59 = vsel %vm565_vm2, %v677_v47, 0.0  ;;  %v680_v0 = vmul.f32 %v646_v19, %v646_v19 }
 0x144   : > { %v706_v2 = vadd.f32 %v705_v37, %v704_v33  ;;  %v717_v3 = vsel %vm565_vm2, %v678_v50, 0.0  ;;  %v681_v7 = vmul.f32 %v647_v23, %v647_v23  ;;  %v682_v10 = vmul.f32 %v648_v17, %v648_v17 }
 0x145   : > { %v719_v8 = vsel %vm565_vm2, %v679_v54, 0.0  ;;  %v721_v11 = vsel %vm565_vm2, %v680_v0, 0.0  ;;  %v683_v13 = vmul.f32 %v649_v21, %v649_v21  ;;  %v684_v22 = vmul.f32 %v650_v34, %v650_v34 }
 0x146   : > { %v708_v42 = vadd.f32 %v707_v52, %v706_v2  ;;  %v723_v14 = vsel %vm565_vm2, %v681_v7, 0.0  ;;  %v725_v25 = vsel %vm565_vm2, %v682_v10, 0.0  ;;  %v685_v28 = vmul.f32 %v651_v44, %v651_v44 }
 0x147   : > { %v727_v30 = vsel %vm565_vm2, %v683_v13, 0.0  ;;  %v686_v23 = vmul.f32 %v652_v31, %v652_v31  ;;  %v729_v24 = vsel %vm565_vm2, %v684_v22, 0.0  ;;  %v687_v17 = vmul.f32 %v653_v39, %v653_v39 }
 0x148   : > { %v710_v45 = vadd.f32 %v709_v61, %v708_v42  ;;  %v731_v35 = vsel %vm565_vm2, %v685_v28, 0.0  ;;  %v688_v21 = vmul.f32 %v1672_v58, %v1672_v58  ;;  %v689_v44 = vmul.f32 %v1675_v4, %v1675_v4 }
 0x149   : > { %v733_v34 = vsel %vm565_vm2, %v686_v23, 0.0  ;;  %v735_v29 = vsel %vm565_vm2, %v687_v17, 0.0  ;;  %v690_v31 = vmul.f32 %v1678_v55, %v1678_v55  ;;  %v691_v37 = vmul.f32 %v1681_v63, %v1681_v63 }
 0x14a   : > { %v712_v49 = vadd.f32 %v711_v48, %v710_v45  ;;  %v737_v39 = vsel %vm565_vm2, %v688_v21, 0.0  ;;  %v739_v58 = vsel %vm565_vm2, %v689_v44, 0.0  ;;  %v692_v40 = vmul.f32 %v1684_v15, %v1684_v15 }
 0x14b   : > { %v741_v4 = vsel %vm565_vm2, %v690_v31, 0.0  ;;  %v693_v42 = vmul.f32 %v1687_v20, %v1687_v20  ;;  %v743_v55 = vsel %vm565_vm2, %v691_v37, 0.0  ;;  %v694_v61 = vmul.f32 %v1690_v36, %v1690_v36 }
 0x14c   : > { %v714_v53 = vadd.f32 %v713_v51, %v712_v49  ;;  %v745_v63 = vsel %vm565_vm2, %v692_v40, 0.0  ;;  %v695_v47 = vmul.f32 %v1693_v32, %v1693_v32  ;;  %v696_v49 = vmul.f32 %v1696_v41, %v1696_v41 }
 0x14d   : > { %v747_v15 = vsel %vm565_vm2, %v693_v42, 0.0  ;;  %v749_v20 = vsel %vm565_vm2, %v694_v61, 0.0  ;;  %v697_v51 = vmul.f32 %v1699_v46, %v1699_v46  ;;  %v698_v54 = vmul.f32 %v1702_v60, %v1702_v60 }
 0x14e   : > { %v716_v62 = vadd.f32 %v715_v59, %v714_v53  ;;  %v751_v36 = vsel %vm565_vm2, %v695_v47, 0.0  ;;  %v753_v32 = vsel %vm565_vm2, %v696_v49, 0.0  ;;  %v701_v7 = vmul.f32 %v1711_v6, %v1711_v6 }
 0x14f   : > { %v755_v41 = vsel %vm565_vm2, %v697_v51, 0.0  ;;  %v757_v46 = vsel %vm565_vm2, %v698_v54, 0.0 }
 0x150   : > { %v718_v5 = vadd.f32 %v717_v3, %v716_v62  ;;  %v699_v62 = vmul.f32 %v1705_v56, %v1705_v56  ;;  %v700_v3 = vmul.f32 %v1708_v1, %v1708_v1  ;;  %v763_v56 = vsel %vm565_vm2, %v701_v7, 0.0 }
 0x152   : > { %v720_v9 = vadd.f32 %v719_v8, %v718_v5  ;;  %v759_v60 = vsel %vm565_vm2, %v699_v62, 0.0 }
 0x154   : > { %v722_v12 = vadd.f32 %v721_v11, %v720_v9  ;;  %v761_v9 = vsel %vm565_vm2, %v700_v3, 0.0 }
 0x156   : > { %v724_v18 = vadd.f32 %v723_v14, %v722_v12 }
 0x158   : > { %v726_v26 = vadd.f32 %v725_v25, %v724_v18 }
 0x15a   : > { %v728_v19 = vadd.f32 %v727_v30, %v726_v26 }
 0x15c   : > { %v730_v27 = vadd.f32 %v729_v24, %v728_v19 }
 0x15e   : > { %v732_v16 = vadd.f32 %v731_v35, %v730_v27 }
 0x160   : > { %v734_v38 = vadd.f32 %v733_v34, %v732_v16 }
 0x162   : > { %v736_v33 = vadd.f32 %v735_v29, %v734_v38 }
 0x164   : > { %v738_v57 = vadd.f32 %v737_v39, %v736_v33 }
 0x166   : > { %v740_v2 = vadd.f32 %v739_v58, %v738_v57 }
 0x168   : > { %v742_v52 = vadd.f32 %v741_v4, %v740_v2 }
 0x16a   : > { %v744_v43 = vadd.f32 %v743_v55, %v742_v52 }
 0x16c   : > { %v746_v45 = vadd.f32 %v745_v63, %v744_v43 }
 0x16e   : > { %v748_v48 = vadd.f32 %v747_v15, %v746_v45 }
 0x170   : > { %v750_v50 = vadd.f32 %v749_v20, %v748_v48 }
 0x172   : > { %v752_v53 = vadd.f32 %v751_v36, %v750_v50 }
 0x174   : > { %v754_v59 = vadd.f32 %v753_v32, %v752_v53 }
 0x176   : > { %v756_v0 = vadd.f32 %v755_v41, %v754_v59 }
 0x178   : > { %v758_v5 = vadd.f32 %v757_v46, %v756_v0 }
 0x17a   : > { %v760_v8 = vadd.f32 %v759_v60, %v758_v5 }
 0x17c   : > { %v762_v10 = vadd.f32 %v761_v9, %v760_v8 }
 0x17e   : > { %v764_v11 = vadd.f32 %v763_v56, %v762_v10 }
 0x180   : > { %v765_v12 = vrot.slane %v764_v11, 4 }
 0x182   : > { %v766_v13 = vadd.f32 %v765_v12, %v764_v11 }
 0x184   : > { %v767_v14 = vrot.slane %v766_v13, 2 }
 0x186   : > { %v768_v1 = vadd.f32 %v767_v14, %v766_v13 }
 0x188   : > { %v769_v18 = vrot.slane %v768_v1, 1 }
 0x18a   : > { %v770_v22 = vadd.f32 %v769_v18, %v768_v1 }
 0x18c   : > { %771 = vst.msk [vmem:[%s1649_s28 + $0x1] sm:$0x1] %vm668_vm3, %v770_v22 }
 0x18d PF: > { %s14_s14 = sadd.s32 1, %s1297_s14   ;;  %s1788_s12 = smov %s1293_s13 }
 0x18e   : > { %p11_p5 = scmp.ge.s32.totalorder %s14_s14, 4   ;;  %s1789_s13 = smov %s1791_s15 }
 0x190   :  { %13 = sbr.rel (!%p11_p5) target bundleno = 2 (0x2), region = 70 }

// kernel: bottleneck_pallas.7
= control target key start
LH: loop header
LB: loop body
LE: loop exit
PB: predicated region body
PF: predicated region fallthrough
CT: control target
= control target key end

     0   :  { %s1142_s15 = smov 0   ;;  %s1144_s16 = smov 0   ;;  %s1359_s0 = inlined_call_operand.vmem [shape: bf16[2,16,16,16], index: 0, kind: input, shape index: {}]   ;;  %s1360_s1 = inlined_call_operand.vmem [shape: bf16[2,16,16,16], index: 1, kind: input, shape index: {}]   ;;  %s1361_s2 = inlined_call_operand.vmem [shape: f32[1,16], index: 2, kind: input, shape index: {}]   ;;  %s1362_s3 = inlined_call_operand.vmem [shape: f32[1,16], index: 3, kind: input, shape index: {}]   ;;  %s1363_s4 = inlined_call_operand.vmem [shape: bf16[2,16,16,16], index: 4, kind: output, shape index: {}]  }
   0x1   :  { %s1146_s17 = smov 0  }
   0x2 LB: > { %s26_s18 = sadd.s32 1, %s1111_s16  ;;  %p833_p0 = scmp.ge.s32.totalorder %s1115_s17, 1  ;;  %s1115_s17 = sphi %s1146_s17, %s14_s17   ;;  %s1111_s16 = sphi %s1144_s16, %s1365_s16   ;;  %s1107_s15 = sphi %s1142_s15, %s1364_s15  }
   0x3   : > { %p28_p1 = scmp.ge.s32.totalorder %s26_s18, 2  ;;  %p202_p2 = scmp.lt.s32.totalorder %s1115_s17, 3 }
   0x5   : > { %s1367_s18 = smov (%p28_p1, %s26_s18), 0  ;;  %p203_p3 = pnand %p833_p0, %p202_p2 }
   0x6   : > { %p249_p4 = scmp.lt.s32.totalorder (!%p203_p3), %s1107_s15, 1  ;;  %v1177_v0 = vld [vmem:[%s1361_s2] ss:$0 sm:$0xff] (!%p203_p3)  ;;  %vm679_vm0 = vcmask (!%p203_p3), 125952  }
   0x7   : > { %206 = sbr.rel (%p203_p3) target bundleno = 81 (0x51), region = 36  ;;  %v1188_v11 = vld [vmem:[%s1362_s3] ss:$0 sm:$0xff] (!%p203_p3) }
   0xe   : > { %s1369_s15 = smov (!%p249_p4, %s1107_s15), 1 }
   0xf   : > { %s1160_s19 = sshll.u32 %s1369_s15, 7 }
  0x10   : > { %s1166_s22 = scalar_lea.vmem %s1359_s0, %s1160_s19  ;;  %s1172_s25 = scalar_lea.vmem %s1360_s1, %s1160_s19 }
  0x11   : > { %v912_v1 = vld [vmem:[%s1166_s22] sm:$0xff]   ;;  %v1039_v3 = vld [vmem:[%s1166_s22 + $0x8] sm:$0xff]   ;;  %v1040_v9 = vld [vmem:[%s1166_s22 + $0x10] sm:$0xff]   ;;  %s1210_s6 = scalar_lea.vmem %s1363_s4, %s1160_s19 }
  0x12   : > { %v976_v2 = vld [vmem:[%s1172_s25] sm:$0xff]   ;;  %v913_v4 = vunpack.c.l.bf16 %v912_v1  ;;  %v914_v6 = vunpack.c.h.bf16 %v912_v1  ;;  %v1054_v8 = vld [vmem:[%s1172_s25 + $0x8] sm:$0xff]   ;;  %v1055_v10 = vld [vmem:[%s1172_s25 + $0x10] sm:$0xff]   ;;  %v917_v12 = vunpack.c.l.bf16 %v1039_v3  ;;  %v918_v14 = vunpack.c.h.bf16 %v1039_v3 }
  0x13   : > { %v977_v5 = vunpack.c.l.bf16 %v976_v2  ;;  %v978_v7 = vunpack.c.h.bf16 %v976_v2  ;;  %v981_v13 = vunpack.c.l.bf16 %v1054_v8  ;;  %v982_v15 = vunpack.c.h.bf16 %v1054_v8  ;;  %v1041_v16 = vld [vmem:[%s1166_s22 + $0x18] sm:$0xff]   ;;  %v1042_v50 = vld [vmem:[%s1166_s22 + $0x20] sm:$0xff]   ;;  %v1043_v60 = vld [vmem:[%s1166_s22 + $0x28] sm:$0xff]  }
  0x14   : > { %v352_v17 = vmul.f32 %v913_v4, %v1177_v0  ;;  %v353_v18 = vmul.f32 %v914_v6, %v1177_v0  ;;  %v921_v19 = vunpack.c.l.bf16 %v1040_v9  ;;  %v985_v20 = vunpack.c.l.bf16 %v1055_v10  ;;  %v1056_v21 = vld [vmem:[%s1172_s25 + $0x18] sm:$0xff]   ;;  %v1057_v55 = vld [vmem:[%s1172_s25 + $0x20] sm:$0xff]   ;;  %v1058_v2 = vld [vmem:[%s1172_s25 + $0x28] sm:$0xff]  }
  0x15   : > { %v354_v22 = vmul.f32 %v917_v12, %v1177_v0  ;;  %v355_v23 = vmul.f32 %v918_v14, %v1177_v0  ;;  %v922_v24 = vunpack.c.h.bf16 %v1040_v9  ;;  %v986_v25 = vunpack.c.h.bf16 %v1055_v10 }
  0x16   : > { %v391_v26 = vadd.f32 %v1188_v11, %v352_v17  ;;  %v392_v27 = vadd.f32 %v1188_v11, %v353_v18  ;;  %v356_v28 = vmul.f32 %v921_v19, %v1177_v0  ;;  %v925_v29 = vunpack.c.l.bf16 %v1041_v16 }
  0x17   : > { %v393_v30 = vadd.f32 %v1188_v11, %v354_v22  ;;  %v394_v31 = vadd.f32 %v1188_v11, %v355_v23  ;;  %v357_v32 = vmul.f32 %v922_v24, %v1177_v0  ;;  %v989_v33 = vunpack.c.l.bf16 %v1056_v21 }
  0x18   : > { %v487_v34 = vadd.f32 %v977_v5, %v391_v26  ;;  %v488_v35 = vadd.f32 %v978_v7, %v392_v27  ;;  %v395_v36 = vadd.f32 %v1188_v11, %v356_v28  ;;  %v358_v37 = vmul.f32 %v925_v29, %v1177_v0  ;;  %v1044_v7 = vld [vmem:[%s1166_s22 + $0x30] sm:$0xff]   ;;  %v1045_v26 = vld [vmem:[%s1166_s22 + $0x38] sm:$0xff]  }
  0x19   : > { %v489_v38 = vadd.f32 %v981_v13, %v393_v30  ;;  %v490_v39 = vadd.f32 %v982_v15, %v394_v31  ;;  %v396_v40 = vadd.f32 %v1188_v11, %v357_v32  ;;  %v926_v41 = vunpack.c.h.bf16 %v1041_v16  ;;  %v1059_v13 = vld [vmem:[%s1172_s25 + $0x30] sm:$0xff]   ;;  %v1060_v31 = vld [vmem:[%s1172_s25 + $0x38] sm:$0xff]  }
  0x1a   : > { %v519_v42 = vmax.f32 %v487_v34, 0.0  ;;  %v520_v43 = vmax.f32 %v488_v35, 0.0  ;;  %v491_v44 = vadd.f32 %v985_v20, %v395_v36  ;;  %v397_v45 = vadd.f32 %v1188_v11, %v358_v37 }
  0x1b   : > { %v521_v46 = vmax.f32 %v489_v38, 0.0  ;;  %v522_v47 = vmax.f32 %v490_v39, 0.0  ;;  %v492_v48 = vadd.f32 %v986_v25, %v396_v40  ;;  %v359_v49 = vmul.f32 %v926_v41, %v1177_v0 }
  0x1c   : > { %v879_v51 = vpack.c.bf16 %v519_v42, %v519_v42  ;;  %v880_v52 = vpack.c.bf16 %v520_v43, %v520_v43  ;;  %v523_v53 = vmax.f32 %v491_v44, 0.0  ;;  %v493_v54 = vadd.f32 %v989_v33, %v397_v45 }
  0x1d   : > { %v881_v56 = vpack.c.bf16 %v521_v46, %v521_v46  ;;  %v882_v57 = vpack.c.bf16 %v522_v47, %v522_v47  ;;  %v524_v58 = vmax.f32 %v492_v48, 0.0  ;;  %v398_v59 = vadd.f32 %v1188_v11, %v359_v49  ;;  %v1046_v48 = vld [vmem:[%s1166_s22 + $0x40] sm:$0xff]  }
  0x1e   : > { %680 = vst.msk [vmem:[%s1210_s6] sm:$0xf] %vm679_vm0, %v879_v51  ;;  %681 = vst.msk [vmem:[%s1210_s6 + $0x4] sm:$0xf] %vm679_vm0, %v880_v52  ;;  %v883_v61 = vpack.c.bf16 %v523_v53, %v523_v53  ;;  %v525_v62 = vmax.f32 %v493_v54, 0.0  ;;  %v990_v63 = vunpack.c.h.bf16 %v1056_v21  ;;  %v929_v1 = vunpack.c.l.bf16 %v1042_v50  ;;  %v1061_v53 = vld [vmem:[%s1172_s25 + $0x40] sm:$0xff]  }
  0x1f   : > { %682 = vst.msk [vmem:[%s1210_s6 + $0x8] sm:$0xf] %vm679_vm0, %v881_v56  ;;  %683 = vst.msk [vmem:[%s1210_s6 + $0xc] sm:$0xf] %vm679_vm0, %v882_v57  ;;  %v884_v3 = vpack.c.bf16 %v524_v58, %v524_v58  ;;  %v993_v4 = vunpack.c.l.bf16 %v1057_v55  ;;  %v930_v5 = vunpack.c.h.bf16 %v1042_v50  ;;  %v994_v6 = vunpack.c.h.bf16 %v1057_v55 }
  0x20   : > { %684 = vst.msk [vmem:[%s1210_s6 + $0x10] sm:$0xf] %vm679_vm0, %v883_v61  ;;  %v885_v8 = vpack.c.bf16 %v525_v62, %v525_v62  ;;  %v494_v9 = vadd.f32 %v990_v63, %v398_v59  ;;  %v360_v10 = vmul.f32 %v929_v1, %v1177_v0  ;;  %v933_v12 = vunpack.c.l.bf16 %v1043_v60  ;;  %v1047_v62 = vld [vmem:[%s1166_s22 + $0x48] sm:$0xff]  }
  0x21   : > { %685 = vst.msk [vmem:[%s1210_s6 + $0x14] sm:$0xf] %vm679_vm0, %v884_v3  ;;  %v361_v14 = vmul.f32 %v930_v5, %v1177_v0  ;;  %v997_v15 = vunpack.c.l.bf16 %v1058_v2  ;;  %v934_v16 = vunpack.c.h.bf16 %v1043_v60  ;;  %v998_v17 = vunpack.c.h.bf16 %v1058_v2  ;;  %v1062_v63 = vld [vmem:[%s1172_s25 + $0x48] sm:$0xff]  }
  0x22   : > { %686 = vst.msk [vmem:[%s1210_s6 + $0x18] sm:$0xf] %vm679_vm0, %v885_v8  ;;  %v526_v18 = vmax.f32 %v494_v9, 0.0  ;;  %v399_v19 = vadd.f32 %v1188_v11, %v360_v10  ;;  %v362_v20 = vmul.f32 %v933_v12, %v1177_v0  ;;  %v937_v21 = vunpack.c.l.bf16 %v1044_v7  ;;  %v1048_v9 = vld [vmem:[%s1166_s22 + $0x50] sm:$0xff]  }
  0x23   : > { %v400_v22 = vadd.f32 %v1188_v11, %v361_v14  ;;  %v363_v23 = vmul.f32 %v934_v16, %v1177_v0  ;;  %v1001_v24 = vunpack.c.l.bf16 %v1059_v13  ;;  %v938_v25 = vunpack.c.h.bf16 %v1044_v7 }
  0x24   : > { %v886_v27 = vpack.c.bf16 %v526_v18, %v526_v18  ;;  %v495_v28 = vadd.f32 %v993_v4, %v399_v19  ;;  %v401_v29 = vadd.f32 %v1188_v11, %v362_v20  ;;  %v364_v30 = vmul.f32 %v937_v21, %v1177_v0 }
  0x25   : > { %v496_v32 = vadd.f32 %v994_v6, %v400_v22  ;;  %v402_v33 = vadd.f32 %v1188_v11, %v363_v23  ;;  %v365_v34 = vmul.f32 %v938_v25, %v1177_v0  ;;  %v1002_v35 = vunpack.c.h.bf16 %v1059_v13 }
  0x26   : > { %687 = vst.msk [vmem:[%s1210_s6 + $0x1c] sm:$0xf] %vm679_vm0, %v886_v27  ;;  %v527_v36 = vmax.f32 %v495_v28, 0.0  ;;  %v497_v37 = vadd.f32 %v997_v15, %v401_v29  ;;  %v403_v38 = vadd.f32 %v1188_v11, %v364_v30  ;;  %v941_v39 = vunpack.c.l.bf16 %v1045_v26  ;;  %v1063_v15 = vld [vmem:[%s1172_s25 + $0x50] sm:$0xff]  }
  0x27   : > { %v528_v40 = vmax.f32 %v496_v32, 0.0  ;;  %v498_v41 = vadd.f32 %v998_v17, %v402_v33  ;;  %v404_v42 = vadd.f32 %v1188_v11, %v365_v34  ;;  %v1005_v43 = vunpack.c.l.bf16 %v1060_v31  ;;  %v1049_v32 = vld [vmem:[%s1166_s22 + $0x58] sm:$0xff]  }
  0x28   : > { %v887_v44 = vpack.c.bf16 %v527_v36, %v527_v36  ;;  %v529_v45 = vmax.f32 %v497_v37, 0.0  ;;  %v499_v46 = vadd.f32 %v1001_v24, %v403_v38  ;;  %v366_v47 = vmul.f32 %v941_v39, %v1177_v0  ;;  %v1064_v33 = vld [vmem:[%s1172_s25 + $0x58] sm:$0xff]  }
  0x29   : > { %v888_v49 = vpack.c.bf16 %v528_v40, %v528_v40  ;;  %v530_v50 = vmax.f32 %v498_v41, 0.0  ;;  %v500_v51 = vadd.f32 %v1002_v35, %v404_v42  ;;  %v942_v52 = vunpack.c.h.bf16 %v1045_v26 }
  0x2a   : > { %688 = vst.msk [vmem:[%s1210_s6 + $0x20] sm:$0xf] %vm679_vm0, %v887_v44  ;;  %v889_v54 = vpack.c.bf16 %v529_v45, %v529_v45  ;;  %v531_v55 = vmax.f32 %v499_v46, 0.0  ;;  %v405_v56 = vadd.f32 %v1188_v11, %v366_v47  ;;  %v1006_v57 = vunpack.c.h.bf16 %v1060_v31  ;;  %v1050_v46 = vld [vmem:[%s1166_s22 + $0x60] sm:$0xff]  }
  0x2b   : > { %689 = vst.msk [vmem:[%s1210_s6 + $0x24] sm:$0xf] %vm679_vm0, %v888_v49  ;;  %v890_v58 = vpack.c.bf16 %v530_v50, %v530_v50  ;;  %v532_v59 = vmax.f32 %v500_v51, 0.0  ;;  %v367_v60 = vmul.f32 %v942_v52, %v1177_v0  ;;  %v945_v61 = vunpack.c.l.bf16 %v1046_v48  ;;  %v1065_v51 = vld [vmem:[%s1172_s25 + $0x60] sm:$0xff]  }
  0x2c   : > { %690 = vst.msk [vmem:[%s1210_s6 + $0x28] sm:$0xf] %vm679_vm0, %v889_v54  ;;  %v891_v1 = vpack.c.bf16 %v531_v55, %v531_v55  ;;  %v501_v2 = vadd.f32 %v1005_v43, %v405_v56  ;;  %v1009_v3 = vunpack.c.l.bf16 %v1061_v53  ;;  %v946_v4 = vunpack.c.h.bf16 %v1046_v48 }
  0x2d   : > { %691 = vst.msk [vmem:[%s1210_s6 + $0x2c] sm:$0xf] %vm679_vm0, %v890_v58  ;;  %v892_v5 = vpack.c.bf16 %v532_v59, %v532_v59  ;;  %v406_v6 = vadd.f32 %v1188_v11, %v367_v60  ;;  %v368_v7 = vmul.f32 %v945_v61, %v1177_v0  ;;  %v1010_v8 = vunpack.c.h.bf16 %v1061_v53  ;;  %v1051_v60 = vld [vmem:[%s1166_s22 + $0x68] sm:$0xff]  }
  0x2e   : > { %692 = vst.msk [vmem:[%s1210_s6 + $0x30] sm:$0xf] %vm679_vm0, %v891_v1  ;;  %v533_v10 = vmax.f32 %v501_v2, 0.0  ;;  %v369_v12 = vmul.f32 %v946_v4, %v1177_v0  ;;  %v949_v13 = vunpack.c.l.bf16 %v1047_v62  ;;  %v1013_v14 = vunpack.c.l.bf16 %v1062_v63  ;;  %v1066_v2 = vld [vmem:[%s1172_s25 + $0x68] sm:$0xff]  }
  0x2f   : > { %693 = vst.msk [vmem:[%s1210_s6 + $0x34] sm:$0xf] %vm679_vm0, %v892_v5  ;;  %v502_v16 = vadd.f32 %v1006_v57, %v406_v6  ;;  %v407_v17 = vadd.f32 %v1188_v11, %v368_v7  ;;  %v950_v18 = vunpack.c.h.bf16 %v1047_v62  ;;  %v1014_v19 = vunpack.c.h.bf16 %v1062_v63 }
  0x30   : > { %v893_v20 = vpack.c.bf16 %v533_v10, %v533_v10  ;;  %v408_v21 = vadd.f32 %v1188_v11, %v369_v12  ;;  %v370_v22 = vmul.f32 %v949_v13, %v1177_v0  ;;  %v953_v23 = vunpack.c.l.bf16 %v1048_v9  ;;  %v1052_v12 = vld [vmem:[%s1166_s22 + $0x70] sm:$0xff]  }
  0x31   : > { %v534_v24 = vmax.f32 %v502_v16, 0.0  ;;  %v503_v25 = vadd.f32 %v1009_v3, %v407_v17  ;;  %v371_v26 = vmul.f32 %v950_v18, %v1177_v0  ;;  %v1017_v27 = vunpack.c.l.bf16 %v1063_v15 }
  0x32   : > { %694 = vst.msk [vmem:[%s1210_s6 + $0x38] sm:$0xf] %vm679_vm0, %v893_v20  ;;  %v504_v28 = vadd.f32 %v1010_v8, %v408_v21  ;;  %v409_v29 = vadd.f32 %v1188_v11, %v370_v22  ;;  %v372_v30 = vmul.f32 %v953_v23, %v1177_v0  ;;  %v954_v31 = vunpack.c.h.bf16 %v1048_v9  ;;  %v1067_v21 = vld [vmem:[%s1172_s25 + $0x70] sm:$0xff]  }
  0x33   : > { %v894_v34 = vpack.c.bf16 %v534_v24, %v534_v24  ;;  %v535_v35 = vmax.f32 %v503_v25, 0.0  ;;  %v410_v36 = vadd.f32 %v1188_v11, %v371_v26  ;;  %v1018_v37 = vunpack.c.h.bf16 %v1063_v15 }
  0x34   : > { %v536_v38 = vmax.f32 %v504_v28, 0.0  ;;  %v505_v39 = vadd.f32 %v1013_v14, %v409_v29  ;;  %v411_v40 = vadd.f32 %v1188_v11, %v372_v30  ;;  %v373_v41 = vmul.f32 %v954_v31, %v1177_v0 }
  0x35   : > { %695 = vst.msk [vmem:[%s1210_s6 + $0x3c] sm:$0xf] %vm679_vm0, %v894_v34  ;;  %v895_v42 = vpack.c.bf16 %v535_v35, %v535_v35  ;;  %v506_v43 = vadd.f32 %v1014_v19, %v410_v36  ;;  %v957_v44 = vunpack.c.l.bf16 %v1049_v32  ;;  %v1021_v45 = vunpack.c.l.bf16 %v1064_v33  ;;  %v1053_v34 = vld [vmem:[%s1166_s22 + $0x78] sm:$0xff]  }
  0x36   : > { %v896_v47 = vpack.c.bf16 %v536_v38, %v536_v38  ;;  %v537_v48 = vmax.f32 %v505_v39, 0.0  ;;  %v507_v49 = vadd.f32 %v1017_v27, %v411_v40  ;;  %v412_v50 = vadd.f32 %v1188_v11, %v373_v41  ;;  %v1068_v39 = vld [vmem:[%s1172_s25 + $0x78] sm:$0xff]  }
  0x37   : > { %696 = vst.msk [vmem:[%s1210_s6 + $0x40] sm:$0xf] %vm679_vm0, %v895_v42  ;;  %v538_v52 = vmax.f32 %v506_v43, 0.0  ;;  %v374_v53 = vmul.f32 %v957_v44, %v1177_v0  ;;  %v958_v54 = vunpack.c.h.bf16 %v1049_v32  ;;  %v1022_v55 = vunpack.c.h.bf16 %v1064_v33 }
  0x38   : > { %697 = vst.msk [vmem:[%s1210_s6 + $0x44] sm:$0xf] %vm679_vm0, %v896_v47  ;;  %v897_v56 = vpack.c.bf16 %v537_v48, %v537_v48  ;;  %v539_v57 = vmax.f32 %v507_v49, 0.0  ;;  %v508_v58 = vadd.f32 %v1018_v37, %v412_v50  ;;  %v961_v59 = vunpack.c.l.bf16 %v1050_v46 }
  0x39   : > { %v898_v61 = vpack.c.bf16 %v538_v52, %v538_v52  ;;  %v413_v62 = vadd.f32 %v1188_v11, %v374_v53  ;;  %v375_v63 = vmul.f32 %v958_v54, %v1177_v0  ;;  %v1025_v1 = vunpack.c.l.bf16 %v1065_v51 }
  0x3a   : > { %698 = vst.msk [vmem:[%s1210_s6 + $0x48] sm:$0xf] %vm679_vm0, %v897_v56  ;;  %v899_v3 = vpack.c.bf16 %v539_v57, %v539_v57  ;;  %v540_v4 = vmax.f32 %v508_v58, 0.0  ;;  %v376_v5 = vmul.f32 %v961_v59, %v1177_v0  ;;  %v962_v6 = vunpack.c.h.bf16 %v1050_v46 }
  0x3b   : > { %699 = vst.msk [vmem:[%s1210_s6 + $0x4c] sm:$0xf] %vm679_vm0, %v898_v61  ;;  %v509_v7 = vadd.f32 %v1021_v45, %v413_v62  ;;  %v414_v8 = vadd.f32 %v1188_v11, %v375_v63  ;;  %v1026_v9 = vunpack.c.h.bf16 %v1065_v51  ;;  %v965_v10 = vunpack.c.l.bf16 %v1051_v60 }
  0x3c   : > { %700 = vst.msk [vmem:[%s1210_s6 + $0x50] sm:$0xf] %vm679_vm0, %v899_v3  ;;  %v900_v13 = vpack.c.bf16 %v540_v4, %v540_v4  ;;  %v415_v14 = vadd.f32 %v1188_v11, %v376_v5  ;;  %v377_v15 = vmul.f32 %v962_v6, %v1177_v0  ;;  %v1029_v16 = vunpack.c.l.bf16 %v1066_v2 }
  0x3d   : > { %v541_v17 = vmax.f32 %v509_v7, 0.0  ;;  %v510_v18 = vadd.f32 %v1022_v55, %v414_v8  ;;  %v378_v19 = vmul.f32 %v965_v10, %v1177_v0  ;;  %v966_v20 = vunpack.c.h.bf16 %v1051_v60 }
  0x3e   : > { %701 = vst.msk [vmem:[%s1210_s6 + $0x54] sm:$0xf] %vm679_vm0, %v900_v13  ;;  %v511_v22 = vadd.f32 %v1025_v1, %v415_v14  ;;  %v416_v23 = vadd.f32 %v1188_v11, %v377_v15  ;;  %v1030_v24 = vunpack.c.h.bf16 %v1066_v2  ;;  %v969_v25 = vunpack.c.l.bf16 %v1052_v12 }
  0x3f   : > { %v901_v26 = vpack.c.bf16 %v541_v17, %v541_v17  ;;  %v542_v27 = vmax.f32 %v510_v18, 0.0  ;;  %v417_v28 = vadd.f32 %v1188_v11, %v378_v19  ;;  %v379_v29 = vmul.f32 %v966_v20, %v1177_v0 }
  0x40   : > { %v543_v30 = vmax.f32 %v511_v22, 0.0  ;;  %v512_v31 = vadd.f32 %v1026_v9, %v416_v23  ;;  %v380_v32 = vmul.f32 %v969_v25, %v1177_v0  ;;  %v1033_v33 = vunpack.c.l.bf16 %v1067_v21 }
  0x41   : > { %702 = vst.msk [vmem:[%s1210_s6 + $0x58] sm:$0xf] %vm679_vm0, %v901_v26  ;;  %v902_v35 = vpack.c.bf16 %v542_v27, %v542_v27  ;;  %v513_v36 = vadd.f32 %v1029_v16, %v417_v28  ;;  %v418_v37 = vadd.f32 %v1188_v11, %v379_v29  ;;  %v970_v38 = vunpack.c.h.bf16 %v1052_v12 }
  0x42   : > { %v903_v40 = vpack.c.bf16 %v543_v30, %v543_v30  ;;  %v544_v41 = vmax.f32 %v512_v31, 0.0  ;;  %v419_v42 = vadd.f32 %v1188_v11, %v380_v32  ;;  %v1034_v43 = vunpack.c.h.bf16 %v1067_v21 }
  0x43   : > { %703 = vst.msk [vmem:[%s1210_s6 + $0x5c] sm:$0xf] %vm679_vm0, %v902_v35  ;;  %v545_v44 = vmax.f32 %v513_v36, 0.0  ;;  %v514_v45 = vadd.f32 %v1030_v24, %v418_v37  ;;  %v381_v46 = vmul.f32 %v970_v38, %v1177_v0  ;;  %v973_v47 = vunpack.c.l.bf16 %v1053_v34 }
  0x44   : > { %704 = vst.msk [vmem:[%s1210_s6 + $0x60] sm:$0xf] %vm679_vm0, %v903_v40  ;;  %v904_v48 = vpack.c.bf16 %v544_v41, %v544_v41  ;;  %v515_v49 = vadd.f32 %v1033_v33, %v419_v42  ;;  %v1037_v50 = vunpack.c.l.bf16 %v1068_v39  ;;  %v974_v51 = vunpack.c.h.bf16 %v1053_v34 }
  0x45   : > { %v905_v52 = vpack.c.bf16 %v545_v44, %v545_v44  ;;  %v546_v53 = vmax.f32 %v514_v45, 0.0  ;;  %v420_v54 = vadd.f32 %v1188_v11, %v381_v46  ;;  %v382_v55 = vmul.f32 %v973_v47, %v1177_v0 }
  0x46   : > { %705 = vst.msk [vmem:[%s1210_s6 + $0x64] sm:$0xf] %vm679_vm0, %v904_v48  ;;  %v547_v56 = vmax.f32 %v515_v49, 0.0  ;;  %v383_v57 = vmul.f32 %v974_v51, %v1177_v0  ;;  %v1038_v58 = vunpack.c.h.bf16 %v1068_v39 }
  0x47   : > { %706 = vst.msk [vmem:[%s1210_s6 + $0x68] sm:$0xf] %vm679_vm0, %v905_v52  ;;  %v906_v59 = vpack.c.bf16 %v546_v53, %v546_v53  ;;  %v516_v60 = vadd.f32 %v1034_v43, %v420_v54  ;;  %v421_v61 = vadd.f32 %v1188_v11, %v382_v55 }
  0x48   : > { %v907_v62 = vpack.c.bf16 %v547_v56, %v547_v56  ;;  %v422_v63 = vadd.f32 %v1188_v11, %v383_v57 }
  0x49   : > { %707 = vst.msk [vmem:[%s1210_s6 + $0x6c] sm:$0xf] %vm679_vm0, %v906_v59  ;;  %v548_v1 = vmax.f32 %v516_v60, 0.0  ;;  %v517_v2 = vadd.f32 %v1037_v50, %v421_v61 }
  0x4a   : > { %708 = vst.msk [vmem:[%s1210_s6 + $0x70] sm:$0xf] %vm679_vm0, %v907_v62  ;;  %v518_v0 = vadd.f32 %v1038_v58, %v422_v63 }
  0x4b   : > { %v908_v3 = vpack.c.bf16 %v548_v1, %v548_v1  ;;  %v549_v4 = vmax.f32 %v517_v2, 0.0 }
  0x4c   : > { %v550_v5 = vmax.f32 %v518_v0, 0.0 }
  0x4d   : > { %709 = vst.msk [vmem:[%s1210_s6 + $0x74] sm:$0xf] %vm679_vm0, %v908_v3  ;;  %v909_v6 = vpack.c.bf16 %v549_v4, %v549_v4 }
  0x4e   : > { %v910_v7 = vpack.c.bf16 %v550_v5, %v550_v5 }
  0x4f   : > { %710 = vst.msk [vmem:[%s1210_s6 + $0x78] sm:$0xf] %vm679_vm0, %v909_v6 }
  0x50   : > { %711 = vst.msk [vmem:[%s1210_s6 + $0x7c] sm:$0xf] %vm679_vm0, %v910_v7 }
  0x51 PF: > { %s14_s17 = sadd.s32 1, %s1115_s17   ;;  %s1364_s15 = smov %s1111_s16 }
  0x52   : > { %p11_p5 = scmp.ge.s32.totalorder %s14_s17, 4   ;;  %s1365_s16 = smov %s1367_s18 }
  0x54   :  { %13 = sbr.rel (!%p11_p5) target bundleno = 2 (0x2), region = 69 }

// kernel: bottleneck_pallas.6
= control target key start
LH: loop header
LB: loop body
LE: loop exit
PB: predicated region body
PF: predicated region fallthrough
CT: control target
= control target key end

     0   :  { %s1507_s18 = smov 0   ;;  %s1509_s19 = smov 0   ;;  %s2054_s0 = inlined_call_operand.vmem [shape: bf16[2,16,16,4], index: 0, kind: input, shape index: {}]   ;;  %s2055_s1 = inlined_call_operand.vmem [shape: bf16[4,16], index: 1, kind: input, shape index: {}]   ;;  %s2056_s2 = inlined_call_operand.vmem [shape: f32[1,4], index: 2, kind: input, shape index: {}]   ;;  %s2057_s3 = inlined_call_operand.vmem [shape: f32[1,4], index: 3, kind: input, shape index: {}]   ;;  %s2058_s4 = inlined_call_operand.vmem [shape: bf16[2,16,16,16], index: 4, kind: output, shape index: {0}]   ;;  %s2059_s5 = inlined_call_operand.vmem [shape: f32[2,1,2,16], index: 5, kind: output, shape index: {1}]  }
   0x1   :  { %s1511_s20 = smov 0  }
   0x2 LB: > { %s28_s21 = sadd.s32 1, %s1471_s19  ;;  %p1203_p0 = scmp.ge.s32.totalorder %s1475_s20, 1  ;;  %s1475_s20 = sphi %s1511_s20, %s16_s20   ;;  %s1471_s19 = sphi %s1509_s19, %s2061_s19   ;;  %s1467_s18 = sphi %s1507_s18, %s2060_s18  }
   0x3   : > { %p30_p1 = scmp.ge.s32.totalorder %s28_s21, 2  ;;  %p214_p2 = scmp.lt.s32.totalorder %s1475_s20, 3 }
   0x5   : > { %s2063_s21 = smov (%p30_p1, %s28_s21), 0  ;;  %p215_p3 = pnand %p1203_p0, %p214_p2 }
   0x6   : > { %v479_v0 = vld [vmem:[%s2055_s1] sm:$0x3] (!%p215_p3)  ;;  %vm529_vm0 = vcmask (!%p215_p3), 1041408   ;;  %p260_p4 = scmp.lt.s32.totalorder (!%p215_p3), %s1467_s18, 1  ;;  %vm480_vm1 = vcmask (!%p215_p3), 31744   ;;  %vm1029_vm2 = vcmask (!%p215_p3), 125952  }
   0x7   : > { %218 = sbr.rel (%p215_p3) target bundleno = 407 (0x197), region = 36  ;;  %1427 = vmatprep.subr.msk.bf16.mxu0 (!%p215_p3), %vm529_vm0, %v479_v0  ;;  %v531_v1 = vsel (!%p215_p3), %vm529_vm0, %v479_v0, 0  ;;  %1428 = vmatprep.subr.msk.bf16.mxu1 (!%p215_p3), %vm529_vm0, %v479_v0  ;;  %v1541_v2 = vld [vmem:[%s2056_s2] ss:$0 sm:$0xff] (!%p215_p3)  ;;  %vm694_vm3 = vcmask (!%p215_p3), 130048   ;;  %vm797_vm4 = vcmask (!%p215_p3), 122880  }
   0x8   : > { %1392 = vmatpush3.bf16.msra.mxu0 (!%p215_p3), %v531_v1  ;;  %1426 = vmatpush3.bf16.msra.mxu1 (!%p215_p3), %v531_v1  ;;  %v1550_v11 = vld [vmem:[%s2057_s3] ss:$0 sm:$0xff] (!%p215_p3) }
   0xe   : > { %s2065_s18 = smov (!%p260_p4, %s1467_s18), 1 }
   0xf   : > { %s1261_s24 = sshll.u32 %s2065_s18, 7  ;;  %s1208_s10 = sshll.u32 %s2065_s18, 1 }
  0x10   : > { %s1536_s27 = scalar_lea.vmem %s2054_s0, %s1261_s24  ;;  %s1657_s9 = scalar_lea.vmem %s2058_s4, %s1261_s24 }
  0x11   : > { %v1296_v3 = vld [vmem:[%s1536_s27] sm:$0xff]   ;;  %v1359_v4 = vld [vmem:[%s1536_s27 + $0x8] sm:$0xff]   ;;  %v1360_v5 = vld [vmem:[%s1536_s27 + $0x10] sm:$0xff]   ;;  %s1919_s13 = scalar_lea.vmem %s2059_s5, %s1208_s10 }
  0x12   : > { %v1297_v6 = vunpack.c.l.bf16 %v1296_v3  ;;  %v1298_v7 = vunpack.c.h.bf16 %v1296_v3  ;;  %v1301_v8 = vunpack.c.l.bf16 %v1359_v4  ;;  %v1302_v9 = vunpack.c.h.bf16 %v1359_v4  ;;  %v1361_v10 = vld [vmem:[%s1536_s27 + $0x18] sm:$0xff]   ;;  %v1362_v32 = vld [vmem:[%s1536_s27 + $0x20] sm:$0xff]   ;;  %v1363_v37 = vld [vmem:[%s1536_s27 + $0x28] sm:$0xff]  }
  0x13   : > { %v1305_v12 = vunpack.c.l.bf16 %v1360_v5  ;;  %v1306_v13 = vunpack.c.h.bf16 %v1360_v5  ;;  %v1309_v14 = vunpack.c.l.bf16 %v1361_v10  ;;  %v1310_v15 = vunpack.c.h.bf16 %v1361_v10  ;;  %v1364_v42 = vld [vmem:[%s1536_s27 + $0x30] sm:$0xff]   ;;  %v1365_v47 = vld [vmem:[%s1536_s27 + $0x38] sm:$0xff]   ;;  %v1366_v5 = vld [vmem:[%s1536_s27 + $0x40] sm:$0xff]  }
  0x14   : > { %v360_v16 = vmul.f32 %v1297_v6, %v1541_v2  ;;  %v361_v17 = vmul.f32 %v1298_v7, %v1541_v2  ;;  %v362_v18 = vmul.f32 %v1301_v8, %v1541_v2  ;;  %v363_v19 = vmul.f32 %v1302_v9, %v1541_v2 }
  0x15   : > { %v364_v20 = vmul.f32 %v1305_v12, %v1541_v2  ;;  %v365_v21 = vmul.f32 %v1306_v13, %v1541_v2  ;;  %v366_v22 = vmul.f32 %v1309_v14, %v1541_v2  ;;  %v367_v23 = vmul.f32 %v1310_v15, %v1541_v2  ;;  %v1367_v15 = vld [vmem:[%s1536_s27 + $0x48] sm:$0xff]  }
  0x16   : > { %v399_v24 = vadd.f32 %v1550_v11, %v360_v16  ;;  %v400_v25 = vadd.f32 %v1550_v11, %v361_v17  ;;  %v401_v26 = vadd.f32 %v1550_v11, %v362_v18  ;;  %v402_v27 = vadd.f32 %v1550_v11, %v363_v19 }
  0x17   : > { %v403_v28 = vadd.f32 %v1550_v11, %v364_v20  ;;  %v404_v29 = vadd.f32 %v1550_v11, %v365_v21  ;;  %v405_v30 = vadd.f32 %v1550_v11, %v366_v22  ;;  %v406_v31 = vadd.f32 %v1550_v11, %v367_v23  ;;  %v1368_v20 = vld [vmem:[%s1536_s27 + $0x50] sm:$0xff]  }
  0x18   : > { %v431_v33 = vmax.f32 %v399_v24, 0.0  ;;  %v432_v34 = vmax.f32 %v400_v25, 0.0  ;;  %v433_v35 = vmax.f32 %v401_v26, 0.0  ;;  %v434_v36 = vmax.f32 %v402_v27, 0.0  ;;  %v1369_v24 = vld [vmem:[%s1536_s27 + $0x58] sm:$0xff]  }
  0x19   : > { %v435_v38 = vmax.f32 %v403_v28, 0.0  ;;  %v436_v39 = vmax.f32 %v404_v29, 0.0  ;;  %v437_v40 = vmax.f32 %v405_v30, 0.0  ;;  %v438_v41 = vmax.f32 %v406_v31, 0.0 }
  0x1a   : > { %v463_v43 = vpack.c.bf16 %v432_v34, %v431_v33  ;;  %v464_v44 = vpack.c.bf16 %v434_v36, %v433_v35  ;;  %v1313_v45 = vunpack.c.l.bf16 %v1362_v32  ;;  %v1314_v46 = vunpack.c.h.bf16 %v1362_v32 }
  0x1b   : > { %v465_v48 = vpack.c.bf16 %v436_v39, %v435_v38  ;;  %v466_v49 = vpack.c.bf16 %v438_v41, %v437_v40  ;;  %v1317_v50 = vunpack.c.l.bf16 %v1363_v37  ;;  %v1318_v51 = vunpack.c.h.bf16 %v1363_v37  ;;  %v1370_v41 = vld [vmem:[%s1536_s27 + $0x60] sm:$0xff]  }
  0x1c   : > { %1393 = vmatprep.mubr.msk.bf16.mxu0 %vm480_vm1, %v463_v43  ;;  %v368_v52 = vmul.f32 %v1313_v45, %v1541_v2  ;;  %v369_v53 = vmul.f32 %v1314_v46, %v1541_v2  ;;  %v1321_v54 = vunpack.c.l.bf16 %v1364_v42  ;;  %v1322_v55 = vunpack.c.h.bf16 %v1364_v42 }
  0x1d   : > { %1394 = vmatmul.mubr.msk.bf16.vlgmr.msra.gmra.mrb[0].mxu0 %vm480_vm1, %v464_v44  ;;  %v370_v56 = vmul.f32 %v1317_v50, %v1541_v2  ;;  %v371_v57 = vmul.f32 %v1318_v51, %v1541_v2  ;;  %v1325_v58 = vunpack.c.l.bf16 %v1365_v47  ;;  %v1326_v59 = vunpack.c.h.bf16 %v1365_v47 }
  0x1e   : > { %1397 = vmatprep.mubr.msk.bf16.mxu0 %vm480_vm1, %v465_v48  ;;  %v407_v60 = vadd.f32 %v1550_v11, %v368_v52  ;;  %v408_v61 = vadd.f32 %v1550_v11, %v369_v53  ;;  %v372_v62 = vmul.f32 %v1321_v54, %v1541_v2  ;;  %v373_v63 = vmul.f32 %v1322_v55, %v1541_v2  ;;  %v1371_v54 = vld [vmem:[%s1536_s27 + $0x68] sm:$0xff]  }
  0x1f   : > { %v409_v0 = vadd.f32 %v1550_v11, %v370_v56  ;;  %v410_v1 = vadd.f32 %v1550_v11, %v371_v57  ;;  %v374_v3 = vmul.f32 %v1325_v58, %v1541_v2  ;;  %v375_v4 = vmul.f32 %v1326_v59, %v1541_v2  ;;  %v1372_v59 = vld [vmem:[%s1536_s27 + $0x70] sm:$0xff]  }
  0x20   : > { %v439_v6 = vmax.f32 %v407_v60, 0.0  ;;  %v440_v7 = vmax.f32 %v408_v61, 0.0  ;;  %v411_v8 = vadd.f32 %v1550_v11, %v372_v62  ;;  %v412_v9 = vadd.f32 %v1550_v11, %v373_v63 }
  0x21   : > { %v441_v10 = vmax.f32 %v409_v0, 0.0  ;;  %v442_v12 = vmax.f32 %v410_v1, 0.0  ;;  %v1591_v13 = vadd.f32 %v1550_v11, %v374_v3  ;;  %v1594_v14 = vadd.f32 %v1550_v11, %v375_v4 }
  0x22   : > { %v467_v16 = vpack.c.bf16 %v440_v7, %v439_v6  ;;  %v443_v17 = vmax.f32 %v411_v8, 0.0  ;;  %v444_v18 = vmax.f32 %v412_v9, 0.0  ;;  %v1329_v19 = vunpack.c.l.bf16 %v1366_v5  ;;  %v1373_v9 = vld [vmem:[%s1536_s27 + $0x78] sm:$0xff]  }
  0x23   : > { %v468_v21 = vpack.c.bf16 %v442_v12, %v441_v10  ;;  %v445_v22 = vmax.f32 %v1591_v13, 0.0  ;;  %v1330_v23 = vunpack.c.h.bf16 %v1366_v5  ;;  %v446_v25 = vmax.f32 %v1594_v14, 0.0 }
  0x24   : > { %v376_v26 = vmul.f32 %v1329_v19, %v1541_v2  ;;  %v1333_v27 = vunpack.c.l.bf16 %v1367_v15  ;;  %v1334_v28 = vunpack.c.h.bf16 %v1367_v15  ;;  %v469_v29 = vpack.c.bf16 %v444_v18, %v443_v17 }
  0x25   : > { %1398 = vmatmul.mubr.msk.bf16.gmra.mrb[4].mxu0 %vm480_vm1, %v466_v49  ;;  %v377_v30 = vmul.f32 %v1330_v23, %v1541_v2  ;;  %v1337_v31 = vunpack.c.l.bf16 %v1368_v20  ;;  %v1338_v32 = vunpack.c.h.bf16 %v1368_v20  ;;  %v1341_v36 = vunpack.c.l.bf16 %v1369_v24 }
  0x26   : > { %1401 = vmatprep.mubr.msk.bf16.mxu0 %vm480_vm1, %v467_v16  ;;  %v415_v33 = vadd.f32 %v1550_v11, %v376_v26  ;;  %v378_v34 = vmul.f32 %v1333_v27, %v1541_v2  ;;  %v379_v35 = vmul.f32 %v1334_v28, %v1541_v2  ;;  %v1342_v40 = vunpack.c.h.bf16 %v1369_v24 }
  0x27   : > { %v416_v37 = vadd.f32 %v1550_v11, %v377_v30  ;;  %v380_v38 = vmul.f32 %v1337_v31, %v1541_v2  ;;  %v381_v39 = vmul.f32 %v1338_v32, %v1541_v2  ;;  %v382_v45 = vmul.f32 %v1341_v36, %v1541_v2 }
  0x28   : > { %v447_v42 = vmax.f32 %v415_v33, 0.0  ;;  %v417_v43 = vadd.f32 %v1550_v11, %v378_v34  ;;  %v418_v44 = vadd.f32 %v1550_v11, %v379_v35  ;;  %v383_v49 = vmul.f32 %v1342_v40, %v1541_v2 }
  0x29   : > { %v448_v46 = vmax.f32 %v416_v37, 0.0  ;;  %v419_v47 = vadd.f32 %v1550_v11, %v380_v38  ;;  %v420_v48 = vadd.f32 %v1550_v11, %v381_v39  ;;  %v421_v52 = vadd.f32 %v1550_v11, %v382_v45 }
  0x2a   : > { %v449_v50 = vmax.f32 %v417_v43, 0.0  ;;  %v450_v51 = vmax.f32 %v418_v44, 0.0  ;;  %v1345_v53 = vunpack.c.l.bf16 %v1370_v41  ;;  %v422_v58 = vadd.f32 %v1550_v11, %v383_v49 }
  0x2b   : > { %v471_v55 = vpack.c.bf16 %v448_v46, %v447_v42  ;;  %v451_v56 = vmax.f32 %v419_v47, 0.0  ;;  %v452_v57 = vmax.f32 %v420_v48, 0.0  ;;  %v453_v61 = vmax.f32 %v421_v52, 0.0 }
  0x2c   : > { %v472_v60 = vpack.c.bf16 %v450_v51, %v449_v50  ;;  %v1346_v62 = vunpack.c.h.bf16 %v1370_v41  ;;  %v384_v63 = vmul.f32 %v1345_v53, %v1541_v2  ;;  %v454_v1 = vmax.f32 %v422_v58, 0.0 }
  0x2d   : > { %1402 = vmatmul.mubr.msk.bf16.gmra.mrb[8].mxu0 %vm480_vm1, %v468_v21  ;;  %1409 = vmatprep.mubr.msk.bf16.mxu1 %vm480_vm1, %v471_v55  ;;  %v473_v0 = vpack.c.bf16 %v452_v57, %v451_v56  ;;  %v1349_v3 = vunpack.c.l.bf16 %v1371_v54  ;;  %v1350_v4 = vunpack.c.h.bf16 %v1371_v54  ;;  %v1353_v7 = vunpack.c.l.bf16 %v1372_v59 }
  0x2e   : > { %1405 = vmatprep.mubr.msk.bf16.mxu0 %vm480_vm1, %v469_v29  ;;  %1410 = vmatmul.mubr.msk.bf16.vlgmr.msra.gmra.mrb[0].mxu1 %vm480_vm1, %v472_v60  ;;  %v385_v5 = vmul.f32 %v1346_v62, %v1541_v2  ;;  %v423_v6 = vadd.f32 %v1550_v11, %v384_v63  ;;  %v1354_v8 = vunpack.c.h.bf16 %v1372_v59  ;;  %v470_v18 = vpack.c.bf16 %v446_v25, %v445_v22 }
  0x2f   : > { %1413 = vmatprep.mubr.msk.bf16.mxu1 %vm480_vm1, %v473_v0  ;;  %v386_v10 = vmul.f32 %v1349_v3, %v1541_v2  ;;  %v387_v12 = vmul.f32 %v1350_v4, %v1541_v2  ;;  %v388_v16 = vmul.f32 %v1353_v7, %v1541_v2  ;;  %v474_v19 = vpack.c.bf16 %v454_v1, %v453_v61 }
  0x30   : > { %v424_v14 = vadd.f32 %v1550_v11, %v385_v5  ;;  %v455_v15 = vmax.f32 %v423_v6, 0.0  ;;  %v389_v17 = vmul.f32 %v1354_v8, %v1541_v2  ;;  %v1357_v20 = vunpack.c.l.bf16 %v1373_v9 }
  0x31   : > { %v425_v23 = vadd.f32 %v1550_v11, %v386_v10  ;;  %v426_v24 = vadd.f32 %v1550_v11, %v387_v12  ;;  %v1358_v26 = vunpack.c.h.bf16 %v1373_v9  ;;  %v427_v27 = vadd.f32 %v1550_v11, %v388_v16 }
  0x32   : > { %v456_v21 = vmax.f32 %v424_v14, 0.0  ;;  %v428_v28 = vadd.f32 %v1550_v11, %v389_v17  ;;  %v390_v22 = vmul.f32 %v1357_v20, %v1541_v2 }
  0x33   : > { %v457_v30 = vmax.f32 %v425_v23, 0.0  ;;  %v458_v13 = vmax.f32 %v426_v24, 0.0  ;;  %v391_v25 = vmul.f32 %v1358_v26, %v1541_v2  ;;  %v459_v31 = vmax.f32 %v427_v27, 0.0 }
  0x34   : > { %v475_v29 = vpack.c.bf16 %v456_v21, %v455_v15  ;;  %v460_v32 = vmax.f32 %v428_v28, 0.0  ;;  %v429_v34 = vadd.f32 %v1550_v11, %v390_v22 }
  0x35   : > { %1406 = vmatmul.mubr.msk.bf16.gmra.mrb[12].mxu0 %vm480_vm1, %v470_v18  ;;  %v476_v33 = vpack.c.bf16 %v458_v13, %v457_v30  ;;  %v430_v35 = vadd.f32 %v1550_v11, %v391_v25 }
  0x36   : > { %1414 = vmatmul.mubr.msk.bf16.gmra.mrb[4].mxu1 %vm480_vm1, %v474_v19  ;;  %v477_v36 = vpack.c.bf16 %v460_v32, %v459_v31  ;;  %v461_v37 = vmax.f32 %v429_v34, 0.0 }
  0x37   : > { %1417 = vmatprep.mubr.msk.bf16.mxu1 %vm480_vm1, %v475_v29  ;;  %v462_v38 = vmax.f32 %v430_v35, 0.0 }
  0x39   : > { %v478_v39 = vpack.c.bf16 %v462_v38, %v461_v37 }
  0x3e   : > { %1418 = vmatmul.mubr.msk.bf16.gmra.mrb[8].mxu1 %vm480_vm1, %v476_v33 }
  0x3f   : > { %1421 = vmatprep.mubr.msk.bf16.mxu1 %vm480_vm1, %v477_v36 }
  0x46   : > { %1422 = vmatmul.mubr.msk.bf16.gmra.mrb[12].mxu1 %vm480_vm1, %v478_v39 }
  0xf0   : > { %v1659_v2 = vpop.f32.mrb[0].mxu0 }
  0xf1   : > { %v1265_v11 = vpack.c.bf16 %v1659_v2, %v1659_v2  ;;  %v1663_v40 = vpop.f32.mrb[1].mxu0  ;;  %v698_v49 = vsel %vm694_vm3, %v1659_v2, 0.0 }
  0xf2   : > { %v1263_v41 = vpack.c.bf16 %v1663_v40, %v1663_v40  ;;  %v1667_v42 = vpop.f32.mrb[2].mxu0  ;;  %v695_v45 = vsel %vm694_vm3, %v1663_v40, 0.0 }
  0xf3   : > { %1032 = vst.msk [vmem:[%s1657_s9 + $0x8] sm:$0xf] %vm1029_vm2, %v1265_v11  ;;  %v1266_v43 = vpack.c.bf16 %v1667_v42, %v1667_v42  ;;  %v1673_v44 = vpop.f32.mrb[3].mxu0  ;;  %v700_v51 = vsel %vm694_vm3, %v1667_v42, 0.0 }
  0xf4   : > { %1030 = vst.msk [vmem:[%s1657_s9] sm:$0xf] %vm1029_vm2, %v1263_v41  ;;  %v696_v46 = vsel %vm694_vm3, %v1673_v44, 0.0  ;;  %v1264_v47 = vpack.c.bf16 %v1673_v44, %v1673_v44 }
  0xf5   : > { %1033 = vst.msk [vmem:[%s1657_s9 + $0xc] sm:$0xf] %vm1029_vm2, %v1266_v43  ;;  %v697_v48 = vadd.f32 %v696_v46, %v695_v45 }
  0xf6   : > { %1031 = vst.msk [vmem:[%s1657_s9 + $0x4] sm:$0xf] %vm1029_vm2, %v1264_v47 }
  0xf7   : > { %v699_v50 = vadd.f32 %v698_v49, %v697_v48 }
  0xf8   : > { %v1691_v52 = vpop.f32.mrb[4].mxu0 }
  0xf9   : > { %v1269_v53 = vpack.c.bf16 %v1691_v52, %v1691_v52  ;;  %v1695_v54 = vpop.f32.mrb[5].mxu0  ;;  %v701_v55 = vadd.f32 %v700_v51, %v699_v50  ;;  %v706_v1 = vsel %vm694_vm3, %v1691_v52, 0.0 }
  0xfa   : > { %v702_v56 = vsel %vm694_vm3, %v1695_v54, 0.0  ;;  %v1267_v57 = vpack.c.bf16 %v1695_v54, %v1695_v54  ;;  %v1701_v58 = vpop.f32.mrb[6].mxu0 }
  0xfb   : > { %1036 = vst.msk [vmem:[%s1657_s9 + $0x18] sm:$0xf] %vm1029_vm2, %v1269_v53  ;;  %v703_v59 = vadd.f32 %v702_v56, %v701_v55  ;;  %v1270_v60 = vpack.c.bf16 %v1701_v58, %v1701_v58  ;;  %v1707_v61 = vpop.f32.mrb[7].mxu0  ;;  %v708_v4 = vsel %vm694_vm3, %v1701_v58, 0.0 }
  0xfc   : > { %1034 = vst.msk [vmem:[%s1657_s9 + $0x10] sm:$0xf] %vm1029_vm2, %v1267_v57  ;;  %v704_v62 = vsel %vm694_vm3, %v1707_v61, 0.0  ;;  %v1268_v63 = vpack.c.bf16 %v1707_v61, %v1707_v61 }
  0xfd   : > { %1037 = vst.msk [vmem:[%s1657_s9 + $0x1c] sm:$0xf] %vm1029_vm2, %v1270_v60  ;;  %v705_v0 = vadd.f32 %v704_v62, %v703_v59 }
  0xfe   : > { %1035 = vst.msk [vmem:[%s1657_s9 + $0x14] sm:$0xf] %vm1029_vm2, %v1268_v63 }
  0xff   : > { %v707_v3 = vadd.f32 %v706_v1, %v705_v0 }
 0x100   : > { %v1723_v5 = vpop.f32.mrb[8].mxu0 }
 0x101   : > { %v1273_v6 = vpack.c.bf16 %v1723_v5, %v1723_v5  ;;  %v1727_v7 = vpop.f32.mrb[9].mxu0  ;;  %v709_v8 = vadd.f32 %v708_v4, %v707_v3  ;;  %v1729_v9 = vpop.f32.mrb[0].mxu1  ;;  %v714_v30 = vsel %vm694_vm3, %v1723_v5, 0.0 }
 0x102   : > { %v710_v10 = vsel %vm694_vm3, %v1727_v7, 0.0  ;;  %v1271_v12 = vpack.c.bf16 %v1727_v7, %v1727_v7  ;;  %v1735_v14 = vpop.f32.mrb[10].mxu0  ;;  %v1281_v15 = vpack.c.bf16 %v1729_v9, %v1729_v9  ;;  %v1739_v16 = vpop.f32.mrb[1].mxu1 }
 0x103   : > { %1040 = vst.msk [vmem:[%s1657_s9 + $0x28] sm:$0xf] %vm1029_vm2, %v1273_v6  ;;  %v711_v17 = vadd.f32 %v710_v10, %v709_v8  ;;  %v1274_v18 = vpack.c.bf16 %v1735_v14, %v1735_v14  ;;  %v1745_v19 = vpop.f32.mrb[11].mxu0  ;;  %v1747_v20 = vpop.f32.mrb[2].mxu1  ;;  %v1279_v24 = vpack.c.bf16 %v1739_v16, %v1739_v16  ;;  %v716_v22 = vsel %vm694_vm3, %v1735_v14, 0.0 }
 0x104   : > { %1038 = vst.msk [vmem:[%s1657_s9 + $0x20] sm:$0xf] %vm1029_vm2, %v1271_v12  ;;  %v712_v21 = vsel %vm694_vm3, %v1745_v19, 0.0  ;;  %v1272_v23 = vpack.c.bf16 %v1745_v19, %v1745_v19  ;;  %1048 = vst.msk [vmem:[%s1657_s9 + $0x48] sm:$0xf] %vm1029_vm2, %v1281_v15  ;;  %v1759_v26 = vpop.f32.mrb[3].mxu1  ;;  %v1282_v28 = vpack.c.bf16 %v1747_v20, %v1747_v20 }
 0x105   : > { %1041 = vst.msk [vmem:[%s1657_s9 + $0x2c] sm:$0xf] %vm1029_vm2, %v1274_v18  ;;  %v713_v27 = vadd.f32 %v712_v21, %v711_v17  ;;  %v1280_v29 = vpack.c.bf16 %v1759_v26, %v1759_v26  ;;  %1046 = vst.msk [vmem:[%s1657_s9 + $0x40] sm:$0xf] %vm1029_vm2, %v1279_v24  ;;  %v726_v59 = vsel %vm694_vm3, %v1739_v16, 0.0  ;;  %v728_v6 = vsel %vm694_vm3, %v1759_v26, 0.0 }
 0x106   : > { %1039 = vst.msk [vmem:[%s1657_s9 + $0x24] sm:$0xf] %vm1029_vm2, %v1272_v23  ;;  %1049 = vst.msk [vmem:[%s1657_s9 + $0x4c] sm:$0xf] %vm1029_vm2, %v1282_v28  ;;  %v730_v17 = vsel %vm694_vm3, %v1729_v9, 0.0  ;;  %v732_v21 = vsel %vm694_vm3, %v1747_v20, 0.0 }
 0x107   : > { %v715_v13 = vadd.f32 %v714_v30, %v713_v27  ;;  %1047 = vst.msk [vmem:[%s1657_s9 + $0x44] sm:$0xf] %vm1029_vm2, %v1280_v29 }
 0x108   : > { %v1779_v25 = vpop.f32.mrb[12].mxu0 }
 0x109   : > { %v1277_v31 = vpack.c.bf16 %v1779_v25, %v1779_v25  ;;  %v1783_v32 = vpop.f32.mrb[13].mxu0  ;;  %v717_v33 = vadd.f32 %v716_v22, %v715_v13  ;;  %v1785_v34 = vpop.f32.mrb[4].mxu1  ;;  %v722_v55 = vsel %vm694_vm3, %v1779_v25, 0.0 }
 0x10a   : > { %v718_v35 = vsel %vm694_vm3, %v1783_v32, 0.0  ;;  %v1275_v36 = vpack.c.bf16 %v1783_v32, %v1783_v32  ;;  %v1791_v37 = vpop.f32.mrb[14].mxu0  ;;  %v1285_v38 = vpack.c.bf16 %v1785_v34, %v1785_v34  ;;  %v1795_v39 = vpop.f32.mrb[5].mxu1 }
 0x10b   : > { %1044 = vst.msk [vmem:[%s1657_s9 + $0x38] sm:$0xf] %vm1029_vm2, %v1277_v31  ;;  %v719_v11 = vadd.f32 %v718_v35, %v717_v33  ;;  %v1278_v41 = vpack.c.bf16 %v1791_v37, %v1791_v37  ;;  %v1801_v43 = vpop.f32.mrb[15].mxu0  ;;  %v1803_v45 = vpop.f32.mrb[6].mxu1  ;;  %v1283_v48 = vpack.c.bf16 %v1795_v39, %v1795_v39  ;;  %v724_v57 = vsel %vm694_vm3, %v1791_v37, 0.0 }
 0x10c   : > { %1042 = vst.msk [vmem:[%s1657_s9 + $0x30] sm:$0xf] %vm1029_vm2, %v1275_v36  ;;  %v720_v46 = vsel %vm694_vm3, %v1801_v43, 0.0  ;;  %v1276_v47 = vpack.c.bf16 %v1801_v43, %v1801_v43  ;;  %1052 = vst.msk [vmem:[%s1657_s9 + $0x58] sm:$0xf] %vm1029_vm2, %v1285_v38  ;;  %v1815_v49 = vpop.f32.mrb[7].mxu1  ;;  %v1286_v51 = vpack.c.bf16 %v1803_v45, %v1803_v45 }
 0x10d   : > { %1045 = vst.msk [vmem:[%s1657_s9 + $0x3c] sm:$0xf] %vm1029_vm2, %v1278_v41  ;;  %v721_v50 = vadd.f32 %v720_v46, %v719_v11  ;;  %v1284_v53 = vpack.c.bf16 %v1815_v49, %v1815_v49  ;;  %1050 = vst.msk [vmem:[%s1657_s9 + $0x50] sm:$0xf] %vm1029_vm2, %v1283_v48  ;;  %v734_v23 = vsel %vm694_vm3, %v1795_v39, 0.0  ;;  %v736_v31 = vsel %vm694_vm3, %v1815_v49, 0.0 }
 0x10e   : > { %1043 = vst.msk [vmem:[%s1657_s9 + $0x34] sm:$0xf] %vm1029_vm2, %v1276_v47  ;;  %1053 = vst.msk [vmem:[%s1657_s9 + $0x5c] sm:$0xf] %vm1029_vm2, %v1286_v51  ;;  %v738_v11 = vsel %vm694_vm3, %v1785_v34, 0.0  ;;  %v740_v46 = vsel %vm694_vm3, %v1803_v45, 0.0 }
 0x10f   : > { %v723_v56 = vadd.f32 %v722_v55, %v721_v50  ;;  %1051 = vst.msk [vmem:[%s1657_s9 + $0x54] sm:$0xf] %vm1029_vm2, %v1284_v53 }
 0x111   : > { %v725_v60 = vadd.f32 %v724_v57, %v723_v56  ;;  %v1837_v62 = vpop.f32.mrb[8].mxu1 }
 0x112   : > { %v1289_v63 = vpack.c.bf16 %v1837_v62, %v1837_v62  ;;  %v1841_v0 = vpop.f32.mrb[9].mxu1  ;;  %v746_v55 = vsel %vm694_vm3, %v1837_v62, 0.0 }
 0x113   : > { %v727_v1 = vadd.f32 %v726_v59, %v725_v60  ;;  %v1287_v3 = vpack.c.bf16 %v1841_v0, %v1841_v0  ;;  %v1845_v4 = vpop.f32.mrb[10].mxu1  ;;  %v742_v47 = vsel %vm694_vm3, %v1841_v0, 0.0 }
 0x114   : > { %1056 = vst.msk [vmem:[%s1657_s9 + $0x68] sm:$0xf] %vm1029_vm2, %v1289_v63  ;;  %v1290_v8 = vpack.c.bf16 %v1845_v4, %v1845_v4  ;;  %v1853_v10 = vpop.f32.mrb[11].mxu1  ;;  %v748_v57 = vsel %vm694_vm3, %v1845_v4, 0.0 }
 0x115   : > { %v729_v12 = vadd.f32 %v728_v6, %v727_v1  ;;  %1054 = vst.msk [vmem:[%s1657_s9 + $0x60] sm:$0xf] %vm1029_vm2, %v1287_v3  ;;  %v1288_v15 = vpack.c.bf16 %v1853_v10, %v1853_v10  ;;  %v744_v51 = vsel %vm694_vm3, %v1853_v10, 0.0 }
 0x116   : > { %1057 = vst.msk [vmem:[%s1657_s9 + $0x6c] sm:$0xf] %vm1029_vm2, %v1290_v8 }
 0x117   : > { %v731_v18 = vadd.f32 %v730_v17, %v729_v12  ;;  %1055 = vst.msk [vmem:[%s1657_s9 + $0x64] sm:$0xf] %vm1029_vm2, %v1288_v15 }
 0x119   : > { %v733_v24 = vadd.f32 %v732_v21, %v731_v18  ;;  %v1869_v27 = vpop.f32.mrb[12].mxu1 }
 0x11a   : > { %v1293_v28 = vpack.c.bf16 %v1869_v27, %v1869_v27  ;;  %v1873_v29 = vpop.f32.mrb[13].mxu1  ;;  %v754_v6 = vsel %vm694_vm3, %v1869_v27, 0.0 }
 0x11b   : > { %v735_v30 = vadd.f32 %v734_v23, %v733_v24  ;;  %v1291_v13 = vpack.c.bf16 %v1873_v29, %v1873_v29  ;;  %v1877_v22 = vpop.f32.mrb[14].mxu1  ;;  %v750_v59 = vsel %vm694_vm3, %v1873_v29, 0.0 }
 0x11c   : > { %1060 = vst.msk [vmem:[%s1657_s9 + $0x78] sm:$0xf] %vm1029_vm2, %v1293_v28  ;;  %v1294_v33 = vpack.c.bf16 %v1877_v22, %v1877_v22  ;;  %v1885_v35 = vpop.f32.mrb[15].mxu1  ;;  %v756_v12 = vsel %vm694_vm3, %v1877_v22, 0.0 }
 0x11d   : > { %v737_v36 = vadd.f32 %v736_v31, %v735_v30  ;;  %1058 = vst.msk [vmem:[%s1657_s9 + $0x70] sm:$0xf] %vm1029_vm2, %v1291_v13  ;;  %v1292_v38 = vpack.c.bf16 %v1885_v35, %v1885_v35  ;;  %v752_v1 = vsel %vm694_vm3, %v1885_v35, 0.0 }
 0x11e   : > { %1061 = vst.msk [vmem:[%s1657_s9 + $0x7c] sm:$0xf] %vm1029_vm2, %v1294_v33 }
 0x11f   : > { %v739_v41 = vadd.f32 %v738_v11, %v737_v36  ;;  %1059 = vst.msk [vmem:[%s1657_s9 + $0x74] sm:$0xf] %vm1029_vm2, %v1292_v38 }
 0x121   : > { %v741_v48 = vadd.f32 %v740_v46, %v739_v41 }
 0x123   : > { %v743_v50 = vadd.f32 %v742_v47, %v741_v48 }
 0x125   : > { %v745_v53 = vadd.f32 %v744_v51, %v743_v50 }
 0x127   : > { %v747_v56 = vadd.f32 %v746_v55, %v745_v53 }
 0x129   : > { %v749_v60 = vadd.f32 %v748_v57, %v747_v56 }
 0x12b   : > { %v751_v63 = vadd.f32 %v750_v59, %v749_v60 }
 0x12d   : > { %v753_v3 = vadd.f32 %v752_v1, %v751_v63 }
 0x12f   : > { %v755_v8 = vadd.f32 %v754_v6, %v753_v3 }
 0x131   : > { %v757_v15 = vadd.f32 %v756_v12, %v755_v8 }
 0x133   : > { %v758_v17 = vrot.slane %v757_v15, 4 }
 0x135   : > { %v759_v18 = vadd.f32 %v758_v17, %v757_v15 }
 0x137   : > { %v760_v21 = vrot.slane %v759_v18, 2 }
 0x139   : > { %v761_v23 = vadd.f32 %v760_v21, %v759_v18 }
 0x13b   : > { %v762_v24 = vrot.slane %v761_v23, 1 }
 0x13d   : > { %v763_v28 = vadd.f32 %v762_v24, %v761_v23 }
 0x13f   : > { %v764_v30 = vmul.f32 0.00390625, %v763_v28  ;;  %798 = vst.msk [vmem:[%s1919_s13] sm:$0x1] %vm797_vm4, %v763_v28 }
 0x141   : > { %v765_v13 = vsub.f32 %v1663_v40, %v764_v30  ;;  %v766_v31 = vsub.f32 %v1673_v44, %v764_v30  ;;  %v767_v33 = vsub.f32 %v1659_v2, %v764_v30  ;;  %v768_v36 = vsub.f32 %v1667_v42, %v764_v30 }
 0x142   : > { %v769_v38 = vsub.f32 %v1695_v54, %v764_v30  ;;  %v770_v11 = vsub.f32 %v1707_v61, %v764_v30  ;;  %v771_v41 = vsub.f32 %v1691_v52, %v764_v30  ;;  %v772_v46 = vsub.f32 %v1701_v58, %v764_v30 }
 0x143   : > { %v773_v47 = vsub.f32 %v1727_v7, %v764_v30  ;;  %v774_v48 = vsub.f32 %v1745_v19, %v764_v30  ;;  %v775_v40 = vsub.f32 %v1723_v5, %v764_v30  ;;  %v776_v44 = vsub.f32 %v1735_v14, %v764_v30 }
 0x144   : > { %v777_v2 = vsub.f32 %v1783_v32, %v764_v30  ;;  %v778_v42 = vsub.f32 %v1801_v43, %v764_v30  ;;  %v779_v54 = vsub.f32 %v1779_v25, %v764_v30  ;;  %v780_v61 = vsub.f32 %v1791_v37, %v764_v30 }
 0x145   : > { %v781_v52 = vsub.f32 %v1739_v16, %v764_v30  ;;  %v782_v58 = vsub.f32 %v1759_v26, %v764_v30  ;;  %v1942_v7 = vsub.f32 %v1729_v9, %v764_v30  ;;  %v1945_v19 = vsub.f32 %v1747_v20, %v764_v30 }
 0x146   : > { %v1948_v5 = vsub.f32 %v1795_v39, %v764_v30  ;;  %v1951_v14 = vsub.f32 %v1815_v49, %v764_v30  ;;  %v1954_v25 = vsub.f32 %v1785_v34, %v764_v30  ;;  %v1957_v32 = vsub.f32 %v1803_v45, %v764_v30 }
 0x147   : > { %v1960_v16 = vsub.f32 %v1841_v0, %v764_v30  ;;  %v1963_v9 = vsub.f32 %v1853_v10, %v764_v30  ;;  %v1966_v20 = vsub.f32 %v1837_v62, %v764_v30  ;;  %v1969_v26 = vsub.f32 %v1845_v4, %v764_v30 }
 0x148   : > { %v1972_v37 = vsub.f32 %v1873_v29, %v764_v30  ;;  %v1975_v34 = vsub.f32 %v1885_v35, %v764_v30  ;;  %v1978_v39 = vsub.f32 %v1869_v27, %v764_v30  ;;  %v1981_v43 = vsub.f32 %v1877_v22, %v764_v30 }
 0x149   : > { %v799_v45 = vmul.f32 %v765_v13, %v765_v13  ;;  %v800_v49 = vmul.f32 %v766_v31, %v766_v31  ;;  %v801_v0 = vmul.f32 %v767_v33, %v767_v33  ;;  %v802_v62 = vmul.f32 %v768_v36, %v768_v36 }
 0x14a   : > { %v803_v29 = vmul.f32 %v769_v38, %v769_v38  ;;  %v804_v53 = vmul.f32 %v770_v11, %v770_v11  ;;  %v805_v56 = vmul.f32 %v771_v41, %v771_v41  ;;  %v806_v59 = vmul.f32 %v772_v46, %v772_v46 }
 0x14b   : > { %v831_v10 = vsel %vm694_vm3, %v799_v45, 0.0  ;;  %v832_v4 = vsel %vm694_vm3, %v800_v49, 0.0  ;;  %v834_v51 = vsel %vm694_vm3, %v801_v0, 0.0  ;;  %v836_v27 = vsel %vm694_vm3, %v802_v62, 0.0 }
 0x14c   : > { %v833_v50 = vadd.f32 %v832_v4, %v831_v10  ;;  %v838_v22 = vsel %vm694_vm3, %v803_v29, 0.0  ;;  %v840_v60 = vsel %vm694_vm3, %v804_v53, 0.0  ;;  %v807_v1 = vmul.f32 %v773_v47, %v773_v47 }
 0x14d   : > { %v842_v3 = vsel %vm694_vm3, %v805_v56, 0.0  ;;  %v808_v8 = vmul.f32 %v774_v48, %v774_v48  ;;  %v844_v12 = vsel %vm694_vm3, %v806_v59, 0.0  ;;  %v809_v17 = vmul.f32 %v775_v40, %v775_v40 }
 0x14e   : > { %v835_v35 = vadd.f32 %v834_v51, %v833_v50  ;;  %v846_v18 = vsel %vm694_vm3, %v807_v1, 0.0  ;;  %v810_v23 = vmul.f32 %v776_v44, %v776_v44  ;;  %v811_v30 = vmul.f32 %v777_v2, %v777_v2 }
 0x14f   : > { %v848_v24 = vsel %vm694_vm3, %v808_v8, 0.0  ;;  %v850_v13 = vsel %vm694_vm3, %v809_v17, 0.0  ;;  %v812_v33 = vmul.f32 %v778_v42, %v778_v42  ;;  %v813_v11 = vmul.f32 %v779_v54, %v779_v54 }
 0x150   : > { %v837_v55 = vadd.f32 %v836_v27, %v835_v35  ;;  %v852_v36 = vsel %vm694_vm3, %v810_v23, 0.0  ;;  %v854_v41 = vsel %vm694_vm3, %v811_v30, 0.0  ;;  %v814_v47 = vmul.f32 %v780_v61, %v780_v61 }
 0x151   : > { %v856_v48 = vsel %vm694_vm3, %v812_v33, 0.0  ;;  %v815_v44 = vmul.f32 %v781_v52, %v781_v52  ;;  %v858_v45 = vsel %vm694_vm3, %v813_v11, 0.0  ;;  %v816_v2 = vmul.f32 %v782_v58, %v782_v58 }
 0x152   : > { %v839_v57 = vadd.f32 %v838_v22, %v837_v55  ;;  %v860_v0 = vsel %vm694_vm3, %v814_v47, 0.0  ;;  %v817_v42 = vmul.f32 %v1942_v7, %v1942_v7  ;;  %v818_v61 = vmul.f32 %v1945_v19, %v1945_v19 }
 0x153   : > { %v862_v54 = vsel %vm694_vm3, %v815_v44, 0.0  ;;  %v864_v4 = vsel %vm694_vm3, %v816_v2, 0.0  ;;  %v819_v52 = vmul.f32 %v1948_v5, %v1948_v5  ;;  %v820_v51 = vmul.f32 %v1951_v14, %v1951_v14 }
 0x154   : > { %v841_v63 = vadd.f32 %v840_v60, %v839_v57  ;;  %v866_v58 = vsel %vm694_vm3, %v817_v42, 0.0  ;;  %v868_v7 = vsel %vm694_vm3, %v818_v61, 0.0  ;;  %v821_v53 = vmul.f32 %v1954_v25, %v1954_v25 }
 0x155   : > { %v870_v19 = vsel %vm694_vm3, %v819_v52, 0.0  ;;  %v822_v55 = vmul.f32 %v1957_v32, %v1957_v32  ;;  %v872_v5 = vsel %vm694_vm3, %v820_v51, 0.0  ;;  %v823_v22 = vmul.f32 %v1960_v16, %v1960_v16 }
 0x156   : > { %v843_v6 = vadd.f32 %v842_v3, %v841_v63  ;;  %v874_v14 = vsel %vm694_vm3, %v821_v53, 0.0  ;;  %v824_v59 = vmul.f32 %v1963_v9, %v1963_v9  ;;  %v825_v63 = vmul.f32 %v1966_v20, %v1966_v20 }
 0x157   : > { %v876_v25 = vsel %vm694_vm3, %v822_v55, 0.0  ;;  %v878_v32 = vsel %vm694_vm3, %v823_v22, 0.0  ;;  %v826_v3 = vmul.f32 %v1969_v26, %v1969_v26  ;;  %v827_v8 = vmul.f32 %v1972_v37, %v1972_v37 }
 0x158   : > { %v845_v15 = vadd.f32 %v844_v12, %v843_v6  ;;  %v880_v16 = vsel %vm694_vm3, %v824_v59, 0.0  ;;  %v882_v9 = vsel %vm694_vm3, %v825_v63, 0.0  ;;  %v830_v23 = vmul.f32 %v1981_v43, %v1981_v43 }
 0x159   : > { %v884_v20 = vsel %vm694_vm3, %v826_v3, 0.0  ;;  %v886_v26 = vsel %vm694_vm3, %v827_v8, 0.0 }
 0x15a   : > { %v847_v21 = vadd.f32 %v846_v18, %v845_v15  ;;  %v828_v15 = vmul.f32 %v1975_v34, %v1975_v34  ;;  %v829_v18 = vmul.f32 %v1978_v39, %v1978_v39  ;;  %v892_v34 = vsel %vm694_vm3, %v830_v23, 0.0 }
 0x15c   : > { %v849_v28 = vadd.f32 %v848_v24, %v847_v21  ;;  %v888_v37 = vsel %vm694_vm3, %v828_v15, 0.0 }
 0x15e   : > { %v851_v31 = vadd.f32 %v850_v13, %v849_v28  ;;  %v890_v28 = vsel %vm694_vm3, %v829_v18, 0.0 }
 0x160   : > { %v853_v38 = vadd.f32 %v852_v36, %v851_v31 }
 0x162   : > { %v855_v46 = vadd.f32 %v854_v41, %v853_v38 }
 0x164   : > { %v857_v40 = vadd.f32 %v856_v48, %v855_v46 }
 0x166   : > { %v859_v49 = vadd.f32 %v858_v45, %v857_v40 }
 0x168   : > { %v861_v62 = vadd.f32 %v860_v0, %v859_v49 }
 0x16a   : > { %v863_v10 = vadd.f32 %v862_v54, %v861_v62 }
 0x16c   : > { %v865_v50 = vadd.f32 %v864_v4, %v863_v10 }
 0x16e   : > { %v867_v29 = vadd.f32 %v866_v58, %v865_v50 }
 0x170   : > { %v869_v35 = vadd.f32 %v868_v7, %v867_v29 }
 0x172   : > { %v871_v27 = vadd.f32 %v870_v19, %v869_v35 }
 0x174   : > { %v873_v56 = vadd.f32 %v872_v5, %v871_v27 }
 0x176   : > { %v875_v57 = vadd.f32 %v874_v14, %v873_v56 }
 0x178   : > { %v877_v60 = vadd.f32 %v876_v25, %v875_v57 }
 0x17a   : > { %v879_v1 = vadd.f32 %v878_v32, %v877_v60 }
 0x17c   : > { %v881_v6 = vadd.f32 %v880_v16, %v879_v1 }
 0x17e   : > { %v883_v12 = vadd.f32 %v882_v9, %v881_v6 }
 0x180   : > { %v885_v17 = vadd.f32 %v884_v20, %v883_v12 }
 0x182   : > { %v887_v21 = vadd.f32 %v886_v26, %v885_v17 }
 0x184   : > { %v889_v24 = vadd.f32 %v888_v37, %v887_v21 }
 0x186   : > { %v891_v30 = vadd.f32 %v890_v28, %v889_v24 }
 0x188   : > { %v893_v13 = vadd.f32 %v892_v34, %v891_v30 }
 0x18a   : > { %v894_v31 = vrot.slane %v893_v13, 4 }
 0x18c   : > { %v895_v33 = vadd.f32 %v894_v31, %v893_v13 }
 0x18e   : > { %v896_v36 = vrot.slane %v895_v33, 2 }
 0x190   : > { %v897_v39 = vadd.f32 %v896_v36, %v895_v33 }
 0x192   : > { %v898_v38 = vrot.slane %v897_v39, 1 }
 0x194   : > { %v899_v11 = vadd.f32 %v898_v38, %v897_v39 }
 0x196   : > { %900 = vst.msk [vmem:[%s1919_s13 + $0x1] sm:$0x1] %vm797_vm4, %v899_v11 }
 0x197 PF: > { %s16_s20 = sadd.s32 1, %s1475_s20   ;;  %s2060_s18 = smov %s1471_s19 }
 0x198   : > { %p13_p5 = scmp.ge.s32.totalorder %s16_s20, 4   ;;  %s2061_s19 = smov %s2063_s21 }
 0x19a   :  { %15 = sbr.rel (!%p13_p5) target bundleno = 2 (0x2), region = 78 }

// kernel: bottleneck_pallas.5
= control target key start
LH: loop header
LB: loop body
LE: loop exit
PB: predicated region body
PF: predicated region fallthrough
CT: control target
= control target key end

     0   :  { %s4354_s24 = smov 0   ;;  %s4356_s1 = smov 0   ;;  %s5663_s0 = inlined_call_operand.vmem [shape: bf16[2,16,16,4], index: 0, kind: input, shape index: {}, may-alias: {0,1,2}]   ;;  %s5664_s1 = inlined_call_operand.vmem [shape: bf16[2,16,16,4], index: 1, kind: input, shape index: {}, may-alias: {0,1,2}]   ;;  %s5665_s2 = inlined_call_operand.vmem [shape: bf16[2,16,16,4], index: 2, kind: input, shape index: {}, may-alias: {0,1,2}]   ;;  %s5666_s3 = inlined_call_operand.vmem [shape: bf16[3,12,4], index: 3, kind: input, shape index: {}]   ;;  %s5667_s4 = inlined_call_operand.vmem [shape: f32[1,4], index: 4, kind: input, shape index: {}]   ;;  %s5668_s5 = inlined_call_operand.vmem [shape: f32[1,4], index: 5, kind: input, shape index: {}]   ;;  %s5669_s6 = inlined_call_operand.vmem [shape: bf16[2,16,16,4], index: 6, kind: output, shape index: {0}]   ;;  %s5670_s7 = inlined_call_operand.vmem [shape: f32[2,1,2,4], index: 7, kind: output, shape index: {1}]  }
   0x1   :  { %s4358_s2 = smov 0  }
   0x2 LB: > { %s30_s25 = sadd.s32 1, %s4305_s1  ;;  %p3525_p0 = scmp.ge.s32.totalorder %s4309_s2, 1  ;;  %s4309_s2 = sphi %s4358_s2, %s18_s2   ;;  %s4305_s1 = sphi %s4356_s1, %s5674_s1   ;;  %s4301_s24 = sphi %s4354_s24, %s5673_s24  }
   0x3   : > { %p32_p1 = scmp.ge.s32.totalorder %s30_s25, 2  ;;  %p324_p2 = scmp.lt.s32.totalorder %s4309_s2, 3 }
   0x5   : > { %s5676_s25 = smov (%p32_p1, %s30_s25), 0  ;;  %p325_p3 = pnand %p3525_p0, %p324_p2 }
   0x6   : > { %vm465_vm0 = vcmask (!%p325_p3), 24576   ;;  %v4311_v0 = vmov (!%p325_p3), 0   ;;  %vm775_vm1 = vcmask (!%p325_p3), 1040384   ;;  %vm776_vm2 = vcmask (!%p325_p3), 1044484   ;;  %p400_p4 = scmp.lt.s32.totalorder (!%p325_p3), %s4301_s24, 1  ;;  %s4312_s13 = smov (!%p325_p3), 4  }
   0x7   : > { %328 = sbr.rel (%p325_p3) target bundleno = 664 (0x298), region = 44  ;;  %467 = vst.msk [vmem:[#allocation2 + $0xc] sm:$0x1] (!%p325_p3), %vm465_vm0, %v4311_v0  ;;  %v3573_v1 = vcombine.low (!%p325_p3), %v4311_v0, %v4311_v0  ;;  %466 = vst.msk [vmem:[#allocation2] sm:$0x1] (!%p325_p3), %vm465_vm0, %v4311_v0  ;;  %vm907_vm3 = vcmask (!%p325_p3), 27649   ;;  %v3574_v2 = vcombine.high (!%p325_p3), %v4311_v0, %v4311_v0 }
   0x8   : > { %468 = vst.msk [vmem:[#allocation2 + $0x18] sm:$0x1] (!%p325_p3), %vm465_vm0, %v4311_v0  ;;  %469 = vst.msk [vmem:[#allocation2 + $0x24] sm:$0x1] (!%p325_p3), %vm465_vm0, %v4311_v0  ;;  %vm909_vm5 = vcmask (!%p325_p3), 27648   ;;  %vm1255_vm6 = vcmask (!%p325_p3), 1046528  }
   0x9   : > { %470 = vst.msk [vmem:[#allocation2 + $0x30] sm:$0x1] (!%p325_p3), %vm465_vm0, %v4311_v0  ;;  %471 = vst.msk [vmem:[#allocation2 + $0x3c] sm:$0x1] (!%p325_p3), %vm465_vm0, %v4311_v0  ;;  %v996_v3 = vrot.slane (!%p325_p3), %v3573_v1, 7  ;;  %v998_v5 = vrot.slane (!%p325_p3), %v3574_v2, 7 }
   0xa   : > { %472 = vst.msk [vmem:[#allocation2 + $0x48] sm:$0x1] (!%p325_p3), %vm465_vm0, %v4311_v0  ;;  %473 = vst.msk [vmem:[#allocation2 + $0x54] sm:$0x1] (!%p325_p3), %vm465_vm0, %v4311_v0  ;;  %v4419_v8 = vld [vmem:[%s5667_s4] ss:$0 sm:$0xff] (!%p325_p3) }
   0xb   : > { %474 = vst.msk [vmem:[#allocation2 + $0x60] sm:$0x1] (!%p325_p3), %vm465_vm0, %v4311_v0  ;;  %475 = vst.msk [vmem:[#allocation2 + $0x6c] sm:$0x1] (!%p325_p3), %vm465_vm0, %v4311_v0  ;;  %v997_v6 = vrot.slane (!%p325_p3), %v996_v3, 4  ;;  %v1000_v7 = vrot.slane (!%p325_p3), %v998_v5, 4 }
   0xc   : > { %476 = vst.msk [vmem:[#allocation2 + $0x78] sm:$0x1] (!%p325_p3), %vm465_vm0, %v4311_v0  ;;  %477 = vst.msk [vmem:[#allocation2 + $0x84] sm:$0x1] (!%p325_p3), %vm465_vm0, %v4311_v0  ;;  %v4438_v18 = vld [vmem:[%s5668_s5] ss:$0 sm:$0xff] (!%p325_p3) }
   0xd   : > { %478 = vst.msk [vmem:[#allocation2 + $0x90] sm:$0x1] (!%p325_p3), %vm465_vm0, %v4311_v0  ;;  %479 = vst.msk [vmem:[#allocation2 + $0x9c] sm:$0x1] (!%p325_p3), %vm465_vm0, %v4311_v0  ;;  %v4223_v36 = vld [vmem:[%s5666_s3] sm:$0x3f] (!%p325_p3)  }
   0xe   : > { %480 = vst.msk [vmem:[#allocation2 + $0xa8] sm:$0x1] %vm465_vm0, %v4311_v0  ;;  %481 = vst.msk [vmem:[#allocation2 + $0xb4] sm:$0x1] %vm465_vm0, %v4311_v0  ;;  %s5678_s24 = smov (!%p400_p4, %s4301_s24), 1  ;;  %vm1336_vm7 = vcmask 1045504  }
   0xf   : > { %482 = vst.msk [vmem:[#allocation2 + $0xc0] sm:$0x1] %vm465_vm0, %v4311_v0  ;;  %483 = vst.msk [vmem:[#allocation2 + $0xcc] sm:$0x1] %vm465_vm0, %v4311_v0  ;;  %s3766_s26 = sshll.u32 %s5678_s24, 7  ;;  %4133 = vmatprep.subr.msk.bf16.mxu0 %vm1336_vm7, %v4223_v36  ;;  %s4313_s16 = smov 8  }
  0x10   : > { %484 = vst.msk [vmem:[#allocation2 + $0xd8] sm:$0x1] %vm465_vm0, %v4311_v0  ;;  %485 = vst.msk [vmem:[#allocation2 + $0xe4] sm:$0x1] %vm465_vm0, %v4311_v0  ;;  %s4414_s29 = scalar_lea.vmem %s5663_s0, %s3766_s26  ;;  %vm1417_vm8 = vcmask 31744   ;;  %vm1466_vm9 = vcmask 64512   ;;  %s5268_s9 = scalar_lea.vmem %s5669_s6, %s3766_s26 }
  0x11   : > { %vm4400_vm4 = vmor %vm775_vm1, %vm776_vm2  ;;  %1015 = vst.msk [vmem:[#allocation2 + $0xc] sm:$0xe] %vm907_vm3, %v996_v3  ;;  %v3835_v10 = vld [vmem:[%s4414_s29] sm:$0xff]   ;;  %v3898_v11 = vld [vmem:[%s4414_s29 + $0x8] sm:$0xff]   ;;  %vm1925_vm10 = vcmask 97280   ;;  %s3534_s26 = sshll.u32 %s5678_s24, 1 }
  0x12   : > { %1012 = vst.msk [vmem:[#allocation2] sm:$0xe] %vm907_vm3, %v996_v3  ;;  %1073 = vst.msk [vmem:[#allocation2 + $0xd8] sm:$0xe] %vm907_vm3, %v996_v3  ;;  %v999_v9 = vsel %vm4400_vm4, %v997_v6, %v998_v5  ;;  %v3899_v12 = vld [vmem:[%s4414_s29 + $0x10] sm:$0xff]   ;;  %v3836_v13 = vunpack.c.l.bf16 %v3835_v10  ;;  %v3837_v14 = vunpack.c.h.bf16 %v3835_v10  ;;  %v3840_v15 = vunpack.c.l.bf16 %v3898_v11  ;;  %v3900_v17 = vld [vmem:[%s4414_s29 + $0x18] sm:$0xff]   ;;  %s5507_s12 = scalar_lea.vmem %s5670_s7, %s3534_s26 }
  0x13   : > { %1076 = vst.msk [vmem:[#allocation2 + $0xe4] sm:$0xe] %vm907_vm3, %v996_v3  ;;  %v3841_v16 = vunpack.c.h.bf16 %v3898_v11  ;;  %v3844_v19 = vunpack.c.l.bf16 %v3899_v12  ;;  %v3845_v20 = vunpack.c.h.bf16 %v3899_v12  ;;  %v3848_v21 = vunpack.c.l.bf16 %v3900_v17  ;;  %v3901_v31 = vld [vmem:[%s4414_s29 + $0x20] sm:$0xff]  }
  0x14   : > { %1016 = vst.msk [vmem:[#allocation2 + $0x10] sm:$0xf] %vm909_vm5, %v999_v9  ;;  %1013 = vst.msk [vmem:[#allocation2 + $0x4] sm:$0xf] %vm909_vm5, %v999_v9  ;;  %v3849_v22 = vunpack.c.h.bf16 %v3900_v17  ;;  %v577_v23 = vmul.f32 %v3836_v13, %v4419_v8  ;;  %v578_v24 = vmul.f32 %v3837_v14, %v4419_v8  ;;  %v579_v25 = vmul.f32 %v3840_v15, %v4419_v8 }
  0x15   : > { %1017 = vst.msk [vmem:[#allocation2 + $0x14] sm:$0x1] %vm465_vm0, %v1000_v7  ;;  %1014 = vst.msk [vmem:[#allocation2 + $0x8] sm:$0x1] %vm465_vm0, %v1000_v7  ;;  %v580_v26 = vmul.f32 %v3841_v16, %v4419_v8  ;;  %v581_v27 = vmul.f32 %v3844_v19, %v4419_v8  ;;  %v582_v28 = vmul.f32 %v3845_v20, %v4419_v8  ;;  %v3852_v47 = vunpack.c.l.bf16 %v3901_v31 }
  0x16   : > { %1074 = vst.msk [vmem:[#allocation2 + $0xdc] sm:$0xf] %vm909_vm5, %v999_v9  ;;  %1077 = vst.msk [vmem:[#allocation2 + $0xe8] sm:$0xf] %vm909_vm5, %v999_v9  ;;  %v583_v29 = vmul.f32 %v3848_v21, %v4419_v8  ;;  %v584_v30 = vmul.f32 %v3849_v22, %v4419_v8  ;;  %v615_v32 = vadd.f32 %v4438_v18, %v577_v23  ;;  %v3853_v48 = vunpack.c.h.bf16 %v3901_v31 }
  0x17   : > { %1075 = vst.msk [vmem:[#allocation2 + $0xe0] sm:$0x1] %vm465_vm0, %v1000_v7  ;;  %1078 = vst.msk [vmem:[#allocation2 + $0xec] sm:$0x1] %vm465_vm0, %v1000_v7  ;;  %v616_v33 = vadd.f32 %v4438_v18, %v578_v24  ;;  %v617_v34 = vadd.f32 %v4438_v18, %v579_v25  ;;  %v618_v35 = vadd.f32 %v4438_v18, %v580_v26 }
  0x18   : > { %v619_v37 = vadd.f32 %v4438_v18, %v581_v27  ;;  %v620_v38 = vadd.f32 %v4438_v18, %v582_v28  ;;  %v4459_v39 = vadd.f32 %v4438_v18, %v583_v29  ;;  %v647_v40 = vmax.f32 %v615_v32, 0.0  ;;  %v3902_v27 = vld [vmem:[%s4414_s29 + $0x28] sm:$0xff]  }
  0x19   : > { %v648_v41 = vmax.f32 %v616_v33, 0.0  ;;  %v649_v42 = vmax.f32 %v617_v34, 0.0  ;;  %v650_v43 = vmax.f32 %v618_v35, 0.0  ;;  %v622_v46 = vadd.f32 %v4438_v18, %v584_v30  ;;  %v4228_v28 = vld [vmem:[%s5666_s3 + $0x8] sm:$0x3f]  }
  0x1a   : > { %v651_v45 = vmax.f32 %v619_v37, 0.0  ;;  %v3770_v51 = vpack.c.bf16 %v647_v40, %v647_v40  ;;  %v585_v58 = vmul.f32 %v3852_v47, %v4419_v8  ;;  %v586_v59 = vmul.f32 %v3853_v48, %v4419_v8  ;;  %4132 = vmatprep.subr.msk.bf16.mxu1 %vm1336_vm7, %v4228_v28 }
  0x1b   : > { %v4163_v44 = vld [vmem:[#allocation2 + $0xc] sm:$0xff]   ;;  %v4165_v50 = vld [vmem:[#allocation2] sm:$0xff]   ;;  %v3771_v52 = vpack.c.bf16 %v648_v41, %v648_v41  ;;  %v3772_v53 = vpack.c.bf16 %v649_v42, %v649_v42  ;;  %v3773_v54 = vpack.c.bf16 %v650_v43, %v650_v43  ;;  %v652_v17 = vmax.f32 %v620_v38, 0.0 }
  0x1c   : > { %v4164_v49 = vld [vmem:[#allocation2 + $0x14] ss:$0 sps:$4 sm:$0x33]   ;;  %v1259_v55 = vrot.slane %v4163_v44, 1  ;;  %v3774_v57 = vpack.c.bf16 %v651_v45, %v651_v45  ;;  %v1256_v61 = vrot.slane %v4165_v50, 1  ;;  %v1337_v62 = vrot.slane %v4165_v50, 2 }
  0x1d   : > { %v4166_v56 = vld [vmem:[#allocation2 + $0x8] ss:$0 sps:$4 sm:$0x33]   ;;  %v1260_v60 = vrot.slane %v4164_v49, 1  ;;  %v1340_v63 = vrot.slane %v4163_v44, 2  ;;  %v1341_v2 = vrot.slane %v4164_v49, 2  ;;  %v3775_v24 = vpack.c.bf16 %v652_v17, %v652_v17 }
  0x1e   : > { %v1257_v0 = vrot.slane %v4166_v56, 1  ;;  %v1338_v1 = vrot.slane %v4166_v56, 2  ;;  %v778_v3 = vrot.slane %v3770_v51, 7  ;;  %v780_v6 = vrot.slane %v3771_v52, 7  ;;  %v3903_v44 = vld [vmem:[%s4414_s29 + $0x30] sm:$0xff]   ;;  %v3904_v50 = vld [vmem:[%s4414_s29 + $0x38] sm:$0xff]  }
  0x1f   : > { %v1261_v5 = vsel %vm1255_vm6, %v1259_v55, %v1260_v60  ;;  %v783_v7 = vrot.slane %v3772_v53, 7  ;;  %v785_v9 = vrot.slane %v3773_v54, 7  ;;  %v1342_v12 = vsel %vm1336_vm7, %v1340_v63, %v1341_v2  ;;  %v3905_v63 = vld [vmem:[%s4414_s29 + $0x40] sm:$0xff]  }
  0x20   : > { %1306 = vrot.lane.b32.xlu1 %v1261_v5, %s4312_s13  ;;  %v1258_v10 = vsel %vm1255_vm6, %v1256_v61, %v1257_v0  ;;  %v1339_v11 = vsel %vm1336_vm7, %v1337_v62, %v1338_v1  ;;  %v779_v13 = vrot.slane %v778_v3, 4  ;;  %908 = vst.msk [vmem:[#allocation2 + $0x18] sm:$0xe] %vm907_vm3, %v778_v3  ;;  %v782_v14 = vrot.slane %v780_v6, 4 }
  0x21   : > { %1304 = vrot.lane.b32.xlu0 %v1258_v10, %s4312_s13  ;;  %v784_v15 = vrot.slane %v783_v7, 4  ;;  %v787_v16 = vrot.slane %v785_v9, 4  ;;  %912 = vst.msk [vmem:[#allocation2 + $0x24] sm:$0xe] %vm907_vm3, %v783_v7  ;;  %v788_v20 = vrot.slane %v3774_v57, 7  ;;  %v653_v21 = vmax.f32 %v4459_v39, 0.0 }
  0x22   : > { %v781_v19 = vsel %vm4400_vm4, %v779_v13, %v780_v6  ;;  %v654_v22 = vmax.f32 %v622_v46, 0.0  ;;  %911 = vst.msk [vmem:[#allocation2 + $0x20] sm:$0x1] %vm465_vm0, %v782_v14  ;;  %v623_v25 = vadd.f32 %v4438_v18, %v585_v58  ;;  %v624_v26 = vadd.f32 %v4438_v18, %v586_v59 }
  0x23   : > { %910 = vst.msk [vmem:[#allocation2 + $0x1c] sm:$0xf] %vm909_vm5, %v781_v19  ;;  %v786_v23 = vsel %vm4400_vm4, %v784_v15, %v785_v9  ;;  %v789_v29 = vrot.slane %v788_v20, 4  ;;  %v3776_v30 = vpack.c.bf16 %v653_v21, %v653_v21  ;;  %v790_v32 = vrot.slane %v3775_v24, 7 }
  0x24   : > { %914 = vst.msk [vmem:[#allocation2 + $0x2c] sm:$0x1] %vm465_vm0, %v787_v16  ;;  %1385 = vrot.lane.b32.xlu1 %v1339_v11, %s4313_s16  ;;  %v3777_v31 = vpack.c.bf16 %v654_v22, %v654_v22  ;;  %v655_v33 = vmax.f32 %v623_v25, 0.0  ;;  %v3856_v36 = vunpack.c.l.bf16 %v3902_v27  ;;  %v656_v39 = vmax.f32 %v624_v26, 0.0 }
  0x25   : > { %913 = vst.msk [vmem:[#allocation2 + $0x28] sm:$0xf] %vm909_vm5, %v786_v23  ;;  %1387 = vrot.lane.b32.xlu0 %v1342_v12, %s4313_s16  ;;  %v793_v34 = vrot.slane %v3776_v30, 7  ;;  %v791_v37 = vsel %vm4400_vm4, %v789_v29, %v790_v32  ;;  %v792_v38 = vrot.slane %v790_v32, 4  ;;  %v3857_v54 = vunpack.c.h.bf16 %v3902_v27 }
  0x26   : > { %915 = vst.msk [vmem:[#allocation2 + $0x30] sm:$0xe] %vm907_vm3, %v788_v20  ;;  %v795_v35 = vrot.slane %v3777_v31, 7  ;;  %v4494_v40 = vpack.c.bf16 %v655_v33, %v655_v33  ;;  %v587_v47 = vmul.f32 %v3856_v36, %v4419_v8  ;;  %v4510_v53 = vpack.c.bf16 %v656_v39, %v656_v39 }
  0x27   : > { %916 = vst.msk [vmem:[#allocation2 + $0x34] sm:$0xf] %vm909_vm5, %v791_v37  ;;  %v794_v41 = vrot.slane %v793_v34, 4  ;;  %v3860_v62 = vunpack.c.l.bf16 %v3903_v44  ;;  %v588_v10 = vmul.f32 %v3857_v54, %v4419_v8  ;;  %v3861_v11 = vunpack.c.h.bf16 %v3903_v44 }
  0x28   : > { %v797_v42 = vrot.slane %v795_v35, 4  ;;  %918 = vst.msk [vmem:[#allocation2 + $0x3c] sm:$0xe] %vm907_vm3, %v793_v34  ;;  %v798_v43 = vrot.slane %v4494_v40, 7  ;;  %v625_v61 = vadd.f32 %v4438_v18, %v587_v47  ;;  %v800_v9 = vrot.slane %v4510_v53, 7 }
  0x29   : > { %917 = vst.msk [vmem:[#allocation2 + $0x38] sm:$0x1] %vm465_vm0, %v792_v38  ;;  %v796_v46 = vsel %vm4400_vm4, %v794_v41, %v795_v35  ;;  %v4168_v48 = vld [vmem:[#allocation2 + $0x20] ss:$0 sps:$4 sm:$0x33]   ;;  %v3864_v12 = vunpack.c.l.bf16 %v3904_v50  ;;  %v589_v21 = vmul.f32 %v3860_v62, %v4419_v8  ;;  %v3865_v22 = vunpack.c.h.bf16 %v3904_v50 }
  0x2a   : > { %v4167_v45 = vld [vmem:[#allocation2 + $0x18] sm:$0xff]   ;;  %920 = vst.msk [vmem:[#allocation2 + $0x44] sm:$0x1] %vm465_vm0, %v797_v42  ;;  %v1758_v55 = vrot.slane %v4168_v48, 2  ;;  %v1678_v56 = vrot.slane %v4168_v48, 1  ;;  %v657_v20 = vmax.f32 %v625_v61, 0.0  ;;  %v3868_v27 = vunpack.c.l.bf16 %v3905_v63 }
  0x2b   : > { %919 = vst.msk [vmem:[#allocation2 + $0x40] sm:$0xf] %vm909_vm5, %v796_v46  ;;  %v1757_v51 = vrot.slane %v4167_v45, 2  ;;  %v1677_v52 = vrot.slane %v4167_v45, 1  ;;  %v4173_v60 = vld [vmem:[#allocation2 + $0x18] sm:$0xff]   ;;  %v590_v30 = vmul.f32 %v3861_v11, %v4419_v8  ;;  %v591_v31 = vmul.f32 %v3864_v12, %v4419_v8  ;;  %v4548_v46 = vld [vmem:[%s4414_s29 + $0x48] sm:$0xff]  }
  0x2c   : > { %v4169_v49 = vld [vmem:[#allocation2 + $0x24] sm:$0xff]   ;;  %921 = vst.msk [vmem:[#allocation2 + $0x48] sm:$0xe] %vm907_vm3, %v798_v43  ;;  %v4170_v57 = vld [vmem:[#allocation2 + $0x2c] ss:$0 sps:$4 sm:$0x33]   ;;  %v626_v36 = vadd.f32 %v4438_v18, %v588_v10  ;;  %v627_v37 = vadd.f32 %v4438_v18, %v589_v21  ;;  %v592_v38 = vmul.f32 %v3865_v22, %v4419_v8  ;;  %v3869_v39 = vunpack.c.h.bf16 %v3905_v63 }
  0x2d   : > { %v1760_v58 = vrot.slane %v4169_v49, 2  ;;  %v1680_v59 = vrot.slane %v4169_v49, 1  ;;  %v1759_v0 = vsel %vm1336_vm7, %v1757_v51, %v1758_v55  ;;  %v1679_v1 = vsel %vm1255_vm6, %v1677_v52, %v1678_v56  ;;  %v4518_v6 = vld [vmem:[#allocation2 + $0x24] sm:$0xff]   ;;  %v4174_v16 = vld [vmem:[#allocation2 + $0x20] ss:$0 sps:$4 sm:$0x33]  }
  0x2e   : > { %v1761_v2 = vrot.slane %v4170_v57, 2  ;;  %v1681_v3 = vrot.slane %v4170_v57, 1  ;;  %v4516_v5 = vld [vmem:[#allocation2 + $0x30] sm:$0xff]   ;;  %1805 = vrot.lane.b32.xlu1 %v1759_v0, %s4313_s16  ;;  %1725 = vrot.lane.b32.xlu0 %v1679_v1, %s4312_s13  ;;  %v1262_v17 = vrot.slane %v4173_v60, 1  ;;  %v1263_v23 = vrot.slane %v4174_v16, 1 }
  0x2f   : > { %v1683_v15 = vrot.slane %v4516_v5, 1  ;;  %v1343_v24 = vrot.slane %v4173_v60, 2  ;;  %v4531_v25 = vld [vmem:[#allocation2 + $0x2c] ss:$0 sps:$4 sm:$0x33]   ;;  %v1265_v26 = vrot.slane %v4518_v6, 1  ;;  %v3780_v44 = vpack.c.bf16 %v657_v20, %v657_v20 }
  0x30   : > { %v4522_v7 = vld [vmem:[#allocation2 + $0x38] ss:$0 sps:$4 sm:$0x33]   ;;  %v1762_v13 = vsel %vm1336_vm7, %v1760_v58, %v1761_v2  ;;  %v1682_v14 = vsel %vm1255_vm6, %v1680_v59, %v1681_v3  ;;  %v1344_v28 = vrot.slane %v4174_v16, 2  ;;  %v1264_v33 = vsel %vm1255_vm6, %v1262_v17, %v1263_v23  ;;  %v4573_v63 = vld [vmem:[#allocation2 + $0x30] sm:$0xff]  }
  0x31   : > { %v1684_v19 = vrot.slane %v4522_v7, 1  ;;  %v1266_v34 = vrot.slane %v4531_v25, 1  ;;  %v4178_v35 = vld [vmem:[#allocation2 + $0x44] ss:$0 sps:$4 sm:$0x33]   ;;  %v1763_v41 = vrot.slane %v4516_v5, 2  ;;  %v593_v45 = vmul.f32 %v3868_v27, %v4419_v8 }
  0x32   : > { %1807 = vrot.lane.b32.xlu1 %v1762_v13, %s4313_s16  ;;  %1727 = vrot.lane.b32.xlu0 %v1682_v14, %s4312_s13  ;;  %v4177_v29 = vld [vmem:[#allocation2 + $0x3c] sm:$0xff]   ;;  %v1764_v42 = vrot.slane %v4522_v7, 2  ;;  %v799_v47 = vrot.slane %v798_v43, 4  ;;  %v802_v48 = vrot.slane %v800_v9, 4  ;;  %v628_v49 = vadd.f32 %v4438_v18, %v590_v30 }
  0x33   : > { %v1685_v32 = vsel %vm1255_vm6, %v1683_v15, %v1684_v19  ;;  %v629_v50 = vadd.f32 %v4438_v18, %v591_v31  ;;  %v1345_v51 = vsel %vm1336_vm7, %v1343_v24, %v1344_v28  ;;  %v1267_v52 = vsel %vm1255_vm6, %v1265_v26, %v1266_v34  ;;  %v4565_v59 = vld [vmem:[#allocation2 + $0x38] ss:$0 sps:$4 sm:$0x33]   ;;  %v4578_v10 = vld [vmem:[#allocation2 + $0x3c] sm:$0xff]   ;;  %v4601_v34 = vld [vmem:[%s4414_s29 + $0x50] sm:$0xff]  }
  0x34   : > { %v1686_v53 = vrot.slane %v4177_v29, 1  ;;  %v1687_v54 = vrot.slane %v4178_v35, 1  ;;  %v801_v55 = vsel %vm4400_vm4, %v799_v47, %v800_v9  ;;  %923 = vst.msk [vmem:[#allocation2 + $0x50] sm:$0x1] %vm465_vm0, %v802_v48  ;;  %v630_v56 = vadd.f32 %v4438_v18, %v592_v38 }
  0x35   : > { %v594_v40 = vmul.f32 %v3869_v39, %v4419_v8  ;;  %v3872_v43 = vunpack.c.l.bf16 %v4548_v46  ;;  %v1766_v57 = vrot.slane %v4177_v29, 2  ;;  %v1767_v58 = vrot.slane %v4178_v35, 2  ;;  %922 = vst.msk [vmem:[#allocation2 + $0x4c] sm:$0xf] %vm909_vm5, %v801_v55 }
  0x36   : > { %1729 = vrot.lane.b32.xlu1 %v1685_v32, %s4312_s13  ;;  %1308 = vrot.lane.b32.xlu0 %v1264_v33, %s4312_s13  ;;  %v658_v60 = vmax.f32 %v626_v36, 0.0  ;;  %v4568_v61 = vadd.f32 %v4438_v18, %v593_v45  ;;  %v1765_v62 = vsel %vm1336_vm7, %v1763_v41, %v1764_v42  ;;  %v803_v0 = vrot.slane %v3780_v44, 7  ;;  %v4583_v16 = vld [vmem:[#allocation2 + $0x44] ss:$0 sps:$4 sm:$0x33]  }
  0x37   : > { %v659_v1 = vmax.f32 %v627_v37, 0.0  ;;  %v660_v2 = vmax.f32 %v628_v49, 0.0  ;;  %v1688_v3 = vsel %vm1255_vm6, %v1686_v53, %v1687_v54  ;;  %v1346_v5 = vrot.slane %v4518_v6, 2 }
  0x38   : > { %v1347_v7 = vrot.slane %v4531_v25, 2  ;;  %v3781_v9 = vpack.c.bf16 %v658_v60, %v658_v60  ;;  %v804_v11 = vrot.slane %v803_v0, 4  ;;  %924 = vst.msk [vmem:[#allocation2 + $0x54] sm:$0xe] %vm907_vm3, %v803_v0  ;;  %v595_v14 = vmul.f32 %v3872_v43, %v4419_v8 }
  0x39   : > { %v3782_v12 = vpack.c.bf16 %v659_v1, %v659_v1  ;;  %v3783_v13 = vpack.c.bf16 %v660_v2, %v660_v2  ;;  %v1768_v15 = vsel %vm1336_vm7, %v1766_v57, %v1767_v58  ;;  %v661_v19 = vmax.f32 %v629_v50, 0.0 }
  0x3a   : > { %1389 = vrot.lane.b32.xlu1 %v1345_v51, %s4313_s16  ;;  %1310 = vrot.lane.b32.xlu0 %v1267_v52, %s4312_s13  ;;  %v805_v17 = vrot.slane %v3781_v9, 7  ;;  %v662_v20 = vmax.f32 %v630_v56, 0.0  ;;  %v1268_v6 = vrot.slane %v4573_v63, 1  ;;  %v1269_v21 = vrot.slane %v4565_v59, 1  ;;  %v3908_v52 = vld [vmem:[%s4414_s29 + $0x58] sm:$0xff]  }
  0x3b   : > { %v808_v22 = vrot.slane %v3782_v12, 7  ;;  %v810_v23 = vrot.slane %v3783_v13, 7  ;;  %v1348_v24 = vsel %vm1336_vm7, %v1346_v5, %v1347_v7  ;;  %v4590_v25 = vld [vmem:[#allocation2 + $0x50] ss:$0 sps:$4 sm:$0x33]   ;;  %v3784_v28 = vpack.c.bf16 %v661_v19, %v661_v19 }
  0x3c   : > { %v806_v26 = vsel %vm4400_vm4, %v804_v11, %v805_v17  ;;  %v807_v27 = vrot.slane %v805_v17, 4  ;;  %v4594_v29 = vld [vmem:[#allocation2 + $0x48] sm:$0xff]   ;;  %v632_v32 = vadd.f32 %v4438_v18, %v594_v40  ;;  %v3873_v33 = vunpack.c.h.bf16 %v4548_v46 }
  0x3d   : > { %925 = vst.msk [vmem:[#allocation2 + $0x58] sm:$0xf] %vm909_vm5, %v806_v26  ;;  %v809_v30 = vrot.slane %v808_v22, 4  ;;  %v812_v31 = vrot.slane %v810_v23, 4  ;;  %v1690_v35 = vrot.slane %v4590_v25, 1  ;;  %v1349_v36 = vrot.slane %v4573_v63, 2 }
  0x3e   : > { %1809 = vrot.lane.b32.xlu1 %v1765_v62, %s4313_s16  ;;  %1731 = vrot.lane.b32.xlu0 %v1688_v3, %s4312_s13  ;;  %927 = vst.msk [vmem:[#allocation2 + $0x60] sm:$0xe] %vm907_vm3, %v808_v22  ;;  %v3785_v37 = vpack.c.bf16 %v662_v20, %v662_v20  ;;  %v633_v38 = vadd.f32 %v4438_v18, %v595_v14  ;;  %v1689_v39 = vrot.slane %v4594_v29, 1  ;;  %v1350_v41 = vrot.slane %v4565_v59, 2  ;;  %v4636_v2 = vld [vmem:[#allocation2 + $0x48] sm:$0xff]  }
  0x3f   : > { %926 = vst.msk [vmem:[#allocation2 + $0x5c] sm:$0x1] %vm465_vm0, %v807_v27  ;;  %v1271_v42 = vrot.slane %v4578_v10, 1  ;;  %v811_v44 = vsel %vm4400_vm4, %v809_v30, %v810_v23  ;;  %929 = vst.msk [vmem:[#allocation2 + $0x68] sm:$0x1] %vm465_vm0, %v812_v31  ;;  %v1270_v45 = vsel %vm1255_vm6, %v1268_v6, %v1269_v21  ;;  %v1272_v46 = vrot.slane %v4583_v16, 1 }
  0x40   : > { %928 = vst.msk [vmem:[#allocation2 + $0x64] sm:$0xf] %vm909_vm5, %v811_v44  ;;  %v813_v47 = vrot.slane %v3784_v28, 7  ;;  %v1691_v48 = vsel %vm1255_vm6, %v1689_v39, %v1690_v35  ;;  %v1352_v49 = vrot.slane %v4578_v10, 2  ;;  %v596_v50 = vmul.f32 %v3873_v33, %v4419_v8 }
  0x41   : > { %v3876_v51 = vunpack.c.l.bf16 %v4601_v34  ;;  %v1353_v53 = vrot.slane %v4583_v16, 2  ;;  %v815_v55 = vrot.slane %v3785_v37, 7  ;;  %v663_v56 = vmax.f32 %v4568_v61, 0.0  ;;  %v4632_v63 = vld [vmem:[#allocation2 + $0x50] ss:$0 sps:$4 sm:$0x33]  }
  0x42   : > { %1811 = vrot.lane.b32.xlu1 %v1768_v15, %s4313_s16  ;;  %1391 = vrot.lane.b32.xlu0 %v1348_v24, %s4313_s16  ;;  %v814_v54 = vrot.slane %v813_v47, 4  ;;  %930 = vst.msk [vmem:[#allocation2 + $0x6c] sm:$0xe] %vm907_vm3, %v813_v47  ;;  %v1769_v40 = vrot.slane %v4594_v29, 2  ;;  %v1770_v43 = vrot.slane %v4590_v25, 2  ;;  %v664_v57 = vmax.f32 %v632_v32, 0.0 }
  0x43   : > { %v665_v58 = vmax.f32 %v633_v38, 0.0  ;;  %v1351_v59 = vsel %vm1336_vm7, %v1349_v36, %v1350_v41  ;;  %v1273_v60 = vsel %vm1255_vm6, %v1271_v42, %v1272_v46  ;;  %v817_v0 = vrot.slane %v815_v55, 4 }
  0x44   : > { %v4185_v62 = vld [vmem:[#allocation2 + $0x54] sm:$0xff]   ;;  %v816_v61 = vsel %vm4400_vm4, %v814_v54, %v815_v55  ;;  %v634_v3 = vadd.f32 %v4438_v18, %v596_v50  ;;  %v3877_v5 = vunpack.c.h.bf16 %v4601_v34  ;;  %v3880_v7 = vunpack.c.l.bf16 %v3908_v52 }
  0x45   : > { %931 = vst.msk [vmem:[#allocation2 + $0x70] sm:$0xf] %vm909_vm5, %v816_v61  ;;  %v1692_v9 = vrot.slane %v4185_v62, 1  ;;  %v3786_v10 = vpack.c.bf16 %v663_v56, %v663_v56  ;;  %v3787_v11 = vpack.c.bf16 %v664_v57, %v664_v57  ;;  %v3881_v12 = vunpack.c.h.bf16 %v3908_v52  ;;  %v4661_v31 = vld [vmem:[#allocation2 + $0x54] sm:$0xff]   ;;  %v3909_v52 = vld [vmem:[%s4414_s29 + $0x60] sm:$0xff]  }
  0x46   : > { %1733 = vrot.lane.b32.xlu1 %v1691_v48, %s4312_s13  ;;  %1312 = vrot.lane.b32.xlu0 %v1270_v45, %s4312_s13  ;;  %v4186_v1 = vld [vmem:[#allocation2 + $0x5c] ss:$0 sps:$4 sm:$0x33]   ;;  %932 = vst.msk [vmem:[#allocation2 + $0x74] sm:$0x1] %vm465_vm0, %v817_v0  ;;  %v1772_v14 = vrot.slane %v4185_v62, 2  ;;  %v3788_v16 = vpack.c.bf16 %v665_v58, %v665_v58  ;;  %v1771_v17 = vsel %vm1336_vm7, %v1769_v40, %v1770_v43  ;;  %v3885_v62 = vunpack.c.h.bf16 %v3909_v52 }
  0x47   : > { %v1693_v13 = vrot.slane %v4186_v1, 1  ;;  %v1773_v15 = vrot.slane %v4186_v1, 2  ;;  %v4645_v19 = vld [vmem:[#allocation2 + $0x60] sm:$0xff]   ;;  %v4647_v20 = vld [vmem:[#allocation2 + $0x68] ss:$0 sps:$4 sm:$0x33]   ;;  %v597_v6 = vmul.f32 %v3876_v51, %v4419_v8  ;;  %v1354_v22 = vsel %vm1336_vm7, %v1352_v49, %v1353_v53 }
  0x48   : > { %v1274_v23 = vrot.slane %v4636_v2, 1  ;;  %v4653_v24 = vld [vmem:[#allocation2 + $0x5c] ss:$0 sps:$4 sm:$0x33]   ;;  %v598_v25 = vmul.f32 %v3877_v5, %v4419_v8  ;;  %v1275_v26 = vrot.slane %v4632_v63, 1  ;;  %v818_v27 = vrot.slane %v3786_v10, 7 }
  0x49   : > { %v1694_v21 = vsel %vm1255_vm6, %v1692_v9, %v1693_v13  ;;  %v820_v28 = vrot.slane %v3787_v11, 7  ;;  %v599_v29 = vmul.f32 %v3880_v7, %v4419_v8  ;;  %v1774_v30 = vsel %vm1336_vm7, %v1772_v14, %v1773_v15  ;;  %v4698_v7 = vld [vmem:[#allocation2 + $0x30] sm:$0xff]   ;;  %v4701_v11 = vld [vmem:[#allocation2 + $0x38] ss:$0 sps:$4 sm:$0x33]   ;;  %v3910_v15 = vld [vmem:[%s4414_s29 + $0x68] sm:$0xff]  }
  0x4a   : > { %1393 = vrot.lane.b32.xlu1 %v1351_v59, %s4313_s16  ;;  %1314 = vrot.lane.b32.xlu0 %v1273_v60, %s4312_s13  ;;  %v666_v32 = vmax.f32 %v634_v3, 0.0  ;;  %v823_v33 = vrot.slane %v3788_v16, 7  ;;  %v600_v34 = vmul.f32 %v3881_v12, %v4419_v8  ;;  %v1695_v35 = vrot.slane %v4645_v19, 1  ;;  %933 = vst.msk [vmem:[#allocation2 + $0x78] sm:$0xe] %vm907_vm3, %v818_v27 }
  0x4b   : > { %v1696_v36 = vrot.slane %v4647_v20, 1  ;;  %v819_v37 = vrot.slane %v818_v27, 4  ;;  %v822_v38 = vrot.slane %v820_v28, 4  ;;  %v635_v42 = vadd.f32 %v4438_v18, %v597_v6 }
  0x4c   : > { %v3789_v39 = vpack.c.bf16 %v666_v32, %v666_v32  ;;  %v824_v41 = vrot.slane %v823_v33, 4  ;;  %936 = vst.msk [vmem:[#allocation2 + $0x84] sm:$0xe] %vm907_vm3, %v823_v33  ;;  %v1355_v44 = vrot.slane %v4636_v2, 2  ;;  %v1356_v45 = vrot.slane %v4632_v63, 2  ;;  %v4684_v55 = vld [vmem:[#allocation2 + $0x6c] sm:$0xff]  }
  0x4d   : > { %v821_v46 = vsel %vm4400_vm4, %v819_v37, %v820_v28  ;;  %935 = vst.msk [vmem:[#allocation2 + $0x80] sm:$0x1] %vm465_vm0, %v822_v38  ;;  %v636_v47 = vadd.f32 %v4438_v18, %v598_v25  ;;  %v1277_v48 = vrot.slane %v4661_v31, 1  ;;  %v1278_v49 = vrot.slane %v4653_v24, 1 }
  0x4e   : > { %1813 = vrot.lane.b32.xlu1 %v1771_v17, %s4313_s16  ;;  %1735 = vrot.lane.b32.xlu0 %v1694_v21, %s4312_s13  ;;  %934 = vst.msk [vmem:[#allocation2 + $0x7c] sm:$0xf] %vm909_vm5, %v821_v46  ;;  %v825_v50 = vrot.slane %v3789_v39, 7  ;;  %v637_v51 = vadd.f32 %v4438_v18, %v599_v29  ;;  %v1697_v53 = vsel %vm1255_vm6, %v1695_v35, %v1696_v36  ;;  %v4194_v56 = vld [vmem:[#allocation2 + $0x74] ss:$0 sps:$4 sm:$0x33]   ;;  %v3884_v60 = vunpack.c.l.bf16 %v3909_v52 }
  0x4f   : > { %v1276_v54 = vsel %vm1255_vm6, %v1274_v23, %v1275_v26  ;;  %v638_v40 = vadd.f32 %v4438_v18, %v600_v34  ;;  %v1357_v58 = vsel %vm1336_vm7, %v1355_v44, %v1356_v45  ;;  %v1775_v59 = vrot.slane %v4645_v19, 2 }
  0x50   : > { %v826_v43 = vsel %vm4400_vm4, %v824_v41, %v825_v50  ;;  %v827_v57 = vrot.slane %v825_v50, 4  ;;  %v1776_v63 = vrot.slane %v4647_v20, 2  ;;  %v667_v61 = vmax.f32 %v635_v42, 0.0 }
  0x51   : > { %937 = vst.msk [vmem:[#allocation2 + $0x88] sm:$0xf] %vm909_vm5, %v826_v43  ;;  %v668_v0 = vmax.f32 %v636_v47, 0.0  ;;  %v669_v1 = vmax.f32 %v637_v51, 0.0  ;;  %v1279_v2 = vsel %vm1255_vm6, %v1277_v48, %v1278_v49  ;;  %v1698_v3 = vrot.slane %v4684_v55, 1 }
  0x52   : > { %1815 = vrot.lane.b32.xlu1 %v1774_v30, %s4313_s16  ;;  %1395 = vrot.lane.b32.xlu0 %v1354_v22, %s4313_s16  ;;  %938 = vst.msk [vmem:[#allocation2 + $0x8c] sm:$0x1] %vm465_vm0, %v827_v57  ;;  %v1699_v5 = vrot.slane %v4194_v56, 1  ;;  %v670_v9 = vmax.f32 %v638_v40, 0.0  ;;  %v1358_v10 = vrot.slane %v4661_v31, 2  ;;  %v3790_v12 = vpack.c.bf16 %v667_v61, %v667_v61 }
  0x53   : > { %v3791_v13 = vpack.c.bf16 %v668_v0, %v668_v0  ;;  %v3792_v14 = vpack.c.bf16 %v669_v1, %v669_v1  ;;  %v1359_v16 = vrot.slane %v4653_v24, 2  ;;  %v601_v20 = vmul.f32 %v3884_v60, %v4419_v8  ;;  %v4202_v40 = vld [vmem:[#allocation2 + $0x44] ss:$0 sps:$4 sm:$0x33]  }
  0x54   : > { %v4705_v17 = vld [vmem:[#allocation2 + $0x80] ss:$0 sps:$4 sm:$0x33]   ;;  %v3793_v19 = vpack.c.bf16 %v670_v9, %v670_v9  ;;  %v1777_v6 = vsel %vm1336_vm7, %v1775_v59, %v1776_v63  ;;  %v1778_v21 = vrot.slane %v4684_v55, 2  ;;  %v828_v23 = vrot.slane %v3790_v12, 7 }
  0x55   : > { %v4712_v22 = vld [vmem:[#allocation2 + $0x78] sm:$0xff]   ;;  %v830_v25 = vrot.slane %v3791_v13, 7  ;;  %v1700_v26 = vsel %vm1255_vm6, %v1698_v3, %v1699_v5  ;;  %v1779_v24 = vrot.slane %v4194_v56, 2  ;;  %v833_v27 = vrot.slane %v3792_v14, 7  ;;  %v3911_v5 = vld [vmem:[%s4414_s29 + $0x70] sm:$0xff]  }
  0x56   : > { %1737 = vrot.lane.b32.xlu1 %v1697_v53, %s4312_s13  ;;  %1316 = vrot.lane.b32.xlu0 %v1276_v54, %s4312_s13  ;;  %v835_v28 = vrot.slane %v3793_v19, 7  ;;  %v2501_v29 = vrot.slane %v4698_v7, 1  ;;  %v829_v30 = vrot.slane %v828_v23, 4  ;;  %939 = vst.msk [vmem:[#allocation2 + $0x90] sm:$0xe] %vm907_vm3, %v828_v23  ;;  %v602_v32 = vmul.f32 %v3885_v62, %v4419_v8  ;;  %v4201_v56 = vld [vmem:[#allocation2 + $0x3c] sm:$0xff]  }
  0x57   : > { %v832_v31 = vrot.slane %v830_v25, 4  ;;  %v2502_v33 = vrot.slane %v4701_v11, 1  ;;  %v834_v34 = vrot.slane %v833_v27, 4  ;;  %942 = vst.msk [vmem:[#allocation2 + $0x9c] sm:$0xe] %vm907_vm3, %v833_v27  ;;  %v639_v35 = vadd.f32 %v4438_v18, %v601_v20  ;;  %v4768_v19 = vld [vmem:[#allocation2 + $0x48] sm:$0xff]  }
  0x58   : > { %v3888_v36 = vunpack.c.l.bf16 %v3910_v15  ;;  %v1701_v37 = vrot.slane %v4712_v22, 1  ;;  %v1702_v38 = vrot.slane %v4705_v17, 1  ;;  %v831_v41 = vsel %vm4400_vm4, %v829_v30, %v830_v25  ;;  %v4732_v46 = vld [vmem:[#allocation2 + $0x84] sm:$0xff]  }
  0x59   : > { %v4725_v39 = vld [vmem:[#allocation2 + $0x8c] ss:$0 sps:$4 sm:$0x33]   ;;  %941 = vst.msk [vmem:[#allocation2 + $0x98] sm:$0x1] %vm465_vm0, %v832_v31  ;;  %v837_v42 = vrot.slane %v835_v28, 4  ;;  %v1780_v44 = vsel %vm1336_vm7, %v1778_v21, %v1779_v24  ;;  %v1360_v45 = vsel %vm1336_vm7, %v1358_v10, %v1359_v16  ;;  %v836_v47 = vsel %vm4400_vm4, %v834_v34, %v835_v28 }
  0x5a   : > { %1397 = vrot.lane.b32.xlu1 %v1357_v58, %s4313_s16  ;;  %1318 = vrot.lane.b32.xlu0 %v1279_v2, %s4312_s13  ;;  %940 = vst.msk [vmem:[#allocation2 + $0x94] sm:$0xf] %vm909_vm5, %v831_v41  ;;  %v1782_v48 = vrot.slane %v4705_v17, 2  ;;  %943 = vst.msk [vmem:[#allocation2 + $0xa0] sm:$0xf] %vm909_vm5, %v836_v47  ;;  %v640_v49 = vadd.f32 %v4438_v18, %v602_v32  ;;  %v671_v50 = vmax.f32 %v639_v35, 0.0  ;;  %v3889_v52 = vunpack.c.h.bf16 %v3910_v15 }
  0x5b   : > { %944 = vst.msk [vmem:[#allocation2 + $0xa4] sm:$0x1] %vm465_vm0, %v837_v42  ;;  %v2503_v51 = vsel %vm1255_vm6, %v2501_v29, %v2502_v33  ;;  %v603_v53 = vmul.f32 %v3888_v36, %v4419_v8  ;;  %v1703_v54 = vsel %vm1255_vm6, %v1701_v37, %v1702_v38  ;;  %v1781_v55 = vrot.slane %v4712_v22, 2  ;;  %v4752_v8 = vld [vmem:[%s5667_s4] ss:$0 sm:$0xff]  ;;  %v3912_v35 = vld [vmem:[%s4414_s29 + $0x78] sm:$0xff]  }
  0x5c   : > { %v672_v43 = vmax.f32 %v640_v49, 0.0  ;;  %v3794_v57 = vpack.c.bf16 %v671_v50, %v671_v50  ;;  %v1704_v58 = vrot.slane %v4732_v46, 1  ;;  %v1705_v59 = vrot.slane %v4725_v39, 1  ;;  %v4264_v47 = vld [vmem:[%s5668_s5] ss:$0 sm:$0xff] }
  0x5d   : > { %v604_v60 = vmul.f32 %v4752_v8, %v3889_v52  ;;  %v641_v62 = vadd.f32 %v4438_v18, %v603_v53  ;;  %v2581_v0 = vrot.slane %v4698_v7, 2  ;;  %v2582_v1 = vrot.slane %v4701_v11, 2  ;;  %v4765_v11 = vld [vmem:[#allocation2 + $0x50] ss:$0 sps:$4 sm:$0x33]  }
  0x5e   : > { %1817 = vrot.lane.b32.xlu1 %v1777_v6, %s4313_s16  ;;  %1739 = vrot.lane.b32.xlu0 %v1700_v26, %s4312_s13  ;;  %v3795_v63 = vpack.c.bf16 %v672_v43, %v672_v43  ;;  %v838_v61 = vrot.slane %v3794_v57, 7  ;;  %v2504_v9 = vrot.slane %v4201_v56, 1  ;;  %v2505_v10 = vrot.slane %v4202_v40, 1  ;;  %v4819_v57 = vld [vmem:[#allocation2 + $0x54] sm:$0xff]  }
  0x5f   : > { %v642_v2 = vadd.f32 %v4438_v18, %v604_v60  ;;  %v673_v3 = vmax.f32 %v641_v62, 0.0  ;;  %v1783_v14 = vsel %vm1336_vm7, %v1781_v55, %v1782_v48  ;;  %v1706_v7 = vsel %vm1255_vm6, %v1704_v58, %v1705_v59 }
  0x60   : > { %v839_v12 = vrot.slane %v838_v61, 4  ;;  %v840_v13 = vrot.slane %v3795_v63, 7  ;;  %945 = vst.msk [vmem:[#allocation2 + $0xa8] sm:$0xe] %vm907_vm3, %v838_v61  ;;  %v2584_v15 = vrot.slane %v4201_v56, 2  ;;  %v2585_v16 = vrot.slane %v4202_v40, 2 }
  0x61   : > { %v3796_v18 = vpack.c.bf16 %v673_v3, %v673_v3  ;;  %v1784_v17 = vrot.slane %v4732_v46, 2  ;;  %v4770_v20 = vld [vmem:[#allocation2 + $0x98] ss:$0 sps:$4 sm:$0x33]   ;;  %v3892_v21 = vunpack.c.l.bf16 %v3911_v5  ;;  %v674_v23 = vmax.f32 %v642_v2, 0.0  ;;  %v4778_v27 = vld [vmem:[#allocation2 + $0x90] sm:$0xff]  }
  0x62   : > { %1819 = vrot.lane.b32.xlu1 %v1780_v44, %s4313_s16  ;;  %1399 = vrot.lane.b32.xlu0 %v1360_v45, %s4313_s16  ;;  %v841_v6 = vsel %vm4400_vm4, %v839_v12, %v840_v13  ;;  %v842_v22 = vrot.slane %v840_v13, 4  ;;  %v3893_v26 = vunpack.c.h.bf16 %v3911_v5  ;;  %v1785_v24 = vrot.slane %v4725_v39, 2  ;;  %v4793_v39 = vld [vmem:[%s5666_s3] sm:$0x3f]  }
  0x63   : > { %946 = vst.msk [vmem:[#allocation2 + $0xac] sm:$0xf] %vm909_vm5, %v841_v6  ;;  %v843_v25 = vrot.slane %v3796_v18, 7  ;;  %v2583_v28 = vsel %vm1336_vm7, %v2581_v0, %v2582_v1  ;;  %v2506_v29 = vsel %vm1255_vm6, %v2504_v9, %v2505_v10  ;;  %v3797_v30 = vpack.c.bf16 %v674_v23, %v674_v23  ;;  %v4804_v46 = vld [vmem:[#allocation2 + $0xa4] ss:$0 sps:$4 sm:$0x33]  }
  0x64   : > { %947 = vst.msk [vmem:[#allocation2 + $0xb0] sm:$0x1] %vm465_vm0, %v842_v22  ;;  %v2586_v32 = vsel %vm1336_vm7, %v2584_v15, %v2585_v16  ;;  %v2507_v33 = vrot.slane %v4768_v19, 1  ;;  %v605_v34 = vmul.f32 %v4752_v8, %v3892_v21  ;;  %v2508_v36 = vrot.slane %v4765_v11, 1  ;;  %v4809_v49 = vld [vmem:[#allocation2 + $0x9c] sm:$0xff]  }
  0x65   : > { %v844_v31 = vrot.slane %v843_v25, 4  ;;  %948 = vst.msk [vmem:[#allocation2 + $0xb4] sm:$0xe] %vm907_vm3, %v843_v25  ;;  %v845_v37 = vrot.slane %v3797_v30, 7  ;;  %v606_v38 = vmul.f32 %v4752_v8, %v3893_v26  ;;  %v4797_v41 = vsel %vm1336_vm7, %v4793_v39, 0  ;;  %v4846_v26 = vld [vmem:[#allocation2 + $0x60] sm:$0xff]  }
  0x66   : > { %2549 = vrot.lane.b32.xlu1 %v2503_v51, %s4312_s13  ;;  %1741 = vrot.lane.b32.xlu0 %v1703_v54, %s4312_s13  ;;  %v1786_v42 = vsel %vm1336_vm7, %v1784_v17, %v1785_v24  ;;  %v1707_v44 = vrot.slane %v4778_v27, 1  ;;  %v1708_v45 = vrot.slane %v4770_v20, 1  ;;  %v643_v48 = vadd.f32 %v4264_v47, %v605_v34  ;;  %v4814_v54 = vld [vmem:[#allocation2 + $0x5c] ss:$0 sps:$4 sm:$0x33]  }
  0x67   : > { %v846_v50 = vsel %vm4400_vm4, %v844_v31, %v845_v37  ;;  %v847_v51 = vrot.slane %v845_v37, 4  ;;  %v644_v52 = vadd.f32 %v4264_v47, %v606_v38  ;;  %3999 = vmatpush3.bf16.msra.mxu0 %v4797_v41  ;;  %v3896_v53 = vunpack.c.l.bf16 %v3912_v35  ;;  %v4212_v21 = vld [vmem:[#allocation2 + $0x68] ss:$0 sps:$4 sm:$0x33]  }
  0x68   : > { %949 = vst.msk [vmem:[#allocation2 + $0xb8] sm:$0xf] %vm909_vm5, %v846_v50  ;;  %v675_v55 = vmax.f32 %v643_v48, 0.0  ;;  %v3897_v56 = vunpack.c.h.bf16 %v3912_v35  ;;  %v2509_v40 = vsel %vm1255_vm6, %v2507_v33, %v2508_v36  ;;  %v1788_v43 = vrot.slane %v4770_v20, 2  ;;  %v4265_v20 = vld [vmem:[%s5666_s3 + $0x8] sm:$0x3f]  }
  0x69   : > { %950 = vst.msk [vmem:[#allocation2 + $0xbc] sm:$0x1] %vm465_vm0, %v847_v51  ;;  %v676_v58 = vmax.f32 %v644_v52, 0.0  ;;  %v607_v59 = vmul.f32 %v4752_v8, %v3896_v53  ;;  %v1709_v60 = vsel %vm1255_vm6, %v1707_v44, %v1708_v45  ;;  %v1787_v62 = vrot.slane %v4778_v27, 2  ;;  %v4878_v52 = vld [vmem:[#allocation2 + $0x6c] sm:$0xff]  }
  0x6a   : > { %1821 = vrot.lane.b32.xlu1 %v1783_v14, %s4313_s16  ;;  %1743 = vrot.lane.b32.xlu0 %v1706_v7, %s4312_s13  ;;  %v3798_v63 = vpack.c.bf16 %v675_v55, %v675_v55  ;;  %v608_v61 = vmul.f32 %v4752_v8, %v3897_v56  ;;  %v1710_v0 = vrot.slane %v4809_v49, 1  ;;  %v1711_v1 = vrot.slane %v4804_v46, 1  ;;  %v4848_v24 = vld [vmem:[#allocation2 + $0xa8] sm:$0xff]  }
  0x6b   : > { %v3799_v2 = vpack.c.bf16 %v676_v58, %v676_v58  ;;  %v645_v3 = vadd.f32 %v4264_v47, %v607_v59  ;;  %v2587_v5 = vrot.slane %v4768_v19, 2  ;;  %v2588_v9 = vrot.slane %v4765_v11, 2  ;;  %v4214_v31 = vld [vmem:[#allocation2 + $0xb0] ss:$0 sps:$4 sm:$0x33]  }
  0x6c   : > { %v848_v10 = vrot.slane %v3798_v63, 7  ;;  %v646_v12 = vadd.f32 %v4264_v47, %v608_v61  ;;  %v2510_v13 = vrot.slane %v4819_v57, 1  ;;  %v2511_v14 = vrot.slane %v4814_v54, 1 }
  0x6d   : > { %v850_v7 = vrot.slane %v3799_v2, 7  ;;  %v677_v15 = vmax.f32 %v645_v3, 0.0  ;;  %v1789_v8 = vsel %vm1336_vm7, %v1787_v62, %v1788_v43  ;;  %v1712_v11 = vsel %vm1255_vm6, %v1710_v0, %v1711_v1  ;;  %v4889_v1 = vld [vmem:[#allocation2 + $0x78] sm:$0xff]   ;;  %v4220_v2 = vld [vmem:[#allocation2 + $0x80] ss:$0 sps:$4 sm:$0x33]  }
  0x6e   : > { %2629 = vrot.lane.b32.xlu1 %v2583_v28, %s4313_s16  ;;  %2551 = vrot.lane.b32.xlu0 %v2506_v29, %s4312_s13  ;;  %v849_v18 = vrot.slane %v848_v10, 4  ;;  %951 = vst.msk [vmem:[#allocation2 + $0xc0] sm:$0xe] %vm907_vm3, %v848_v10  ;;  %v678_v16 = vmax.f32 %v646_v12, 0.0  ;;  %v1960_v6 = vsel %vm1336_vm7, %v4265_v20, 0  ;;  %v2590_v25 = vrot.slane %v4819_v57, 2 }
  0x6f   : > { %v852_v17 = vrot.slane %v850_v7, 4  ;;  %v3800_v19 = vpack.c.bf16 %v677_v15, %v677_v15  ;;  %3965 = vmatpush3.bf16.msra.mxu1 %v1960_v6  ;;  %v2589_v29 = vsel %vm1336_vm7, %v2587_v5, %v2588_v9  ;;  %v2512_v30 = vsel %vm1255_vm6, %v2510_v13, %v2511_v14  ;;  %v4872_v4 = vld [vmem:[#allocation2 + $0xb4] sm:$0xff]  }
  0x70   : > { %v851_v22 = vsel %vm4400_vm4, %v849_v18, %v850_v7  ;;  %v3801_v23 = vpack.c.bf16 %v678_v16, %v678_v16  ;;  %4134 = vmatprep.subr.msk.bf16.mxu1 %vm1336_vm7, %v4793_v39  ;;  %v2591_v33 = vrot.slane %v4814_v54, 2  ;;  %v1790_v34 = vrot.slane %v4809_v49, 2  ;;  %v4216_v48 = vld [vmem:[#allocation2 + $0xbc] ss:$0 sps:$4 sm:$0x33]  }
  0x71   : > { %952 = vst.msk [vmem:[#allocation2 + $0xc4] sm:$0xf] %vm909_vm5, %v851_v22  ;;  %v853_v28 = vrot.slane %v3800_v19, 7  ;;  %v1791_v35 = vrot.slane %v4804_v46, 2  ;;  %v2513_v39 = vrot.slane %v4846_v26, 1  ;;  %v1713_v44 = vrot.slane %v4848_v24, 1 }
  0x72   : > { %2631 = vrot.lane.b32.xlu1 %v2586_v32, %s4313_s16  ;;  %1823 = vrot.lane.b32.xlu0 %v1786_v42, %s4313_s16  ;;  %953 = vst.msk [vmem:[#allocation2 + $0xc8] sm:$0x1] %vm465_vm0, %v852_v17  ;;  %v855_v32 = vrot.slane %v3801_v23, 7  ;;  %v2514_v42 = vrot.slane %v4212_v21, 1  ;;  %v1714_v45 = vrot.slane %v4214_v31, 1  ;;  %v2592_v46 = vsel %vm1336_vm7, %v2590_v25, %v2591_v33  ;;  %v4266_v22 = vld [vmem:[#allocation2] sm:$0xff]  }
  0x73   : > { %v854_v36 = vrot.slane %v853_v28, 4  ;;  %954 = vst.msk [vmem:[#allocation2 + $0xcc] sm:$0xe] %vm907_vm3, %v853_v28  ;;  %v1792_v47 = vsel %vm1336_vm7, %v1790_v34, %v1791_v35  ;;  %v1793_v51 = vrot.slane %v4848_v24, 2  ;;  %v1794_v54 = vrot.slane %v4214_v31, 2  ;;  %v4267_v31 = vld [vmem:[#allocation2 + $0xc] sm:$0xff]  }
  0x74   : > { %v857_v37 = vrot.slane %v855_v32, 4  ;;  %v2515_v50 = vsel %vm1255_vm6, %v2513_v39, %v2514_v42  ;;  %v1715_v53 = vsel %vm1255_vm6, %v1713_v44, %v1714_v45  ;;  %v1716_v55 = vrot.slane %v4872_v4, 1 }
  0x75   : > { %v856_v38 = vsel %vm4400_vm4, %v854_v36, %v855_v32  ;;  %v1717_v56 = vrot.slane %v4216_v48, 1  ;;  %v2593_v43 = vrot.slane %v4846_v26, 2  ;;  %v2594_v58 = vrot.slane %v4212_v21, 2  ;;  %v4907_v21 = vld [vmem:[#allocation2 + $0x84] sm:$0xff]  }
  0x76   : > { %2553 = vrot.lane.b32.xlu1 %v2509_v40, %s4312_s13  ;;  %1745 = vrot.lane.b32.xlu0 %v1709_v60, %s4312_s13  ;;  %955 = vst.msk [vmem:[#allocation2 + $0xd0] sm:$0xf] %vm909_vm5, %v856_v38  ;;  %v4218_v40 = vld [vmem:[#allocation2 + $0x74] ss:$0 sps:$4 sm:$0x33]   ;;  %v1795_v59 = vsel %vm1336_vm7, %v1793_v51, %v1794_v54  ;;  %v2516_v62 = vrot.slane %v4878_v52, 1 }
  0x77   : > { %956 = vst.msk [vmem:[#allocation2 + $0xd4] sm:$0x1] %vm465_vm0, %v857_v37  ;;  %v1718_v60 = vsel %vm1255_vm6, %v1716_v55, %v1717_v56  ;;  %v2517_v63 = vrot.slane %v4218_v40, 1  ;;  %v2596_v61 = vrot.slane %v4878_v52, 2  ;;  %v2597_v0 = vrot.slane %v4218_v40, 2 }
  0x78   : > { %v2595_v3 = vsel %vm1336_vm7, %v2593_v43, %v2594_v58  ;;  %v1796_v9 = vrot.slane %v4872_v4, 2  ;;  %v1797_v10 = vrot.slane %v4216_v48, 2  ;;  %v4896_v12 = vld [vmem:[#allocation2 + $0xc0] sm:$0xff]   ;;  %v2519_v14 = vrot.slane %v4889_v1, 1 }
  0x79   : > { %v2518_v5 = vsel %vm1255_vm6, %v2516_v62, %v2517_v63  ;;  %v4222_v13 = vld [vmem:[#allocation2 + $0xc8] ss:$0 sps:$4 sm:$0x33]   ;;  %v2520_v7 = vrot.slane %v4220_v2, 1  ;;  %v2598_v18 = vsel %vm1336_vm7, %v2596_v61, %v2597_v0  ;;  %v1799_v6 = vrot.slane %v4896_v12, 2  ;;  %v4936_v58 = vld [vmem:[#allocation2 + $0x60] sm:$0xff]  }
  0x7a   : > { %1825 = vrot.lane.b32.xlu1 %v1789_v8, %s4313_s16  ;;  %1747 = vrot.lane.b32.xlu0 %v1712_v11, %s4312_s13  ;;  %v1798_v16 = vsel %vm1336_vm7, %v1796_v9, %v1797_v10  ;;  %v1719_v11 = vrot.slane %v4896_v12, 1  ;;  %v1720_v17 = vrot.slane %v4222_v13, 1  ;;  %v1800_v25 = vrot.slane %v4222_v13, 2  ;;  %v4926_v48 = vld [vmem:[#allocation2 + $0x98] ss:$0 sps:$4 sm:$0x33]  }
  0x7b   : > { %v2521_v33 = vsel %vm1255_vm6, %v2519_v14, %v2520_v7  ;;  %v2599_v39 = vrot.slane %v4889_v1, 2  ;;  %v2600_v42 = vrot.slane %v4220_v2, 2  ;;  %v4232_v54 = vld [vmem:[#allocation2 + $0x68] ss:$0 sps:$4 sm:$0x33]   ;;  %v4946_v63 = vld [vmem:[#allocation2 + $0x6c] sm:$0xff]  }
  0x7c   : > { %v1721_v34 = vsel %vm1255_vm6, %v1719_v11, %v1720_v17  ;;  %v1801_v44 = vsel %vm1336_vm7, %v1799_v6, %v1800_v25  ;;  %v2526_v2 = vrot.slane %v4926_v48, 1  ;;  %v4952_v9 = vld [vmem:[#allocation2 + $0x74] ss:$0 sps:$4 sm:$0x33]   ;;  %v4268_v14 = vld [vmem:[#allocation2 + $0x18] sm:$0xff]  }
  0x7d   : > { %v4901_v15 = vld [vmem:[#allocation2 + $0xcc] sm:$0xff]   ;;  %v2601_v55 = vsel %vm1336_vm7, %v2599_v39, %v2600_v42  ;;  %v4964_v6 = vld [vmem:[#allocation2 + $0x9c] sm:$0xff]  }
  0x7e   : > { %2633 = vrot.lane.b32.xlu1 %v2589_v29, %s4313_s16  ;;  %2555 = vrot.lane.b32.xlu0 %v2512_v30, %s4312_s13  ;;  %v4225_v8 = vld [vmem:[#allocation2 + $0xd4] ss:$0 sps:$4 sm:$0x33]   ;;  %v1722_v28 = vrot.slane %v4901_v15, 1  ;;  %v1802_v40 = vrot.slane %v4901_v15, 2 }
  0x7f   : > { %v1723_v29 = vrot.slane %v4225_v8, 1  ;;  %v4227_v30 = vld [vmem:[#allocation2 + $0x8c] ss:$0 sps:$4 sm:$0x33]   ;;  %v1803_v43 = vrot.slane %v4225_v8, 2 }
  0x80   : > { %v2603_v51 = vrot.slane %v4227_v30, 2 }
  0x81   : > { %v1724_v45 = vsel %vm1255_vm6, %v1722_v28, %v1723_v29  ;;  %v1804_v0 = vsel %vm1336_vm7, %v1802_v40, %v1803_v43  ;;  %v4269_v28 = vld [vmem:[#allocation2 + $0x24] sm:$0xff]   ;;  %v4240_v40 = vld [vmem:[#allocation2 + $0x80] ss:$0 sps:$4 sm:$0x33]  }
  0x82   : > { %2635 = vrot.lane.b32.xlu1 %v2592_v46, %s4313_s16  ;;  %1827 = vrot.lane.b32.xlu0 %v1792_v47, %s4313_s16  ;;  %v2522_v46 = vrot.slane %v4907_v21, 1  ;;  %v2523_v47 = vrot.slane %v4227_v30, 1 }
  0x84   : > { %v2524_v56 = vsel %vm1255_vm6, %v2522_v46, %v2523_v47  ;;  %v4982_v46 = vld [vmem:[#allocation2 + $0xa8] sm:$0xff]   ;;  %v4238_v47 = vld [vmem:[#allocation2 + $0xb0] ss:$0 sps:$4 sm:$0x33]  }
  0x86   : > { %2557 = vrot.lane.b32.xlu1 %v2515_v50, %s4312_s13  ;;  %1749 = vrot.lane.b32.xlu0 %v1715_v53, %s4312_s13  ;;  %v2602_v50 = vrot.slane %v4907_v21, 2  ;;  %v4931_v53 = vld [vmem:[#allocation2 + $0x90] sm:$0xff]  }
  0x87   : > { %v2525_v62 = vrot.slane %v4931_v53, 1 }
  0x89   : > { %v2527_v11 = vsel %vm1255_vm6, %v2525_v62, %v2526_v2  ;;  %v2532_v62 = vrot.slane %v4238_v47, 1 }
  0x8a   : > { %1829 = vrot.lane.b32.xlu1 %v1795_v59, %s4313_s16  ;;  %1751 = vrot.lane.b32.xlu0 %v1718_v60, %s4312_s13  ;;  %v4261_v59 = vld [vmem:[%s5666_s3 + $0x10] sm:$0x3f]   ;;  %v2604_v60 = vsel %vm1336_vm7, %v2602_v50, %v2603_v51 }
  0x8b   : > { %4135 = vmatprep.subr.msk.bf16.mxu0 %vm1336_vm7, %v4261_v59  ;;  %v2782_v61 = vsel %vm1336_vm7, %v4261_v59, 0 }
  0x8e   : > { %2637 = vrot.lane.b32.xlu1 %v2595_v3, %s4313_s16  ;;  %2559 = vrot.lane.b32.xlu0 %v2518_v5, %s4312_s13  ;;  %v1280_v3 = vrot.slane %v4936_v58, 1  ;;  %v1281_v5 = vrot.slane %v4232_v54, 1 }
  0x90   : > { %v1282_v17 = vsel %vm1255_vm6, %v1280_v3, %v1281_v5 }
  0x92   : > { %v1307_v19 = vpop.permute.xlu1 %1306  ;;  %2639 = vrot.lane.b32.xlu1 %v2598_v18, %s4313_s16  ;;  %1831 = vrot.lane.b32.xlu0 %v1798_v16, %s4313_s16  ;;  %v1361_v18 = vrot.slane %v4936_v58, 2  ;;  %v1362_v16 = vrot.slane %v4232_v54, 2 }
  0x93   : > { %v1305_v20 = vpop.permute.xlu0 %1304  ;;  %v1423_v32 = vsel %vm1417_vm8, %v4267_v31, %v1307_v19  ;;  %v1283_v19 = vrot.slane %v4946_v63, 1 }
  0x94   : > { %v1420_v23 = vsel %vm1417_vm8, %v4266_v22, %v1305_v20  ;;  %v1284_v20 = vrot.slane %v4952_v9, 1  ;;  %v4236_v22 = vld [vmem:[#allocation2 + $0xa4] ss:$0 sps:$4 sm:$0x33]   ;;  %v1363_v31 = vsel %vm1336_vm7, %v1361_v18, %v1362_v16  ;;  %v1368_v16 = vrot.slane %v4240_v40, 2 }
  0x96   : > { %v1386_v35 = vpop.permute.xlu1 %1385  ;;  %2561 = vrot.lane.b32.xlu1 %v2521_v33, %s4312_s13  ;;  %1753 = vrot.lane.b32.xlu0 %v1721_v34, %s4312_s13  ;;  %v1285_v33 = vsel %vm1255_vm6, %v1283_v19, %v1284_v20  ;;  %v2606_v34 = vrot.slane %v4926_v48, 2  ;;  %v4270_v48 = vld [vmem:[#allocation2 + $0x18] sm:$0xff]  }
  0x97   : > { %v1388_v36 = vpop.permute.xlu0 %1387  ;;  %v1468_v37 = vsel %vm1466_vm9, %v1420_v23, %v1386_v35  ;;  %v2528_v35 = vrot.slane %v4964_v6, 1  ;;  %v4273_v20 = vld [vmem:[#allocation2 + $0x3c] sm:$0xff]  }
  0x98   : > { %v1470_v38 = vsel %vm1466_vm9, %v1423_v32, %v1388_v36  ;;  %4000 = vmatprep.mubr.msk.bf16.mxu0 %vm1925_vm10, %v1468_v37  ;;  %v2605_v32 = vrot.slane %v4931_v53, 2  ;;  %v2529_v36 = vrot.slane %v4236_v22, 1 }
  0x99   : > { %4001 = vmatmul.mubr.msk.bf16.vlgmr.msra.gmra.mrb[0].mxu0 %vm1925_vm10, %v1470_v38 }
  0x9a   : > { %1833 = vrot.lane.b32.xlu1 %v1801_v44, %s4313_s16  ;;  %1755 = vrot.lane.b32.xlu0 %v1724_v45, %s4312_s13  ;;  %v2607_v39 = vsel %vm1336_vm7, %v2605_v32, %v2606_v34  ;;  %v2530_v42 = vsel %vm1255_vm6, %v2528_v35, %v2529_v36  ;;  %v2608_v44 = vrot.slane %v4964_v6, 2  ;;  %v2609_v45 = vrot.slane %v4236_v22, 2 }
  0x9b   : > { %4033 = vmatpush3.bf16.msra.mxu0 %v2782_v61  ;;  %v4995_v61 = vld [vmem:[#allocation2 + $0x84] sm:$0xff]   ;;  %v2611_v35 = vrot.slane %v4982_v46, 2  ;;  %v2612_v36 = vrot.slane %v4238_v47, 2  ;;  %v4274_v47 = vld [vmem:[#allocation2 + $0x30] sm:$0xff]  }
  0x9c   : > { %v2610_v59 = vsel %vm1336_vm7, %v2608_v44, %v2609_v45 }
  0x9d   : > { %v2613_v45 = vsel %vm1336_vm7, %v2611_v35, %v2612_v36 }
  0x9e   : > { %2641 = vrot.lane.b32.xlu1 %v2601_v55, %s4313_s16  ;;  %2563 = vrot.lane.b32.xlu0 %v2524_v56, %s4312_s13  ;;  %v1365_v55 = vrot.slane %v4952_v9, 2  ;;  %v4987_v56 = vld [vmem:[#allocation2 + $0x78] sm:$0xff]  }
  0x9f   : > { %v1367_v18 = vrot.slane %v4987_v56, 2 }
  0xa0   : > { %v1806_v10 = vpop.permute.xlu1 %1805  ;;  %v1726_v13 = vpop.permute.xlu0 %1725 }
  0xa1   : > { %v1839_v7 = vsel %vm1417_vm8, %v4268_v14, %v1726_v13  ;;  %v1287_v13 = vrot.slane %v4240_v40, 1  ;;  %v5000_v14 = vld [vmem:[#allocation2 + $0x8c] ss:$0 sps:$4 sm:$0x33]   ;;  %v1369_v34 = vsel %vm1336_vm7, %v1367_v18, %v1368_v16 }
  0xa2   : > { %2643 = vrot.lane.b32.xlu1 %v2604_v60, %s4313_s16  ;;  %1835 = vrot.lane.b32.xlu0 %v1804_v0, %s4313_s16  ;;  %v1886_v8 = vsel %vm1466_vm9, %v1839_v7, %v1806_v10  ;;  %v2531_v60 = vrot.slane %v4982_v46, 1  ;;  %v4271_v0 = vld [vmem:[#allocation2 + $0x30] sm:$0xff]   ;;  %v1286_v10 = vrot.slane %v4987_v56, 1 }
  0xa3   : > { %3966 = vmatprep.mubr.msk.bf16.mxu1 %vm1925_vm10, %v1886_v8 }
  0xa4   : > { %v1808_v23 = vpop.permute.xlu1 %1807  ;;  %v1728_v25 = vpop.permute.xlu0 %1727  ;;  %v2533_v8 = vsel %vm1255_vm6, %v2531_v60, %v2532_v62  ;;  %v1371_v60 = vrot.slane %v5000_v14, 2  ;;  %v5035_v62 = vld [vmem:[#allocation2 + $0x90] sm:$0xff]  }
  0xa5   : > { %v1842_v29 = vsel %vm1417_vm8, %v4269_v28, %v1728_v25  ;;  %v1288_v28 = vsel %vm1255_vm6, %v1286_v10, %v1287_v13  ;;  %v5043_v10 = vld [vmem:[#allocation2 + $0x9c] sm:$0xff]   ;;  %v4275_v13 = vld [vmem:[#allocation2 + $0x48] sm:$0xff]   ;;  %v1292_v16 = vrot.slane %v5035_v62, 1 }
  0xa6   : > { %2565 = vrot.lane.b32.xlu1 %v2527_v11, %s4312_s13  ;;  %1320 = vrot.lane.b32.xlu0 %v1282_v17, %s4312_s13  ;;  %v1888_v30 = vsel %vm1466_vm9, %v1842_v29, %v1808_v23  ;;  %v1289_v11 = vrot.slane %v4995_v61, 1  ;;  %v4272_v17 = vld [vmem:[#allocation2 + $0x24] sm:$0xff]   ;;  %v1290_v29 = vrot.slane %v5000_v14, 1 }
  0xa7   : > { %3967 = vmatmul.mubr.msk.bf16.vlgmr.msra.gmra.mrb[0].mxu1 %vm1925_vm10, %v1888_v30  ;;  %v5013_v30 = vld [vmem:[#allocation2 + $0xb4] sm:$0xff]  }
  0xa8   : > { %v1730_v37 = vpop.permute.xlu1 %1729  ;;  %v1309_v38 = vpop.permute.xlu0 %1308  ;;  %4067 = vmatpush3.bf16.msra.mxu1 %v4797_v41  ;;  %v1364_v41 = vrot.slane %v4946_v63, 2 }
  0xa9   : > { %v1426_v50 = vsel %vm1417_vm8, %v4270_v48, %v1309_v38  ;;  %v1845_v2 = vsel %vm1417_vm8, %v4271_v0, %v1730_v37  ;;  %v2614_v48 = vrot.slane %v5013_v30, 2  ;;  %v4248_v0 = vld [vmem:[#allocation2 + $0x98] ss:$0 sps:$4 sm:$0x33]  }
  0xaa   : > { %1401 = vrot.lane.b32.xlu1 %v1363_v31, %s4313_s16  ;;  %1322 = vrot.lane.b32.xlu0 %v1285_v33, %s4312_s13  ;;  %v1366_v9 = vsel %vm1336_vm7, %v1364_v41, %v1365_v55  ;;  %v4244_v31 = vld [vmem:[#allocation2 + $0xbc] ss:$0 sps:$4 sm:$0x33]  }
  0xab   : > { %v2535_v44 = vrot.slane %v4244_v31, 1 }
  0xac   : > { %v1390_v51 = vpop.permute.xlu1 %1389  ;;  %v1311_v54 = vpop.permute.xlu0 %1310 }
  0xad   : > { %v1472_v43 = vsel %vm1466_vm9, %v1426_v50, %v1390_v51  ;;  %v1429_v19 = vsel %vm1417_vm8, %v4272_v17, %v1311_v54  ;;  %v2615_v50 = vrot.slane %v4244_v31, 2  ;;  %v5029_v51 = vld [vmem:[#allocation2 + $0xc0] sm:$0xff]   ;;  %v4246_v54 = vld [vmem:[#allocation2 + $0xc8] ss:$0 sps:$4 sm:$0x33]   ;;  %v4277_v31 = vld [vmem:[#allocation2 + $0x54] sm:$0xff]  }
  0xae   : > { %2645 = vrot.lane.b32.xlu1 %v2607_v39, %s4313_s16  ;;  %2567 = vrot.lane.b32.xlu0 %v2530_v42, %s4312_s13  ;;  %v1291_v39 = vsel %vm1255_vm6, %v1289_v11, %v1290_v29  ;;  %v2534_v42 = vrot.slane %v5013_v30, 1  ;;  %v1293_v11 = vrot.slane %v4248_v0, 1  ;;  %v5048_v17 = vld [vmem:[#allocation2 + $0xa4] ss:$0 sps:$4 sm:$0x33]  }
  0xaf   : > { %4004 = vmatprep.mubr.msk.bf16.mxu0 %vm1925_vm10, %v1472_v43  ;;  %v1296_v36 = vrot.slane %v5048_v17, 1 }
  0xb0   : > { %v1810_v3 = vpop.permute.xlu1 %1809  ;;  %v1732_v5 = vpop.permute.xlu0 %1731  ;;  %v2536_v43 = vsel %vm1255_vm6, %v2534_v42, %v2535_v44  ;;  %v1294_v35 = vsel %vm1255_vm6, %v1292_v16, %v1293_v11 }
  0xb1   : > { %v1890_v7 = vsel %vm1466_vm9, %v1845_v2, %v1810_v3  ;;  %v1848_v22 = vsel %vm1417_vm8, %v4273_v20, %v1732_v5  ;;  %v2616_v3 = vsel %vm1336_vm7, %v2614_v48, %v2615_v50  ;;  %v2537_v5 = vrot.slane %v5029_v51, 1 }
  0xb2   : > { %2647 = vrot.lane.b32.xlu1 %v2610_v59, %s4313_s16  ;;  %3970 = vmatprep.mubr.msk.bf16.mxu1 %vm1925_vm10, %v1890_v7  ;;  %v1370_v59 = vrot.slane %v4995_v61, 2  ;;  %v2618_v48 = vrot.slane %v4246_v54, 2 }
  0xb3   : > { %1403 = vrot.lane.b32.xlu0 %v1366_v9, %s4313_s16  ;;  %v2538_v9 = vrot.slane %v4246_v54, 1  ;;  %v4278_v54 = vld [vmem:[#allocation2 + $0x48] sm:$0xff]  }
  0xb4   : > { %v1812_v23 = vpop.permute.xlu1 %1811  ;;  %v1392_v25 = vpop.permute.xlu0 %1391  ;;  %v1372_v18 = vsel %vm1336_vm7, %v1370_v59, %v1371_v60 }
  0xb5   : > { %v1892_v32 = vsel %vm1466_vm9, %v1848_v22, %v1812_v23  ;;  %v1474_v33 = vsel %vm1466_vm9, %v1429_v19, %v1392_v25  ;;  %v2539_v20 = vsel %vm1255_vm6, %v2537_v5, %v2538_v9  ;;  %v1373_v22 = vrot.slane %v5035_v62, 2 }
  0xb6   : > { %2569 = vrot.lane.b32.xlu1 %v2533_v8, %s4312_s13  ;;  %3971 = vmatmul.mubr.msk.bf16.gmra.mrb[4].mxu1 %vm1925_vm10, %v1892_v32  ;;  %v1374_v23 = vrot.slane %v4248_v0, 2  ;;  %v1295_v25 = vrot.slane %v5043_v10, 1  ;;  %v5077_v0 = vld [vmem:[#allocation2 + $0xd8] sm:$0xff]  }
  0xb7   : > { %1324 = vrot.lane.b32.xlu0 %v1288_v28, %s4312_s13  ;;  %4005 = vmatmul.mubr.msk.bf16.gmra.mrb[4].mxu0 %vm1925_vm10, %v1474_v33  ;;  %v4276_v28 = vld [vmem:[#allocation2 + $0x3c] sm:$0xff]  }
  0xb8   : > { %v1734_v37 = vpop.permute.xlu1 %1733  ;;  %v1313_v38 = vpop.permute.xlu0 %1312  ;;  %v1375_v44 = vsel %vm1336_vm7, %v1373_v22, %v1374_v23  ;;  %v5091_v22 = vld [vmem:[#allocation2 + $0xb4] sm:$0xff]   ;;  %v4279_v23 = vld [vmem:[#allocation2 + $0x60] sm:$0xff]  }
  0xb9   : > { %v1432_v41 = vsel %vm1417_vm8, %v4274_v47, %v1313_v38  ;;  %v1851_v14 = vsel %vm1417_vm8, %v4275_v13, %v1734_v37  ;;  %v5061_v37 = vld [vmem:[#allocation2 + $0xcc] sm:$0xff]   ;;  %v4252_v38 = vld [vmem:[#allocation2 + $0xd4] ss:$0 sps:$4 sm:$0x33]  }
  0xba   : > { %1405 = vrot.lane.b32.xlu1 %v1369_v34, %s4313_s16  ;;  %v2620_v59 = vrot.slane %v5061_v37, 2  ;;  %v2621_v60 = vrot.slane %v4252_v38, 2 }
  0xbb   : > { %1326 = vrot.lane.b32.xlu0 %v1291_v39, %s4312_s13 }
  0xbc   : > { %v1394_v55 = vpop.permute.xlu1 %1393  ;;  %v1315_v40 = vpop.permute.xlu0 %1314  ;;  %v2622_v11 = vsel %vm1336_vm7, %v2620_v59, %v2621_v60 }
  0xbd   : > { %v1476_v2 = vsel %vm1466_vm9, %v1432_v41, %v1394_v55  ;;  %v1435_v29 = vsel %vm1417_vm8, %v4276_v28, %v1315_v40  ;;  %v1297_v41 = vsel %vm1255_vm6, %v1295_v25, %v1296_v36  ;;  %v2540_v55 = vrot.slane %v5061_v37, 1 }
  0xbe   : > { %2649 = vrot.lane.b32.xlu1 %v2613_v45, %s4313_s16  ;;  %4008 = vmatprep.mubr.msk.bf16.mxu0 %vm1925_vm10, %v1476_v2  ;;  %v2617_v45 = vrot.slane %v5029_v51, 2  ;;  %v2541_v40 = vrot.slane %v4252_v38, 1  ;;  %v4254_v2 = vld [vmem:[#allocation2 + $0xe0] ss:$0 sps:$4 sm:$0x33]  }
  0xbf   : > { %2571 = vrot.lane.b32.xlu0 %v2536_v43, %s4312_s13 }
  0xc0   : > { %v1814_v7 = vpop.permute.xlu1 %1813  ;;  %v1736_v8 = vpop.permute.xlu0 %1735  ;;  %v2619_v43 = vsel %vm1336_vm7, %v2617_v45, %v2618_v48  ;;  %v2542_v13 = vsel %vm1255_vm6, %v2540_v55, %v2541_v40  ;;  %v4281_v45 = vld [vmem:[#allocation2 + $0x6c] sm:$0xff]   ;;  %v5106_v40 = vld [vmem:[#allocation2 + $0xe4] sm:$0xff]  }
  0xc1   : > { %v1894_v19 = vsel %vm1466_vm9, %v1851_v14, %v1814_v7  ;;  %v1854_v32 = vsel %vm1417_vm8, %v4277_v31, %v1736_v8  ;;  %v1376_v14 = vrot.slane %v5043_v10, 2  ;;  %v1377_v7 = vrot.slane %v5048_v17, 2  ;;  %v5083_v8 = vld [vmem:[#allocation2 + $0xa8] sm:$0xff]  }
  0xc2   : > { %2651 = vrot.lane.b32.xlu1 %v2616_v3, %s4313_s16  ;;  %3974 = vmatprep.mubr.msk.bf16.mxu1 %vm1925_vm10, %v1894_v19  ;;  %v2543_v19 = vrot.slane %v5077_v0, 1  ;;  %v1298_v31 = vrot.slane %v5083_v8, 1  ;;  %v1379_v36 = vrot.slane %v5083_v8, 2 }
  0xc3   : > { %1407 = vrot.lane.b32.xlu0 %v1372_v18, %s4313_s16  ;;  %v4256_v18 = vld [vmem:[#allocation2 + $0xb0] ss:$0 sps:$4 sm:$0x33]  }
  0xc4   : > { %v1816_v33 = vpop.permute.xlu1 %1815  ;;  %v1396_v34 = vpop.permute.xlu0 %1395  ;;  %v1380_v38 = vrot.slane %v4256_v18, 2 }
  0xc5   : > { %v1896_v39 = vsel %vm1466_vm9, %v1854_v32, %v1816_v33  ;;  %v1478_v42 = vsel %vm1466_vm9, %v1435_v29, %v1396_v34  ;;  %v1378_v29 = vsel %vm1336_vm7, %v1376_v14, %v1377_v7  ;;  %v1299_v32 = vrot.slane %v4256_v18, 1  ;;  %v4258_v33 = vld [vmem:[#allocation2 + $0xbc] ss:$0 sps:$4 sm:$0x33]  }
  0xc6   : > { %2573 = vrot.lane.b32.xlu1 %v2539_v20, %s4312_s13  ;;  %3975 = vmatmul.mubr.msk.bf16.gmra.mrb[8].mxu1 %vm1925_vm10, %v1896_v39  ;;  %v2544_v20 = vrot.slane %v4254_v2, 1  ;;  %v1301_v39 = vrot.slane %v5091_v22, 1  ;;  %v1302_v55 = vrot.slane %v4258_v33, 1  ;;  %v2546_v7 = vrot.slane %v5106_v40, 1 }
  0xc7   : > { %1328 = vrot.lane.b32.xlu0 %v1294_v35, %s4312_s13  ;;  %4009 = vmatmul.mubr.msk.bf16.gmra.mrb[8].mxu0 %vm1925_vm10, %v1478_v42  ;;  %v4280_v42 = vld [vmem:[#allocation2 + $0x54] sm:$0xff]  }
  0xc8   : > { %v1738_v50 = vpop.permute.xlu1 %1737  ;;  %v1317_v47 = vpop.permute.xlu0 %1316  ;;  %v2545_v35 = vsel %vm1255_vm6, %v2543_v19, %v2544_v20  ;;  %v1303_v14 = vsel %vm1255_vm6, %v1301_v39, %v1302_v55  ;;  %v4282_v20 = vld [vmem:[#allocation2 + $0x78] sm:$0xff]  }
  0xc9   : > { %v1438_v3 = vsel %vm1417_vm8, %v4278_v54, %v1317_v47  ;;  %v1857_v17 = vsel %vm1417_vm8, %v4279_v23, %v1738_v50  ;;  %v1381_v54 = vsel %vm1336_vm7, %v1379_v36, %v1380_v38 }
  0xca   : > { %1409 = vrot.lane.b32.xlu1 %v1375_v44, %s4313_s16 }
  0xcb   : > { %1330 = vrot.lane.b32.xlu0 %v1297_v41, %s4312_s13  ;;  %v1300_v41 = vsel %vm1255_vm6, %v1298_v31, %v1299_v32 }
  0xcc   : > { %v1398_v5 = vpop.permute.xlu1 %1397  ;;  %v1319_v9 = vpop.permute.xlu0 %1318 }
  0xcd   : > { %v1480_v16 = vsel %vm1466_vm9, %v1438_v3, %v1398_v5  ;;  %v1441_v44 = vsel %vm1417_vm8, %v4280_v42, %v1319_v9  ;;  %v2623_v3 = vrot.slane %v5077_v0, 2  ;;  %v2624_v5 = vrot.slane %v4254_v2, 2 }
  0xce   : > { %2653 = vrot.lane.b32.xlu1 %v2619_v43, %s4313_s16  ;;  %4012 = vmatprep.mubr.msk.bf16.mxu0 %vm1925_vm10, %v1480_v16  ;;  %v4260_v43 = vld [vmem:[#allocation2 + $0xec] ss:$0 sps:$4 sm:$0x33]  }
  0xcf   : > { %2575 = vrot.lane.b32.xlu0 %v2542_v13, %s4312_s13  ;;  %v2547_v18 = vrot.slane %v4260_v43, 1  ;;  %v2625_v16 = vsel %vm1336_vm7, %v2623_v3, %v2624_v5  ;;  %v2627_v19 = vrot.slane %v4260_v43, 2 }
  0xd0   : > { %v1818_v25 = vpop.permute.xlu1 %1817  ;;  %v1740_v28 = vpop.permute.xlu0 %1739 }
  0xd1   : > { %v1898_v34 = vsel %vm1466_vm9, %v1857_v17, %v1818_v25  ;;  %v1860_v48 = vsel %vm1417_vm8, %v4281_v45, %v1740_v28  ;;  %v2548_v25 = vsel %vm1255_vm6, %v2546_v7, %v2547_v18  ;;  %v1382_v28 = vrot.slane %v5091_v22, 2  ;;  %v4285_v45 = vld [vmem:[#allocation2 + $0x3c] sm:$0xff]  }
  0xd2   : > { %2655 = vrot.lane.b32.xlu1 %v2622_v11, %s4313_s16  ;;  %3978 = vmatprep.mubr.msk.bf16.mxu1 %vm1925_vm10, %v1898_v34  ;;  %v2626_v11 = vrot.slane %v5106_v40, 2  ;;  %v4283_v34 = vld [vmem:[#allocation2 + $0x30] sm:$0xff]  }
  0xd3   : > { %1411 = vrot.lane.b32.xlu0 %v1378_v29, %s4313_s16  ;;  %v1383_v29 = vrot.slane %v4258_v33, 2  ;;  %v4284_v33 = vld [vmem:[#allocation2 + $0x84] sm:$0xff]  }
  0xd4   : > { %v1820_v50 = vpop.permute.xlu1 %1819  ;;  %v1400_v47 = vpop.permute.xlu0 %1399  ;;  %v2628_v32 = vsel %vm1336_vm7, %v2626_v11, %v2627_v19 }
  0xd5   : > { %v1900_v59 = vsel %vm1466_vm9, %v1860_v48, %v1820_v50  ;;  %v1482_v60 = vsel %vm1466_vm9, %v1441_v44, %v1400_v47  ;;  %v1384_v39 = vsel %vm1336_vm7, %v1382_v28, %v1383_v29 }
  0xd6   : > { %2577 = vrot.lane.b32.xlu1 %v2545_v35, %s4312_s13  ;;  %3979 = vmatmul.mubr.msk.bf16.gmra.mrb[12].mxu1 %vm1925_vm10, %v1900_v59 }
  0xd7   : > { %1332 = vrot.lane.b32.xlu0 %v1300_v41, %s4312_s13  ;;  %4013 = vmatmul.mubr.msk.bf16.gmra.mrb[12].mxu0 %vm1925_vm10, %v1482_v60 }
  0xd8   : > { %v2550_v9 = vpop.permute.xlu1 %2549  ;;  %v1742_v13 = vpop.permute.xlu0 %1741 }
  0xd9   : > { %v1863_v23 = vsel %vm1417_vm8, %v4282_v20, %v1742_v13  ;;  %v2663_v35 = vsel %vm1417_vm8, %v4283_v34, %v2550_v9  ;;  %v4286_v9 = vld [vmem:[#allocation2 + $0x48] sm:$0xff]  }
  0xda   : > { %1413 = vrot.lane.b32.xlu1 %v1381_v54, %s4313_s16 }
  0xdb   : > { %1334 = vrot.lane.b32.xlu0 %v1303_v14, %s4312_s13 }
  0xdc   : > { %v1822_v2 = vpop.permute.xlu1 %1821  ;;  %v1744_v17 = vpop.permute.xlu0 %1743 }
  0xdd   : > { %v1902_v31 = vsel %vm1466_vm9, %v1863_v23, %v1822_v2  ;;  %v1866_v44 = vsel %vm1417_vm8, %v4284_v33, %v1744_v17 }
  0xde   : > { %2657 = vrot.lane.b32.xlu1 %v2625_v16, %s4313_s16  ;;  %3982 = vmatprep.mubr.msk.bf16.mxu1 %vm1925_vm10, %v1902_v31 }
  0xdf   : > { %2579 = vrot.lane.b32.xlu0 %v2548_v25, %s4312_s13 }
  0xe0   : > { %v2630_v36 = vpop.permute.xlu1 %2629  ;;  %v2552_v38 = vpop.permute.xlu0 %2551 }
  0xe1   : > { %v2710_v42 = vsel %vm1466_vm9, %v2663_v35, %v2630_v36  ;;  %v2666_v48 = vsel %vm1417_vm8, %v4285_v45, %v2552_v38 }
  0xe2   : > { %2659 = vrot.lane.b32.xlu1 %v2628_v32, %s4313_s16  ;;  %4034 = vmatprep.mubr.msk.bf16.mxu0 %vm1925_vm10, %v2710_v42 }
  0xe3   : > { %1415 = vrot.lane.b32.xlu0 %v1384_v39, %s4313_s16 }
  0xe4   : > { %v2632_v50 = vpop.permute.xlu1 %2631  ;;  %v1824_v47 = vpop.permute.xlu0 %1823 }
  0xe5   : > { %v2712_v41 = vsel %vm1466_vm9, %v2666_v48, %v2632_v50  ;;  %v1904_v55 = vsel %vm1466_vm9, %v1866_v44, %v1824_v47 }
  0xe6   : > { %3983 = vmatmul.mubr.msk.bf16.gmra.mrb[16].mxu1 %vm1925_vm10, %v1904_v55  ;;  %4035 = vmatmul.mubr.msk.bf16.vlgmr.msra.gmra.mrb[0].mxu0 %vm1925_vm10, %v2712_v41 }
  0xe8   : > { %v2554_v43 = vpop.permute.xlu1 %2553  ;;  %v1746_v59 = vpop.permute.xlu0 %1745 }
  0xe9   : > { %v1869_v60 = vsel %vm1417_vm8, %v4778_v27, %v1746_v59  ;;  %v2669_v13 = vsel %vm1417_vm8, %v4286_v9, %v2554_v43 }
  0xec   : > { %v1826_v54 = vpop.permute.xlu1 %1825  ;;  %v1748_v3 = vpop.permute.xlu0 %1747 }
  0xed   : > { %v1906_v5 = vsel %vm1466_vm9, %v1869_v60, %v1826_v54  ;;  %v1872_v16 = vsel %vm1417_vm8, %v4809_v49, %v1748_v3 }
  0xee   : > { %3986 = vmatprep.mubr.msk.bf16.mxu1 %vm1925_vm10, %v1906_v5 }
  0xf0   : > { %v2634_v14 = vpop.permute.xlu1 %2633  ;;  %v2556_v7 = vpop.permute.xlu0 %2555 }
  0xf1   : > { %v2714_v18 = vsel %vm1466_vm9, %v2669_v13, %v2634_v14  ;;  %v2672_v27 = vsel %vm1417_vm8, %v4819_v57, %v2556_v7 }
  0xf2   : > { %4038 = vmatprep.mubr.msk.bf16.mxu0 %vm1925_vm10, %v2714_v18 }
  0xf4   : > { %v2636_v11 = vpop.permute.xlu1 %2635  ;;  %v1828_v19 = vpop.permute.xlu0 %1827 }
  0xf5   : > { %v2716_v20 = vsel %vm1466_vm9, %v2672_v27, %v2636_v11  ;;  %v1908_v23 = vsel %vm1466_vm9, %v1872_v16, %v1828_v19 }
  0xf6   : > { %3987 = vmatmul.mubr.msk.bf16.gmra.mrb[20].mxu1 %vm1925_vm10, %v1908_v23  ;;  %4039 = vmatmul.mubr.msk.bf16.gmra.mrb[4].mxu0 %vm1925_vm10, %v2716_v20 }
  0xf8   : > { %v2558_v2 = vpop.permute.xlu1 %2557  ;;  %v1750_v17 = vpop.permute.xlu0 %1749 }
  0xf9   : > { %v1875_v25 = vsel %vm1417_vm8, %v4848_v24, %v1750_v17  ;;  %v2675_v57 = vsel %vm1417_vm8, %v4846_v26, %v2558_v2 }
  0xfc   : > { %v1830_v28 = vpop.permute.xlu1 %1829  ;;  %v1752_v49 = vpop.permute.xlu0 %1751 }
  0xfd   : > { %v1910_v29 = vsel %vm1466_vm9, %v1875_v25, %v1830_v28  ;;  %v1878_v35 = vsel %vm1417_vm8, %v4872_v4, %v1752_v49 }
  0xfe   : > { %3990 = vmatprep.mubr.msk.bf16.mxu1 %vm1925_vm10, %v1910_v29 }
 0x100   : > { %v2638_v31 = vpop.permute.xlu1 %2637  ;;  %v2560_v32 = vpop.permute.xlu0 %2559 }
 0x101   : > { %v2718_v34 = vsel %vm1466_vm9, %v2675_v57, %v2638_v31  ;;  %v2678_v24 = vsel %vm1417_vm8, %v4878_v52, %v2560_v32 }
 0x102   : > { %4042 = vmatprep.mubr.msk.bf16.mxu0 %vm1925_vm10, %v2718_v34 }
 0x104   : > { %v2640_v36 = vpop.permute.xlu1 %2639  ;;  %v1832_v38 = vpop.permute.xlu0 %1831 }
 0x105   : > { %v2720_v39 = vsel %vm1466_vm9, %v2678_v24, %v2640_v36  ;;  %v1912_v42 = vsel %vm1466_vm9, %v1878_v35, %v1832_v38 }
 0x106   : > { %3991 = vmatmul.mubr.msk.bf16.gmra.mrb[24].mxu1 %vm1925_vm10, %v1912_v42  ;;  %4043 = vmatmul.mubr.msk.bf16.gmra.mrb[8].mxu0 %vm1925_vm10, %v2720_v39 }
 0x108   : > { %v2562_v26 = vpop.permute.xlu1 %2561  ;;  %v1754_v33 = vpop.permute.xlu0 %1753 }
 0x109   : > { %v1881_v44 = vsel %vm1417_vm8, %v4896_v12, %v1754_v33  ;;  %v2681_v52 = vsel %vm1417_vm8, %v4889_v1, %v2562_v26 }
 0x10c   : > { %v1834_v45 = vpop.permute.xlu1 %1833  ;;  %v1756_v4 = vpop.permute.xlu0 %1755 }
 0x10d   : > { %v1914_v48 = vsel %vm1466_vm9, %v1881_v44, %v1834_v45  ;;  %v1884_v55 = vsel %vm1417_vm8, %v4901_v15, %v1756_v4 }
 0x10e   : > { %3994 = vmatprep.mubr.msk.bf16.mxu1 %vm1925_vm10, %v1914_v48 }
 0x110   : > { %v2642_v50 = vpop.permute.xlu1 %2641  ;;  %v2564_v47 = vpop.permute.xlu0 %2563 }
 0x111   : > { %v2722_v41 = vsel %vm1466_vm9, %v2681_v52, %v2642_v50  ;;  %v2684_v12 = vsel %vm1417_vm8, %v4907_v21, %v2564_v47 }
 0x112   : > { %4046 = vmatprep.mubr.msk.bf16.mxu0 %vm1925_vm10, %v2722_v41 }
 0x114   : > { %v2644_v43 = vpop.permute.xlu1 %2643  ;;  %v1836_v59 = vpop.permute.xlu0 %1835 }
 0x115   : > { %v2724_v60 = vsel %vm1466_vm9, %v2684_v12, %v2644_v43  ;;  %v1916_v54 = vsel %vm1466_vm9, %v1884_v55, %v1836_v59 }
 0x116   : > { %3995 = vmatmul.mubr.msk.bf16.gmra.mrb[28].mxu1 %vm1925_vm10, %v1916_v54  ;;  %4047 = vmatmul.mubr.msk.bf16.gmra.mrb[12].mxu0 %vm1925_vm10, %v2724_v60 }
 0x118   : > { %v2566_v1 = vpop.permute.xlu1 %2565  ;;  %v1321_v3 = vpop.permute.xlu0 %1320 }
 0x119   : > { %v1444_v5 = vsel %vm1417_vm8, %v4936_v58, %v1321_v3  ;;  %v2687_v21 = vsel %vm1417_vm8, %v4931_v53, %v2566_v1 }
 0x11c   : > { %v1402_v9 = vpop.permute.xlu1 %1401  ;;  %v1323_v15 = vpop.permute.xlu0 %1322 }
 0x11d   : > { %v1484_v13 = vsel %vm1466_vm9, %v1444_v5, %v1402_v9  ;;  %v1447_v58 = vsel %vm1417_vm8, %v4946_v63, %v1323_v15 }
 0x11e   : > { %4016 = vmatprep.mubr.msk.bf16.mxu1 %vm1925_vm10, %v1484_v13 }
 0x120   : > { %v2646_v14 = vpop.permute.xlu1 %2645  ;;  %v2568_v7 = vpop.permute.xlu0 %2567 }
 0x121   : > { %v2726_v18 = vsel %vm1466_vm9, %v2687_v21, %v2646_v14  ;;  %v2690_v16 = vsel %vm1417_vm8, %v4964_v6, %v2568_v7 }
 0x122   : > { %4050 = vmatprep.mubr.msk.bf16.mxu0 %vm1925_vm10, %v2726_v18 }
 0x124   : > { %v2648_v27 = vpop.permute.xlu1 %2647 }
 0x125   : > { %v2728_v11 = vsel %vm1466_vm9, %v2690_v16, %v2648_v27  ;;  %v1404_v19 = vpop.permute.xlu0 %1403 }
 0x126   : > { %v1486_v20 = vsel %vm1466_vm9, %v1447_v58, %v1404_v19  ;;  %4051 = vmatmul.mubr.msk.bf16.gmra.mrb[16].mxu0 %vm1925_vm10, %v2728_v11 }
 0x127   : > { %4017 = vmatmul.mubr.msk.bf16.vlgmr.msra.gmra.mrb[16].mxu1 %vm1925_vm10, %v1486_v20 }
 0x128   : > { %v2570_v53 = vpop.permute.xlu1 %2569 }
 0x129   : > { %v1325_v23 = vpop.permute.xlu0 %1324  ;;  %v2693_v63 = vsel %vm1417_vm8, %v4982_v46, %v2570_v53 }
 0x12a   : > { %v1450_v2 = vsel %vm1417_vm8, %v4987_v56, %v1325_v23 }
 0x12c   : > { %v1406_v17 = vpop.permute.xlu1 %1405 }
 0x12d   : > { %v1488_v6 = vsel %vm1466_vm9, %v1450_v2, %v1406_v17  ;;  %v1327_v25 = vpop.permute.xlu0 %1326 }
 0x12e   : > { %4020 = vmatprep.mubr.msk.bf16.mxu1 %vm1925_vm10, %v1488_v6  ;;  %v1453_v56 = vsel %vm1417_vm8, %v4995_v61, %v1327_v25 }
 0x130   : > { %v2650_v28 = vpop.permute.xlu1 %2649 }
 0x131   : > { %v2730_v49 = vsel %vm1466_vm9, %v2693_v63, %v2650_v28  ;;  %v2572_v29 = vpop.permute.xlu0 %2571 }
 0x132   : > { %4054 = vmatprep.mubr.msk.bf16.mxu0 %vm1925_vm10, %v2730_v49  ;;  %v2696_v57 = vsel %vm1417_vm8, %v5013_v30, %v2572_v29 }
 0x134   : > { %v2652_v31 = vpop.permute.xlu1 %2651 }
 0x135   : > { %v2732_v32 = vsel %vm1466_vm9, %v2696_v57, %v2652_v31  ;;  %v1408_v34 = vpop.permute.xlu0 %1407 }
 0x136   : > { %v1490_v35 = vsel %vm1466_vm9, %v1453_v56, %v1408_v34  ;;  %4055 = vmatmul.mubr.msk.bf16.gmra.mrb[20].mxu0 %vm1925_vm10, %v2732_v32 }
 0x137   : > { %4021 = vmatmul.mubr.msk.bf16.gmra.mrb[20].mxu1 %vm1925_vm10, %v1490_v35 }
 0x138   : > { %v2574_v46 = vpop.permute.xlu1 %2573 }
 0x139   : > { %v1329_v24 = vpop.permute.xlu0 %1328  ;;  %v2699_v61 = vsel %vm1417_vm8, %v5029_v51, %v2574_v46 }
 0x13a   : > { %v1456_v36 = vsel %vm1417_vm8, %v5035_v62, %v1329_v24 }
 0x13c   : > { %v1410_v38 = vpop.permute.xlu1 %1409 }
 0x13d   : > { %v1492_v30 = vsel %vm1466_vm9, %v1456_v36, %v1410_v38  ;;  %v1331_v39 = vpop.permute.xlu0 %1330 }
 0x13e   : > { %4024 = vmatprep.mubr.msk.bf16.mxu1 %vm1925_vm10, %v1492_v30  ;;  %v1459_v62 = vsel %vm1417_vm8, %v5043_v10, %v1331_v39 }
 0x140   : > { %v2654_v42 = vpop.permute.xlu1 %2653 }
 0x141   : > { %v2734_v26 = vsel %vm1466_vm9, %v2699_v61, %v2654_v42  ;;  %v2576_v33 = vpop.permute.xlu0 %2575 }
 0x142   : > { %4058 = vmatprep.mubr.msk.bf16.mxu0 %vm1925_vm10, %v2734_v26  ;;  %v2702_v44 = vsel %vm1417_vm8, %v5061_v37, %v2576_v33 }
 0x144   : > { %v2656_v45 = vpop.permute.xlu1 %2655 }
 0x145   : > { %v2736_v4 = vsel %vm1466_vm9, %v2702_v44, %v2656_v45  ;;  %v1412_v48 = vpop.permute.xlu0 %1411 }
 0x146   : > { %v1494_v52 = vsel %vm1466_vm9, %v1459_v62, %v1412_v48  ;;  %4059 = vmatmul.mubr.msk.bf16.gmra.mrb[24].mxu0 %vm1925_vm10, %v2736_v4 }
 0x147   : > { %4025 = vmatmul.mubr.msk.bf16.gmra.mrb[24].mxu1 %vm1925_vm10, %v1494_v52 }
 0x148   : > { %v2578_v51 = vpop.permute.xlu1 %2577 }
 0x149   : > { %v1333_v50 = vpop.permute.xlu0 %1332  ;;  %v2705_v10 = vsel %vm1417_vm8, %v5077_v0, %v2578_v51 }
 0x14a   : > { %v1462_v47 = vsel %vm1417_vm8, %v5083_v8, %v1333_v50 }
 0x14c   : > { %v1414_v41 = vpop.permute.xlu1 %1413 }
 0x14d   : > { %v1496_v37 = vsel %vm1466_vm9, %v1462_v47, %v1414_v41  ;;  %v1335_v55 = vpop.permute.xlu0 %1334 }
 0x14e   : > { %4028 = vmatprep.mubr.msk.bf16.mxu1 %vm1925_vm10, %v1496_v37  ;;  %v1465_v8 = vsel %vm1417_vm8, %v5091_v22, %v1335_v55 }
 0x150   : > { %v2658_v12 = vpop.permute.xlu1 %2657 }
 0x151   : > { %v2738_v43 = vsel %vm1466_vm9, %v2705_v10, %v2658_v12  ;;  %v2580_v59 = vpop.permute.xlu0 %2579 }
 0x152   : > { %4062 = vmatprep.mubr.msk.bf16.mxu0 %vm1925_vm10, %v2738_v43  ;;  %v2708_v60 = vsel %vm1417_vm8, %v5106_v40, %v2580_v59 }
 0x154   : > { %v2660_v54 = vpop.permute.xlu1 %2659 }
 0x155   : > { %v2740_v1 = vsel %vm1466_vm9, %v2708_v60, %v2660_v54  ;;  %v1416_v3 = vpop.permute.xlu0 %1415 }
 0x156   : > { %v1498_v5 = vsel %vm1466_vm9, %v1465_v8, %v1416_v3  ;;  %4063 = vmatmul.mubr.msk.bf16.gmra.mrb[28].mxu0 %vm1925_vm10, %v2740_v1 }
 0x157   : > { %4029 = vmatmul.mubr.msk.bf16.gmra.mrb[28].mxu1 %vm1925_vm10, %v1498_v5 }
 0x17a   : > { %v3968_v0 = vpop.f32.mrb[0].mxu1 }
 0x17b   : > { %v1996_v9 = vpop.f32.mrb[1].mxu1 }
 0x17c   : > { %v3969_v15 = vpop.f32.mrb[2].mxu1 }
 0x17d   : > { %v1999_v13 = vpop.f32.mrb[3].mxu1 }
 0x189   : > { %v3972_v21 = vpop.f32.mrb[4].mxu1 }
 0x18a   : > { %v2012_v40 = vpop.f32.mrb[5].mxu1 }
 0x18b   : > { %v3973_v14 = vpop.f32.mrb[6].mxu1 }
 0x18c   : > { %v2015_v7 = vpop.f32.mrb[7].mxu1 }
 0x199   : > { %v3976_v18 = vpop.f32.mrb[8].mxu1 }
 0x19a   : > { %v2028_v22 = vpop.f32.mrb[9].mxu1 }
 0x19b   : > { %v3977_v16 = vpop.f32.mrb[10].mxu1 }
 0x19c   : > { %v2031_v27 = vpop.f32.mrb[11].mxu1 }
 0x1a9   : > { %v5253_v58 = vpop.f32.mrb[12].mxu1 }
 0x1aa   : > { %v5255_v11 = vpop.f32.mrb[13].mxu1 }
 0x1ab   : > { %v5257_v19 = vpop.f32.mrb[14].mxu1 }
 0x1ac   : > { %v5259_v20 = vpop.f32.mrb[15].mxu1 }
 0x1b9   : > { %v4036_v53 = vpop.f32.mrb[0].mxu0 }
 0x1ba   : > { %v5261_v23 = vadd.f32 %v4036_v53, %v3968_v0  ;;  %v2818_v2 = vpop.f32.mrb[1].mxu0 }
 0x1bb   : > { %v5270_v17 = vadd.f32 %v2818_v2, %v1996_v9  ;;  %v4037_v6 = vpop.f32.mrb[2].mxu0 }
 0x1bc   : > { %v3804_v25 = vpack.c.bf16 %v5261_v23, %v5261_v23  ;;  %v5274_v63 = vadd.f32 %v4037_v6, %v3969_v15  ;;  %v2821_v28 = vpop.f32.mrb[3].mxu0  ;;  %v2980_v45 = vsel %vm1417_vm8, %v5261_v23, 0.0 }
 0x1bd   : > { %v3802_v49 = vpack.c.bf16 %v5270_v17, %v5270_v17  ;;  %v5278_v29 = vadd.f32 %v2821_v28, %v1999_v13  ;;  %v2977_v36 = vsel %vm1417_vm8, %v5270_v17, 0.0 }
 0x1be   : > { %3312 = vst.msk [vmem:[%s5268_s9 + $0x8] sm:$0xf] %vm909_vm5, %v3804_v25  ;;  %v3805_v57 = vpack.c.bf16 %v5274_v63, %v5274_v63  ;;  %v2982_v4 = vsel %vm1417_vm8, %v5274_v63, 0.0 }
 0x1bf   : > { %3310 = vst.msk [vmem:[%s5268_s9] sm:$0xf] %vm909_vm5, %v3802_v49  ;;  %v3803_v31 = vpack.c.bf16 %v5278_v29, %v5278_v29  ;;  %v2978_v32 = vsel %vm1417_vm8, %v5278_v29, 0.0 }
 0x1c0   : > { %3313 = vst.msk [vmem:[%s5268_s9 + $0xc] sm:$0xf] %vm909_vm5, %v3805_v57  ;;  %v2979_v61 = vadd.f32 %v2978_v32, %v2977_v36 }
 0x1c1   : > { %3311 = vst.msk [vmem:[%s5268_s9 + $0x4] sm:$0xf] %vm909_vm5, %v3803_v31 }
 0x1c2   : > { %v2981_v62 = vadd.f32 %v2980_v45, %v2979_v61 }
 0x1c4   : > { %v2983_v52 = vadd.f32 %v2982_v4, %v2981_v62 }
 0x1c9   : > { %v4040_v56 = vpop.f32.mrb[4].mxu0 }
 0x1ca   : > { %v5294_v34 = vadd.f32 %v4040_v56, %v3972_v21  ;;  %v2834_v35 = vpop.f32.mrb[5].mxu0 }
 0x1cb   : > { %v5296_v46 = vadd.f32 %v2834_v35, %v2012_v40  ;;  %v4041_v24 = vpop.f32.mrb[6].mxu0 }
 0x1cc   : > { %v3808_v38 = vpack.c.bf16 %v5294_v34, %v5294_v34  ;;  %v5302_v30 = vadd.f32 %v4041_v24, %v3973_v14  ;;  %v2837_v39 = vpop.f32.mrb[7].mxu0  ;;  %v2988_v1 = vsel %vm1417_vm8, %v5294_v34, 0.0 }
 0x1cd   : > { %v3806_v42 = vpack.c.bf16 %v5296_v46, %v5296_v46  ;;  %v5306_v26 = vadd.f32 %v2837_v39, %v2015_v7  ;;  %v2984_v48 = vsel %vm1417_vm8, %v5296_v46, 0.0 }
 0x1ce   : > { %3316 = vst.msk [vmem:[%s5268_s9 + $0x18] sm:$0xf] %vm909_vm5, %v3808_v38  ;;  %v3809_v33 = vpack.c.bf16 %v5302_v30, %v5302_v30  ;;  %v2985_v51 = vadd.f32 %v2984_v48, %v2983_v52  ;;  %v2990_v9 = vsel %vm1417_vm8, %v5302_v30, 0.0 }
 0x1cf   : > { %3314 = vst.msk [vmem:[%s5268_s9 + $0x10] sm:$0xf] %vm909_vm5, %v3806_v42  ;;  %v3807_v44 = vpack.c.bf16 %v5306_v26, %v5306_v26  ;;  %v2986_v50 = vsel %vm1417_vm8, %v5306_v26, 0.0 }
 0x1d0   : > { %3317 = vst.msk [vmem:[%s5268_s9 + $0x1c] sm:$0xf] %vm909_vm5, %v3809_v33  ;;  %v2987_v55 = vadd.f32 %v2986_v50, %v2985_v51 }
 0x1d1   : > { %3315 = vst.msk [vmem:[%s5268_s9 + $0x14] sm:$0xf] %vm909_vm5, %v3807_v44 }
 0x1d2   : > { %v2989_v5 = vadd.f32 %v2988_v1, %v2987_v55 }
 0x1d4   : > { %v2991_v13 = vadd.f32 %v2990_v9, %v2989_v5 }
 0x1d9   : > { %v4044_v47 = vpop.f32.mrb[8].mxu0 }
 0x1da   : > { %v5328_v41 = vadd.f32 %v4044_v47, %v3976_v18  ;;  %v2850_v37 = vpop.f32.mrb[9].mxu0 }
 0x1db   : > { %v5330_v10 = vadd.f32 %v2850_v37, %v2028_v22  ;;  %v4045_v12 = vpop.f32.mrb[10].mxu0 }
 0x1dc   : > { %v3812_v43 = vpack.c.bf16 %v5328_v41, %v5328_v41  ;;  %v5334_v59 = vadd.f32 %v4045_v12, %v3977_v16  ;;  %v2853_v60 = vpop.f32.mrb[11].mxu0  ;;  %v2996_v53 = vsel %vm1417_vm8, %v5328_v41, 0.0 }
 0x1dd   : > { %v3810_v54 = vpack.c.bf16 %v5330_v10, %v5330_v10  ;;  %v5338_v8 = vadd.f32 %v2853_v60, %v2031_v27  ;;  %v2992_v15 = vsel %vm1417_vm8, %v5330_v10, 0.0 }
 0x1de   : > { %3320 = vst.msk [vmem:[%s5268_s9 + $0x28] sm:$0xf] %vm909_vm5, %v3812_v43  ;;  %v3813_v3 = vpack.c.bf16 %v5334_v59, %v5334_v59  ;;  %v2993_v21 = vadd.f32 %v2992_v15, %v2991_v13 }
 0x1df   : > { %3318 = vst.msk [vmem:[%s5268_s9 + $0x20] sm:$0xf] %vm909_vm5, %v3810_v54  ;;  %v3811_v0 = vpack.c.bf16 %v5338_v8, %v5338_v8  ;;  %v2994_v40 = vsel %vm1417_vm8, %v5338_v8, 0.0 }
 0x1e0   : > { %3321 = vst.msk [vmem:[%s5268_s9 + $0x2c] sm:$0xf] %vm909_vm5, %v3813_v3  ;;  %v2995_v14 = vadd.f32 %v2994_v40, %v2993_v21 }
 0x1e1   : > { %3319 = vst.msk [vmem:[%s5268_s9 + $0x24] sm:$0xf] %vm909_vm5, %v3811_v0 }
 0x1e2   : > { %v2997_v28 = vadd.f32 %v2996_v53, %v2995_v14 }
 0x1e9   : > { %v4048_v7 = vpop.f32.mrb[12].mxu0 }
 0x1ea   : > { %v5361_v18 = vadd.f32 %v4048_v7, %v5253_v58  ;;  %v2866_v22 = vpop.f32.mrb[13].mxu0 }
 0x1eb   : > { %v5364_v16 = vadd.f32 %v2866_v22, %v5255_v11  ;;  %v4049_v27 = vpop.f32.mrb[14].mxu0 }
 0x1ec   : > { %v3816_v2 = vpack.c.bf16 %v5361_v18, %v5361_v18  ;;  %v5371_v6 = vadd.f32 %v4049_v27, %v5257_v19  ;;  %v2869_v25 = vpop.f32.mrb[15].mxu0  ;;  %v2998_v19 = vsel %vm1417_vm8, %v5334_v59, 0.0  ;;  %v3004_v36 = vsel %vm1417_vm8, %v5361_v18, 0.0 }
 0x1ed   : > { %v3814_v58 = vpack.c.bf16 %v5364_v16, %v5364_v16  ;;  %v5376_v49 = vadd.f32 %v2869_v25, %v5259_v20  ;;  %v3000_v31 = vsel %vm1417_vm8, %v5364_v16, 0.0  ;;  %v2999_v20 = vadd.f32 %v2998_v19, %v2997_v28 }
 0x1ee   : > { %3324 = vst.msk [vmem:[%s5268_s9 + $0x38] sm:$0xf] %vm909_vm5, %v3816_v2  ;;  %v3817_v11 = vpack.c.bf16 %v5371_v6, %v5371_v6  ;;  %v3006_v50 = vsel %vm1417_vm8, %v5371_v6, 0.0 }
 0x1ef   : > { %3322 = vst.msk [vmem:[%s5268_s9 + $0x30] sm:$0xf] %vm909_vm5, %v3814_v58  ;;  %v3815_v57 = vpack.c.bf16 %v5376_v49, %v5376_v49  ;;  %v3001_v56 = vadd.f32 %v3000_v31, %v2999_v20  ;;  %v3002_v32 = vsel %vm1417_vm8, %v5376_v49, 0.0 }
 0x1f0   : > { %3325 = vst.msk [vmem:[%s5268_s9 + $0x3c] sm:$0xf] %vm909_vm5, %v3817_v11 }
 0x1f1   : > { %3323 = vst.msk [vmem:[%s5268_s9 + $0x34] sm:$0xf] %vm909_vm5, %v3815_v57  ;;  %v3003_v35 = vadd.f32 %v3002_v32, %v3001_v56 }
 0x1f3   : > { %v3005_v61 = vadd.f32 %v3004_v36, %v3003_v35 }
 0x1f5   : > { %v3007_v12 = vadd.f32 %v3006_v50, %v3005_v61 }
 0x1f9   : > { %v4052_v24 = vpop.f32.mrb[16].mxu0 }
 0x1fa   : > { %v4018_v38 = vpop.f32.mrb[16].mxu1  ;;  %v2882_v39 = vpop.f32.mrb[17].mxu0 }
 0x1fb   : > { %v5398_v42 = vadd.f32 %v4052_v24, %v4018_v38  ;;  %v2261_v33 = vpop.f32.mrb[17].mxu1  ;;  %v4053_v44 = vpop.f32.mrb[18].mxu0 }
 0x1fc   : > { %v5400_v45 = vadd.f32 %v2882_v39, %v2261_v33  ;;  %v4019_v62 = vpop.f32.mrb[18].mxu1  ;;  %v2885_v4 = vpop.f32.mrb[19].mxu0 }
 0x1fd   : > { %v3820_v48 = vpack.c.bf16 %v5398_v42, %v5398_v42  ;;  %v5404_v52 = vadd.f32 %v4053_v44, %v4019_v62  ;;  %v2264_v51 = vpop.f32.mrb[19].mxu1  ;;  %v3012_v5 = vsel %vm1417_vm8, %v5398_v42, 0.0 }
 0x1fe   : > { %v3008_v47 = vsel %vm1417_vm8, %v5400_v45, 0.0  ;;  %v3818_v37 = vpack.c.bf16 %v5400_v45, %v5400_v45  ;;  %v5412_v55 = vadd.f32 %v2885_v4, %v2264_v51 }
 0x1ff   : > { %3328 = vst.msk [vmem:[%s5268_s9 + $0x48] sm:$0xf] %vm909_vm5, %v3820_v48  ;;  %v3821_v43 = vpack.c.bf16 %v5404_v52, %v5404_v52  ;;  %v3009_v54 = vadd.f32 %v3008_v47, %v3007_v12  ;;  %v3014_v7 = vsel %vm1417_vm8, %v5404_v52, 0.0 }
 0x200   : > { %3326 = vst.msk [vmem:[%s5268_s9 + $0x40] sm:$0xf] %vm909_vm5, %v3818_v37  ;;  %v3819_v60 = vpack.c.bf16 %v5412_v55, %v5412_v55  ;;  %v3010_v1 = vsel %vm1417_vm8, %v5412_v55, 0.0 }
 0x201   : > { %3329 = vst.msk [vmem:[%s5268_s9 + $0x4c] sm:$0xf] %vm909_vm5, %v3821_v43  ;;  %v3011_v3 = vadd.f32 %v3010_v1, %v3009_v54 }
 0x202   : > { %3327 = vst.msk [vmem:[%s5268_s9 + $0x44] sm:$0xf] %vm909_vm5, %v3819_v60 }
 0x203   : > { %v3013_v0 = vadd.f32 %v3012_v5, %v3011_v3 }
 0x205   : > { %v3015_v25 = vadd.f32 %v3014_v7, %v3013_v0 }
 0x209   : > { %v4056_v9 = vpop.f32.mrb[20].mxu0 }
 0x20a   : > { %v4022_v15 = vpop.f32.mrb[20].mxu1  ;;  %v2898_v13 = vpop.f32.mrb[21].mxu0 }
 0x20b   : > { %v5430_v21 = vadd.f32 %v4056_v9, %v4022_v15  ;;  %v2277_v40 = vpop.f32.mrb[21].mxu1  ;;  %v4057_v14 = vpop.f32.mrb[22].mxu0 }
 0x20c   : > { %v5434_v22 = vadd.f32 %v2898_v13, %v2277_v40  ;;  %v4023_v27 = vpop.f32.mrb[22].mxu1  ;;  %v2901_v53 = vpop.f32.mrb[23].mxu0 }
 0x20d   : > { %v3824_v2 = vpack.c.bf16 %v5430_v21, %v5430_v21  ;;  %v5438_v28 = vadd.f32 %v4057_v14, %v4023_v27  ;;  %v2280_v58 = vpop.f32.mrb[23].mxu1  ;;  %v3020_v24 = vsel %vm1417_vm8, %v5430_v21, 0.0 }
 0x20e   : > { %v3016_v11 = vsel %vm1417_vm8, %v5434_v22, 0.0  ;;  %v3822_v57 = vpack.c.bf16 %v5434_v22, %v5434_v22  ;;  %v5444_v19 = vadd.f32 %v2901_v53, %v2280_v58 }
 0x20f   : > { %3332 = vst.msk [vmem:[%s5268_s9 + $0x58] sm:$0xf] %vm909_vm5, %v3824_v2  ;;  %v3017_v31 = vadd.f32 %v3016_v11, %v3015_v25  ;;  %v3825_v20 = vpack.c.bf16 %v5438_v28, %v5438_v28  ;;  %v3022_v38 = vsel %vm1417_vm8, %v5438_v28, 0.0 }
 0x210   : > { %3330 = vst.msk [vmem:[%s5268_s9 + $0x50] sm:$0xf] %vm909_vm5, %v3822_v57  ;;  %v3018_v56 = vsel %vm1417_vm8, %v5444_v19, 0.0  ;;  %v3823_v32 = vpack.c.bf16 %v5444_v19, %v5444_v19 }
 0x211   : > { %3333 = vst.msk [vmem:[%s5268_s9 + $0x5c] sm:$0xf] %vm909_vm5, %v3825_v20  ;;  %v3019_v35 = vadd.f32 %v3018_v56, %v3017_v31 }
 0x212   : > { %3331 = vst.msk [vmem:[%s5268_s9 + $0x54] sm:$0xf] %vm909_vm5, %v3823_v32 }
 0x213   : > { %v3021_v36 = vadd.f32 %v3020_v24, %v3019_v35 }
 0x215   : > { %v3023_v39 = vadd.f32 %v3022_v38, %v3021_v36 }
 0x219   : > { %v4060_v61 = vpop.f32.mrb[24].mxu0 }
 0x21a   : > { %v4026_v33 = vpop.f32.mrb[24].mxu1  ;;  %v2914_v44 = vpop.f32.mrb[25].mxu0 }
 0x21b   : > { %v5464_v62 = vadd.f32 %v4060_v61, %v4026_v33  ;;  %v2293_v4 = vpop.f32.mrb[25].mxu1  ;;  %v4061_v48 = vpop.f32.mrb[26].mxu0 }
 0x21c   : > { %v5466_v51 = vadd.f32 %v2914_v44, %v2293_v4  ;;  %v4027_v50 = vpop.f32.mrb[26].mxu1  ;;  %v2917_v47 = vpop.f32.mrb[27].mxu0 }
 0x21d   : > { %v3828_v37 = vpack.c.bf16 %v5464_v62, %v5464_v62  ;;  %v5470_v12 = vadd.f32 %v4061_v48, %v4027_v50  ;;  %v2296_v43 = vpop.f32.mrb[27].mxu1  ;;  %v3028_v13 = vsel %vm1417_vm8, %v5464_v62, 0.0 }
 0x21e   : > { %v3024_v60 = vsel %vm1417_vm8, %v5466_v51, 0.0  ;;  %v3826_v54 = vpack.c.bf16 %v5466_v51, %v5466_v51  ;;  %v4095_v1 = vadd.f32 %v2917_v47, %v2296_v43 }
 0x21f   : > { %3336 = vst.msk [vmem:[%s5268_s9 + $0x68] sm:$0xf] %vm909_vm5, %v3828_v37  ;;  %v3025_v3 = vadd.f32 %v3024_v60, %v3023_v39  ;;  %v3829_v5 = vpack.c.bf16 %v5470_v12, %v5470_v12  ;;  %v3030_v14 = vsel %vm1417_vm8, %v5470_v12, 0.0 }
 0x220   : > { %3334 = vst.msk [vmem:[%s5268_s9 + $0x60] sm:$0xf] %vm909_vm5, %v3826_v54  ;;  %v3026_v0 = vsel %vm1417_vm8, %v4095_v1, 0.0  ;;  %v3827_v9 = vpack.c.bf16 %v4095_v1, %v4095_v1 }
 0x221   : > { %3337 = vst.msk [vmem:[%s5268_s9 + $0x6c] sm:$0xf] %vm909_vm5, %v3829_v5  ;;  %v3027_v15 = vadd.f32 %v3026_v0, %v3025_v3 }
 0x222   : > { %3335 = vst.msk [vmem:[%s5268_s9 + $0x64] sm:$0xf] %vm909_vm5, %v3827_v9 }
 0x223   : > { %v3029_v40 = vadd.f32 %v3028_v13, %v3027_v15 }
 0x225   : > { %v3031_v7 = vadd.f32 %v3030_v14, %v3029_v40 }
 0x229   : > { %v4064_v27 = vpop.f32.mrb[28].mxu0 }
 0x22a   : > { %v4030_v53 = vpop.f32.mrb[28].mxu1  ;;  %v2930_v2 = vpop.f32.mrb[29].mxu0 }
 0x22b   : > { %v4096_v25 = vadd.f32 %v4064_v27, %v4030_v53  ;;  %v2309_v58 = vpop.f32.mrb[29].mxu1  ;;  %v4065_v11 = vpop.f32.mrb[30].mxu0 }
 0x22c   : > { %v4097_v57 = vadd.f32 %v2930_v2, %v2309_v58  ;;  %v4031_v31 = vpop.f32.mrb[30].mxu1  ;;  %v2933_v20 = vpop.f32.mrb[31].mxu0 }
 0x22d   : > { %v3832_v56 = vpack.c.bf16 %v4096_v25, %v4096_v25  ;;  %v4098_v32 = vadd.f32 %v4065_v11, %v4031_v31  ;;  %v2312_v35 = vpop.f32.mrb[31].mxu1  ;;  %v3036_v48 = vsel %vm1417_vm8, %v4096_v25, 0.0 }
 0x22e   : > { %v3032_v24 = vsel %vm1417_vm8, %v4097_v57, 0.0  ;;  %v3830_v36 = vpack.c.bf16 %v4097_v57, %v4097_v57  ;;  %v4099_v38 = vadd.f32 %v2933_v20, %v2312_v35 }
 0x22f   : > { %3340 = vst.msk [vmem:[%s5268_s9 + $0x78] sm:$0xf] %vm909_vm5, %v3832_v56  ;;  %v3033_v39 = vadd.f32 %v3032_v24, %v3031_v7  ;;  %v3833_v61 = vpack.c.bf16 %v4098_v32, %v4098_v32  ;;  %v3038_v47 = vsel %vm1417_vm8, %v4098_v32, 0.0 }
 0x230   : > { %3338 = vst.msk [vmem:[%s5268_s9 + $0x70] sm:$0xf] %vm909_vm5, %v3830_v36  ;;  %v3034_v33 = vsel %vm1417_vm8, %v4099_v38, 0.0  ;;  %v3831_v44 = vpack.c.bf16 %v4099_v38, %v4099_v38 }
 0x231   : > { %3341 = vst.msk [vmem:[%s5268_s9 + $0x7c] sm:$0xf] %vm909_vm5, %v3833_v61  ;;  %v3035_v4 = vadd.f32 %v3034_v33, %v3033_v39 }
 0x232   : > { %3339 = vst.msk [vmem:[%s5268_s9 + $0x74] sm:$0xf] %vm909_vm5, %v3831_v44 }
 0x233   : > { %v3037_v50 = vadd.f32 %v3036_v48, %v3035_v4 }
 0x235   : > { %v3039_v37 = vadd.f32 %v3038_v47, %v3037_v50 }
 0x237   : > { %v3040_v43 = vrot.slane %v3039_v37, 4 }
 0x239   : > { %v3041_v60 = vadd.f32 %v3040_v43, %v3039_v37 }
 0x23b   : > { %v3042_v54 = vrot.slane %v3041_v60, 2 }
 0x23d   : > { %v3043_v3 = vadd.f32 %v3042_v54, %v3041_v60 }
 0x23f   : > { %v3044_v5 = vrot.slane %v3043_v3, 1 }
 0x241   : > { %v3045_v0 = vadd.f32 %v3044_v5, %v3043_v3 }
 0x243   : > { %3079 = vst.msk [vmem:[%s5507_s12] sm:$0x1] %vm465_vm0, %v3045_v0  ;;  %v5511_v9 = vmul.f32 0.00390625, %v3045_v0 }
 0x245   : > { %v5515_v15 = vsub.f32 %v5434_v22, %v5511_v9  ;;  %v5519_v13 = vsub.f32 %v5444_v19, %v5511_v9  ;;  %v5523_v40 = vsub.f32 %v5430_v21, %v5511_v9  ;;  %v5527_v14 = vsub.f32 %v5438_v28, %v5511_v9 }
 0x246   : > { %v5531_v7 = vsub.f32 %v5466_v51, %v5511_v9  ;;  %v5534_v27 = vsub.f32 %v4095_v1, %v5511_v9  ;;  %v5538_v22 = vsub.f32 %v5464_v62, %v5511_v9  ;;  %v5542_v19 = vsub.f32 %v5470_v12, %v5511_v9 }
 0x247   : > { %v5545_v21 = vsub.f32 %v4097_v57, %v5511_v9  ;;  %v5548_v28 = vsub.f32 %v4099_v38, %v5511_v9  ;;  %v5551_v51 = vsub.f32 %v4096_v25, %v5511_v9  ;;  %v5554_v1 = vsub.f32 %v4098_v32, %v5511_v9 }
 0x248   : > { %v3047_v62 = vsub.f32 %v5270_v17, %v5511_v9  ;;  %v3048_v53 = vsub.f32 %v5278_v29, %v5511_v9  ;;  %v3049_v12 = vsub.f32 %v5261_v23, %v5511_v9  ;;  %v3050_v2 = vsub.f32 %v5274_v63, %v5511_v9 }
 0x249   : > { %v3051_v25 = vsub.f32 %v5296_v46, %v5511_v9  ;;  %v3052_v31 = vsub.f32 %v5306_v26, %v5511_v9  ;;  %v3053_v23 = vsub.f32 %v5294_v34, %v5511_v9  ;;  %v3054_v46 = vsub.f32 %v5302_v30, %v5511_v9 }
 0x24a   : > { %v3080_v58 = vmul.f32 %v3047_v62, %v3047_v62  ;;  %v3081_v11 = vmul.f32 %v3048_v53, %v3048_v53  ;;  %v3082_v57 = vmul.f32 %v3049_v12, %v3049_v12  ;;  %v3083_v20 = vmul.f32 %v3050_v2, %v3050_v2 }
 0x24b   : > { %v3084_v32 = vmul.f32 %v3051_v25, %v3051_v25  ;;  %v3085_v24 = vmul.f32 %v3052_v31, %v3052_v31  ;;  %v3055_v38 = vsub.f32 %v5330_v10, %v5511_v9  ;;  %v3086_v39 = vmul.f32 %v3053_v23, %v3053_v23 }
 0x24c   : > { %v3112_v17 = vsel %vm1417_vm8, %v3080_v58, 0.0  ;;  %v3113_v29 = vsel %vm1417_vm8, %v3081_v11, 0.0  ;;  %v3115_v63 = vsel %vm1417_vm8, %v3082_v57, 0.0  ;;  %v3117_v36 = vsel %vm1417_vm8, %v3083_v20, 0.0 }
 0x24d   : > { %v3114_v56 = vadd.f32 %v3113_v29, %v3112_v17  ;;  %v3119_v61 = vsel %vm1417_vm8, %v3084_v32, 0.0  ;;  %v3056_v34 = vsub.f32 %v5338_v8, %v5511_v9  ;;  %v3087_v44 = vmul.f32 %v3054_v46, %v3054_v46 }
 0x24e   : > { %v3121_v4 = vsel %vm1417_vm8, %v3085_v24, 0.0  ;;  %v3057_v30 = vsub.f32 %v5328_v41, %v5511_v9  ;;  %v3088_v50 = vmul.f32 %v3055_v38, %v3055_v38  ;;  %v3123_v47 = vsel %vm1417_vm8, %v3086_v39, 0.0 }
 0x24f   : > { %v3116_v35 = vadd.f32 %v3115_v63, %v3114_v56  ;;  %v3058_v10 = vsub.f32 %v5334_v59, %v5511_v9  ;;  %v3089_v43 = vmul.f32 %v3056_v34, %v3056_v34  ;;  %v3125_v60 = vsel %vm1417_vm8, %v3087_v44, 0.0 }
 0x250   : > { %v3059_v8 = vsub.f32 %v5364_v16, %v5511_v9  ;;  %v3090_v3 = vmul.f32 %v3057_v30, %v3057_v30  ;;  %v3127_v5 = vsel %vm1417_vm8, %v3088_v50, 0.0  ;;  %v3060_v41 = vsub.f32 %v5376_v49, %v5511_v9 }
 0x251   : > { %v3118_v26 = vadd.f32 %v3117_v36, %v3116_v35  ;;  %v3091_v62 = vmul.f32 %v3058_v10, %v3058_v10  ;;  %v3129_v53 = vsel %vm1417_vm8, %v3089_v43, 0.0  ;;  %v3061_v59 = vsub.f32 %v5361_v18, %v5511_v9 }
 0x252   : > { %v3092_v2 = vmul.f32 %v3059_v8, %v3059_v8  ;;  %v3131_v58 = vsel %vm1417_vm8, %v3090_v3, 0.0  ;;  %v3062_v16 = vsub.f32 %v5371_v6, %v5511_v9  ;;  %v3093_v25 = vmul.f32 %v3060_v41, %v3060_v41 }
 0x253   : > { %v3120_v33 = vadd.f32 %v3119_v61, %v3118_v26  ;;  %v3133_v57 = vsel %vm1417_vm8, %v3091_v62, 0.0  ;;  %v3063_v49 = vsub.f32 %v5400_v45, %v5511_v9  ;;  %v3094_v20 = vmul.f32 %v3061_v59, %v3061_v59 }
 0x254   : > { %v3135_v17 = vsel %vm1417_vm8, %v3092_v2, 0.0  ;;  %v3064_v18 = vsub.f32 %v5412_v55, %v5511_v9  ;;  %v3095_v56 = vmul.f32 %v3062_v16, %v3062_v16  ;;  %v3137_v23 = vsel %vm1417_vm8, %v3093_v25, 0.0 }
 0x255   : > { %v3122_v48 = vadd.f32 %v3121_v4, %v3120_v33  ;;  %v3065_v6 = vsub.f32 %v5398_v42, %v5511_v9  ;;  %v3096_v63 = vmul.f32 %v3063_v49, %v3063_v49  ;;  %v3139_v35 = vsel %vm1417_vm8, %v3094_v20, 0.0 }
 0x256   : > { %v3066_v45 = vsub.f32 %v5404_v52, %v5511_v9  ;;  %v3097_v24 = vmul.f32 %v3064_v18, %v3064_v18  ;;  %v3141_v36 = vsel %vm1417_vm8, %v3095_v56, 0.0  ;;  %v3100_v42 = vmul.f32 %v5515_v15, %v5515_v15 }
 0x257   : > { %v3124_v37 = vadd.f32 %v3123_v47, %v3122_v48  ;;  %v3098_v38 = vmul.f32 %v3065_v6, %v3065_v6  ;;  %v3143_v55 = vsel %vm1417_vm8, %v3096_v63, 0.0  ;;  %v3101_v52 = vmul.f32 %v5519_v13, %v5519_v13 }
 0x258   : > { %v3099_v61 = vmul.f32 %v3066_v45, %v3066_v45  ;;  %v3145_v33 = vsel %vm1417_vm8, %v3097_v24, 0.0  ;;  %v3102_v30 = vmul.f32 %v5523_v40, %v5523_v40  ;;  %v3151_v50 = vsel %vm1417_vm8, %v3100_v42, 0.0 }
 0x259   : > { %v3126_v54 = vadd.f32 %v3125_v60, %v3124_v37  ;;  %v3147_v44 = vsel %vm1417_vm8, %v3098_v38, 0.0  ;;  %v3103_v37 = vmul.f32 %v5527_v14, %v5527_v14  ;;  %v3153_v15 = vsel %vm1417_vm8, %v3101_v52, 0.0 }
 0x25a   : > { %v3149_v9 = vsel %vm1417_vm8, %v3099_v61, 0.0  ;;  %v3104_v43 = vmul.f32 %v5531_v7, %v5531_v7  ;;  %v3155_v13 = vsel %vm1417_vm8, %v3102_v30, 0.0  ;;  %v3106_v3 = vmul.f32 %v5538_v22, %v5538_v22 }
 0x25b   : > { %v3128_v0 = vadd.f32 %v3127_v5, %v3126_v54  ;;  %v3105_v54 = vmul.f32 %v5534_v27, %v5534_v27  ;;  %v3157_v40 = vsel %vm1417_vm8, %v3103_v37, 0.0  ;;  %v3108_v62 = vmul.f32 %v5545_v21, %v5545_v21 }
 0x25c   : > { %v3159_v14 = vsel %vm1417_vm8, %v3104_v43, 0.0  ;;  %v3163_v27 = vsel %vm1417_vm8, %v3106_v3, 0.0  ;;  %v3110_v2 = vmul.f32 %v5551_v51, %v5551_v51 }
 0x25d   : > { %v3130_v12 = vadd.f32 %v3129_v53, %v3128_v0  ;;  %v3107_v0 = vmul.f32 %v5542_v19, %v5542_v19  ;;  %v3161_v7 = vsel %vm1417_vm8, %v3105_v54, 0.0  ;;  %v3167_v19 = vsel %vm1417_vm8, %v3108_v62, 0.0 }
 0x25e   : > { %v3171_v25 = vsel %vm1417_vm8, %v3110_v2, 0.0 }
 0x25f   : > { %v3132_v11 = vadd.f32 %v3131_v58, %v3130_v12  ;;  %v3109_v12 = vmul.f32 %v5548_v28, %v5548_v28  ;;  %v3165_v22 = vsel %vm1417_vm8, %v3107_v0, 0.0 }
 0x261   : > { %v3134_v31 = vadd.f32 %v3133_v57, %v3132_v11  ;;  %v3111_v11 = vmul.f32 %v5554_v1, %v5554_v1  ;;  %v3169_v21 = vsel %vm1417_vm8, %v3109_v12, 0.0 }
 0x263   : > { %v3136_v29 = vadd.f32 %v3135_v17, %v3134_v31  ;;  %v3173_v28 = vsel %vm1417_vm8, %v3111_v11, 0.0 }
 0x265   : > { %v3138_v32 = vadd.f32 %v3137_v23, %v3136_v29 }
 0x267   : > { %v3140_v46 = vadd.f32 %v3139_v35, %v3138_v32 }
 0x269   : > { %v3142_v26 = vadd.f32 %v3141_v36, %v3140_v46 }
 0x26b   : > { %v3144_v39 = vadd.f32 %v3143_v55, %v3142_v26 }
 0x26d   : > { %v3146_v34 = vadd.f32 %v3145_v33, %v3144_v39 }
 0x26f   : > { %v3148_v4 = vadd.f32 %v3147_v44, %v3146_v34 }
 0x271   : > { %v3150_v48 = vadd.f32 %v3149_v9, %v3148_v4 }
 0x273   : > { %v3152_v47 = vadd.f32 %v3151_v50, %v3150_v48 }
 0x275   : > { %v3154_v10 = vadd.f32 %v3153_v15, %v3152_v47 }
 0x277   : > { %v3156_v60 = vadd.f32 %v3155_v13, %v3154_v10 }
 0x279   : > { %v3158_v8 = vadd.f32 %v3157_v40, %v3156_v60 }
 0x27b   : > { %v3160_v5 = vadd.f32 %v3159_v14, %v3158_v8 }
 0x27d   : > { %v3162_v41 = vadd.f32 %v3161_v7, %v3160_v5 }
 0x27f   : > { %v3164_v53 = vadd.f32 %v3163_v27, %v3162_v41 }
 0x281   : > { %v3166_v59 = vadd.f32 %v3165_v22, %v3164_v53 }
 0x283   : > { %v3168_v58 = vadd.f32 %v3167_v19, %v3166_v59 }
 0x285   : > { %v3170_v16 = vadd.f32 %v3169_v21, %v3168_v58 }
 0x287   : > { %v3172_v57 = vadd.f32 %v3171_v25, %v3170_v16 }
 0x289   : > { %v3174_v31 = vadd.f32 %v3173_v28, %v3172_v57 }
 0x28b   : > { %v3175_v49 = vrot.slane %v3174_v31, 4 }
 0x28d   : > { %v3176_v20 = vadd.f32 %v3175_v49, %v3174_v31 }
 0x28f   : > { %v3177_v17 = vrot.slane %v3176_v20, 2 }
 0x291   : > { %v3178_v51 = vadd.f32 %v3177_v17, %v3176_v20 }
 0x293   : > { %v3179_v29 = vrot.slane %v3178_v51, 1 }
 0x295   : > { %v3180_v18 = vadd.f32 %v3179_v29, %v3178_v51 }
 0x297   : > { %3181 = vst.msk [vmem:[%s5507_s12 + $0x1] sm:$0x1] %vm465_vm0, %v3180_v18 }
 0x298 PF: > { %s18_s2 = sadd.s32 1, %s4309_s2   ;;  %s5673_s24 = smov %s4305_s1 }
 0x299   : > { %p15_p5 = scmp.ge.s32.totalorder %s18_s2, 4   ;;  %s5674_s1 = smov %s5676_s25 }
 0x29b   :  { %17 = sbr.rel (!%p15_p5) target bundleno = 2 (0x2), region = 98 }

</bundles_post_ra>
